<compile_context>
chip_gen: v7x
topology: tpu7x:2x2x1
jax: 0.10.0
libtpu: 0.0.40
codegen_flags: <defaults>
</compile_context>

<pallas_src>
import math
from functools import partial

import jax
import jax.numpy as jnp
from jax.experimental import pallas as pl
from jax.experimental.pallas import tpu as pltpu  # noqa: F401  (TPU backend)

DIM_FEEDFORWARD = 2048  # nn.TransformerEncoderLayer default
LN_EPS = 1e-5           # nn.LayerNorm default
LANES = 128             # lane width for lane-dense padded outputs


# ----------------------------------------------------------------------------
# Pallas kernels
# ----------------------------------------------------------------------------
def _layernorm(x, w, b, eps=LN_EPS):
    mu = jnp.mean(x, axis=-1, keepdims=True)
    var = jnp.mean(jnp.square(x - mu), axis=-1, keepdims=True)
    return (x - mu) * jax.lax.rsqrt(var + eps) * w + b


def fused_tf_kernel(src_ref, pe_ref, mask_ref,
                    ew1_ref, eb1_ref, ew2t_ref, eb2_ref,
                    wq_ref, wk_ref, wv_ref, bq_ref, bk_ref, bv_ref,
                    wo_ref, bo_ref, ln1w_ref, ln1b_ref,
                    ff1t_ref, ff1b_ref, ff2t_ref, ff2b_ref,
                    ln2w_ref, ln2b_ref,
                    lw1t_ref, lb1_ref, lw2p_ref, lb2p_ref,
                    o_ref):
    """encoder MLP + PositionalEncoding + nlayers TransformerEncoderLayers
    (post-norm, ReLU FFN, eval mode) + the `linear` head, fused in one kernel.

    Tokens are batch-major (B*S, D).  Per-head attention weights arrive
    pre-split and layer-stacked; the leading layer/head axis is indexed with
    static Python ints, so no lane slicing of activations is ever needed."""
    f32 = jnp.float32
    cdt = ew2t_ref.dtype          # compute dtype feeding the MXU (bf16)

    N = src_ref.shape[0]          # B * S tokens
    S = mask_ref.shape[0]
    B = N // S
    L = ln1w_ref.shape[0]         # number of encoder layers
    LH, D, hd = wq_ref.shape      # (L*H, D, hd)
    H = LH // L
    scale = 1.0 / math.sqrt(hd)

    # --- self.encoder: Linear(1, D/2) as VPU broadcast, ReLU, Linear(D/2, D) ---
    h0 = jnp.maximum(src_ref[...] * ew1_ref[...] + eb1_ref[...], 0.0)      # (N, D/2)
    x = jnp.dot(h0.astype(cdt), ew2t_ref[...],
                preferred_element_type=f32) + eb2_ref[...]                  # (N, D)

    # --- PositionalEncoding: x + pe[:B] (per-sample constant, as in the module)
    x = x + pe_ref[...]
    # TODO(synk): nn.Dropout layers are identity here (eval mode), no RNG applied.

    mask = mask_ref[...]                                                    # (S, S)

    # --- nn.TransformerEncoder stack, statically unrolled -----------------------
    for l in range(L):
        xc = x.astype(cdt)
        attn = jnp.zeros((N, D), f32)
        for hh in range(H):
            idx = l * H + hh
            q = (jnp.dot(xc, wq_ref[idx], preferred_element_type=f32)
                 + bq_ref[idx]) * scale                                     # (N, hd)
            k = jnp.dot(xc, wk_ref[idx], preferred_element_type=f32) + bk_ref[idx]
            v = jnp.dot(xc, wv_ref[idx], preferred_element_type=f32) + bv_ref[idx]
            q3 = q.reshape(B, S, hd).astype(cdt)   # major-dim split: free reshape
            k3 = k.reshape(B, S, hd).astype(cdt)
            v3 = v.reshape(B, S, hd).astype(cdt)
            # Batched QK^T over the batch dim; the contraction handles the
            # transpose (no explicit k.T / relayout).
            s = jnp.einsum('bqd,bkd->bqk', q3, k3,
                           preferred_element_type=f32) + mask               # (B, S, S)
            m = jnp.max(s, axis=-1, keepdims=True)
            p = jnp.exp(s - m)
            a = p * pl.reciprocal(jnp.sum(p, axis=-1, keepdims=True), approx=True)
            ctx = jnp.einsum('bqk,bkd->bqd', a.astype(cdt), v3,
                             preferred_element_type=f32)                    # (B, S, hd)
            # Output projection accumulated per head (avoids the head concat).
            attn = attn + jnp.dot(ctx.reshape(N, hd).astype(cdt), wo_ref[idx],
                                  preferred_element_type=f32)
        attn = attn + bo_ref[l]

        # Residual + LayerNorm 1 (f32).
        y = _layernorm(x + attn, ln1w_ref[l], ln1b_ref[l])

        # Feed-forward (ReLU) + residual + LayerNorm 2.
        h1 = jnp.maximum(jnp.dot(y.astype(cdt), ff1t_ref[l],
                                 preferred_element_type=f32) + ff1b_ref[l], 0.0)
        ff = jnp.dot(h1.astype(cdt), ff2t_ref[l],
                     preferred_element_type=f32) + ff2b_ref[l]
        x = _layernorm(y + ff, ln2w_ref[l], ln2b_ref[l])

    # --- self.linear: Linear(D, D/2) -> ReLU -> Linear(D/2, 1) ------------------
    # The N=1 output is padded to 128 lanes (zero weight columns) so the final
    # store is lane-dense; column 0 holds the real per-token scalar.
    lh = jnp.maximum(jnp.dot(x.astype(cdt), lw1t_ref[...],
                             preferred_element_type=f32) + lb1_ref[...], 0.0)
    o = jnp.dot(lh.astype(cdt), lw2p_ref[...],
                preferred_element_type=f32) + lb2p_ref[...]                 # (N, 128)
    o_ref[...] = o.astype(o_ref.dtype)
    # TODO(synk): for non-toy B*S, add a token-tile grid (whole samples per tile)
    # with resident weight blocks and dimension_semantics=("parallel",) so v7x's
    # two TensorCores split the token axis; unnecessary at B*S=16.


def linear2_kernel(y_ref, w1t_ref, b1_ref, w2p_ref, b2p_ref, o_ref):
    """self.linear2: Linear(iw, (iw+ow)//2) -> ReLU -> Linear(., ow), with the
    ow-wide output padded to a 128-lane slab (sliced back in the wrapper)."""
    h = jnp.maximum(jnp.dot(y_ref[...], w1t_ref[...],
                            preferred_element_type=jnp.float32) + b1_ref[...], 0.0)
    o = jnp.dot(h, w2p_ref[...], preferred_element_type=jnp.float32) + b2p_ref[...]
    o_ref[...] = o.astype(o_ref.dtype)


# ----------------------------------------------------------------------------
# Model glue: params, weight prep, positional encoding, mask, forward
# ----------------------------------------------------------------------------
def make_pe(max_len, d_model):
    position = jnp.arange(max_len, dtype=jnp.float32)[:, None]
    div_term = jnp.exp(jnp.arange(0, d_model, 2, dtype=jnp.float32)
                       * (-math.log(10000.0) / d_model))
    pe = jnp.zeros((max_len, d_model), jnp.float32)
    pe = pe.at[:, 0::2].set(jnp.sin(position * div_term))
    pe = pe.at[:, 1::2].set(jnp.cos(position * div_term))
    return pe[:, None, :]  # (max_len, 1, d_model), matching unsqueeze(0).transpose(0,1)


def generate_square_subsequent_mask(sz):
    i = jnp.arange(sz)[:, None]
    j = jnp.arange(sz)[None, :]
    return jnp.where(j <= i, 0.0, -jnp.inf).astype(jnp.float32)


def init_params(key, iw, ow, d_model, nhead, nlayers,
                dim_ff=DIM_FEEDFORWARD, max_len=5000):
    def dense(k, out_d, in_d):
        kw, kb = jax.random.split(k)
        bound = 1.0 / math.sqrt(in_d)
        w = jax.random.uniform(kw, (out_d, in_d), jnp.float32, -bound, bound)
        b = jax.random.uniform(kb, (out_d,), jnp.float32, -bound, bound)
        return w, b

    ks = jax.random.split(key, 6 + nlayers)
    p = {}
    p['enc_w1'], p['enc_b1'] = dense(ks[0], d_model // 2, 1)
    p['enc_w2'], p['enc_b2'] = dense(ks[1], d_model, d_model // 2)
    p['lin_w1'], p['lin_b1'] = dense(ks[2], d_model // 2, d_model)
    p['lin_w2'], p['lin_b2'] = dense(ks[3], 1, d_model // 2)
    hid2 = (iw + ow) // 2
    p['l2_w1'], p['l2_b1'] = dense(ks[4], hid2, iw)
    p['l2_w2'], p['l2_b2'] = dense(ks[5], ow, hid2)
    p['pe'] = make_pe(max_len, d_model)

    layers = []
    for i in range(nlayers):
        lk = jax.random.split(ks[6 + i], 4)
        lp = {}
        lp['in_w'], lp['in_b'] = dense(lk[0], 3 * d_model, d_model)
        lp['out_w'], lp['out_b'] = dense(lk[1], d_model, d_model)
        lp['ff1_w'], lp['ff1_b'] = dense(lk[2], dim_ff, d_model)
        lp['ff2_w'], lp['ff2_b'] = dense(lk[3], d_model, dim_ff)
        lp['ln1_w'] = jnp.ones((d_model,), jnp.float32)
        lp['ln1_b'] = jnp.zeros((d_model,), jnp.float32)
        lp['ln2_w'] = jnp.ones((d_model,), jnp.float32)
        lp['ln2_b'] = jnp.zeros((d_model,), jnp.float32)
        layers.append(lp)
    p['layers'] = layers
    return p


def prepare_params(params, *, nhead, use_bf16=True):
    """One-time weight prep: transpose, split per head, stack across layers,
    cast MXU operands to bf16, and zero-pad the narrow output heads to 128 lanes."""
    wdt = jnp.bfloat16 if use_bf16 else jnp.float32
    D = params['enc_w2'].shape[0]
    H = nhead
    hd = D // H
    layers = params['layers']
    L = len(layers)

    def stack(fn):
        return jnp.stack([fn(lp) for lp in layers], axis=0)

    def qkv_heads(lp, i):   # (H, D, hd): x @ block_h gives head h's q/k/v
        return lp['in_w'][i * D:(i + 1) * D].T.reshape(D, H, hd).transpose(1, 0, 2)

    def qkv_bias(lp, i):    # (H, 1, hd)
        return lp['in_b'][i * D:(i + 1) * D].reshape(H, 1, hd)

    prep = {
        'enc_w1': params['enc_w1'][:, 0][None, :],               # (1, D/2) VPU bcast
        'enc_b1': params['enc_b1'][None, :],
        'enc_w2t': params['enc_w2'].T.astype(wdt),                # (D/2, D)
        'enc_b2': params['enc_b2'][None, :],
        'pe_bd': params['pe'][:, 0, :],                           # (max_len, D)
        'wq': stack(lambda lp: qkv_heads(lp, 0)).reshape(L * H, D, hd).astype(wdt),
        'wk': stack(lambda lp: qkv_heads(lp, 1)).reshape(L * H, D, hd).astype(wdt),
        'wv': stack(lambda lp: qkv_heads(lp, 2)).reshape(L * H, D, hd).astype(wdt),
        'bq': stack(lambda lp: qkv_bias(lp, 0)).reshape(L * H, 1, hd),
        'bk': stack(lambda lp: qkv_bias(lp, 1)).reshape(L * H, 1, hd),
        'bv': stack(lambda lp: qkv_bias(lp, 2)).reshape(L * H, 1, hd),
        'wo': stack(lambda lp: lp['out_w'].T.reshape(H, hd, D)).reshape(L * H, hd, D).astype(wdt),
        'bo': stack(lambda lp: lp['out_b'][None, :]),             # (L, 1, D)
        'ln1w': stack(lambda lp: lp['ln1_w'][None, :]),
        'ln1b': stack(lambda lp: lp['ln1_b'][None, :]),
        'ff1t': stack(lambda lp: lp['ff1_w'].T).astype(wdt),      # (L, D, F)
        'ff1b': stack(lambda lp: lp['ff1_b'][None, :]),
        'ff2t': stack(lambda lp: lp['ff2_w'].T).astype(wdt),      # (L, F, D)
        'ff2b': stack(lambda lp: lp['ff2_b'][None, :]),
        'ln2w': stack(lambda lp: lp['ln2_w'][None, :]),
        'ln2b': stack(lambda lp: lp['ln2_b'][None, :]),
        'lin_w1t': params['lin_w1'].T.astype(wdt),                # (D, D/2)
        'lin_b1': params['lin_b1'][None, :],
        'lin_w2p': jnp.zeros((D // 2, LANES), jnp.float32)
                      .at[:, 0].set(params['lin_w2'][0]).astype(wdt),
        'lin_b2p': jnp.zeros((1, LANES), jnp.float32).at[0, 0].set(params['lin_b2'][0]),
    }
    hid2, iw = params['l2_w1'].shape
    ow = params['l2_w2'].shape[0]
    prep['l2_w1t'] = params['l2_w1'].T                            # (iw, hid2) f32
    prep['l2_b1'] = params['l2_b1'][None, :]
    prep['l2_w2p'] = jnp.zeros((hid2, LANES), jnp.float32).at[:, :ow].set(params['l2_w2'].T)
    prep['l2_b2p'] = jnp.zeros((1, LANES), jnp.float32).at[0, :ow].set(params['l2_b2'])
    return prep


def tf_model_forward(prep, src, srcmask, *, ow):
    """src: (B, iw, 1) f32, srcmask: (iw, iw) additive causal mask. Returns (B, ow)."""
    B, S, _ = src.shape
    D = prep['enc_b2'].shape[1]

    # PE slab matching the module quirk: pe[:B] broadcast over the sequence axis.
    pe_bs = jnp.broadcast_to(prep['pe_bd'][:B][:, None, :], (B, S, D)).reshape(B * S, D)

    # Fused kernel: encoder MLP + PE + all encoder layers + `linear` head.
    y_tok = pl.pallas_call(
        fused_tf_kernel,
        out_shape=jax.ShapeDtypeStruct((B * S, LANES), jnp.float32),
    )(src.reshape(B * S, 1), pe_bs, srcmask,
      prep['enc_w1'], prep['enc_b1'], prep['enc_w2t'], prep['enc_b2'],
      prep['wq'], prep['wk'], prep['wv'], prep['bq'], prep['bk'], prep['bv'],
      prep['wo'], prep['bo'], prep['ln1w'], prep['ln1b'],
      prep['ff1t'], prep['ff1b'], prep['ff2t'], prep['ff2b'],
      prep['ln2w'], prep['ln2b'],
      prep['lin_w1t'], prep['lin_b1'], prep['lin_w2p'], prep['lin_b2p'])

    # Per-token scalar -> (B, S) view (tiny XLA gather/reshape between kernels).
    y2 = y_tok[:, 0].reshape(B, S)

    # self.linear2 on the (B, S) slab; output padded to 128 lanes, sliced here.
    out_pad = pl.pallas_call(
        linear2_kernel,
        out_shape=jax.ShapeDtypeStruct((B, LANES), jnp.float32),
    )(y2, prep['l2_w1t'], prep['l2_b1'], prep['l2_w2p'], prep['l2_b2p'])
    return out_pad[:, :ow]


tf_forward = jax.jit(tf_model_forward, static_argnames=("ow",))


# ----------------------------------------------------------------------------
# Pure-JAX reference (mirrors the kernel's bf16 MXU-operand casts)
# ----------------------------------------------------------------------------
def ref_forward(params, src, mask, *, nhead, use_bf16=True):
    B, S, _ = src.shape
    D = params['enc_w2'].shape[0]
    H, hd = nhead, D // nhead
    cdt = jnp.bfloat16 if use_bf16 else jnp.float32

    def bdot(a, b):
        return jnp.dot(a.astype(cdt), b.astype(cdt), preferred_element_type=jnp.float32)

    ln = lambda x, w, b: ((x - x.mean(-1, keepdims=True))
                          / jnp.sqrt(x.var(-1, keepdims=True) + LN_EPS) * w + b)

    h0 = jnp.maximum(src.reshape(B * S, 1) * params['enc_w1'][:, 0][None, :]
                     + params['enc_b1'], 0.0)
    x = bdot(h0, params['enc_w2'].T) + params['enc_b2']
    x = (x.reshape(B, S, D) + params['pe'][:B]).reshape(B * S, D)

    for p in params['layers']:
        q = bdot(x, p['in_w'][:D].T) + p['in_b'][:D]
        k = bdot(x, p['in_w'][D:2 * D].T) + p['in_b'][D:2 * D]
        v = bdot(x, p['in_w'][2 * D:].T) + p['in_b'][2 * D:]
        q4, k4, v4 = (t.reshape(B, S, H, hd).transpose(0, 2, 1, 3) for t in (q, k, v))
        s = jnp.einsum('bhqd,bhkd->bhqk', (q4 / math.sqrt(hd)).astype(cdt),
                       k4.astype(cdt), preferred_element_type=jnp.float32) + mask
        a = jax.nn.softmax(s, axis=-1)
        ctx = jnp.einsum('bhqk,bhkd->bhqd', a.astype(cdt), v4.astype(cdt),
                         preferred_element_type=jnp.float32)
        ctx = ctx.transpose(0, 2, 1, 3).reshape(B * S, D)
        y = ln(x + bdot(ctx, p['out_w'].T) + p['out_b'], p['ln1_w'], p['ln1_b'])
        ff = bdot(jnp.maximum(bdot(y, p['ff1_w'].T) + p['ff1_b'], 0.0),
                  p['ff2_w'].T) + p['ff2_b']
        x = ln(y + ff, p['ln2_w'], p['ln2_b'])

    lh = jnp.maximum(bdot(x, params['lin_w1'].T) + params['lin_b1'], 0.0)
    y2 = (bdot(lh, params['lin_w2'].T) + params['lin_b2']).reshape(B, S)
    out = jnp.maximum(y2 @ params['l2_w1'].T + params['l2_b1'], 0.0) \
        @ params['l2_w2'].T + params['l2_b2']
    return out


# ----------------------------------------------------------------------------
if __name__ == "__main__":
    iw, ow, d_model, nhead, nlayers = 8, 4, 32, 4, 2
    batch = 2

    key = jax.random.PRNGKey(0)
    kparam, kx = jax.random.split(key)
    params = init_params(kparam, iw, ow, d_model, nhead, nlayers)
    prep = prepare_params(params, nhead=nhead)

    src = jax.random.normal(kx, (batch, iw, 1), jnp.float32)
    srcmask = generate_square_subsequent_mask(iw)

    out = tf_forward(prep, src, srcmask, ow=ow)
    out = jax.block_until_ready(out)

    ref = ref_forward(params, src, srcmask, nhead=nhead)
    assert out.shape == (batch, ow), out.shape
    assert jnp.allclose(out, ref, rtol=2e-2, atol=2e-2), (out, ref)

    print("KERNEL_OK")
</pallas_src>

<mosaic_0001>
module attributes {stable_mosaic.version = 11 : i64} {
  func.func @linear2_kernel(%arg0: memref<2x8xf32, #tpu.memory_space<vmem>>, %arg1: memref<8x6xf32, #tpu.memory_space<vmem>>, %arg2: memref<1x6xf32, #tpu.memory_space<vmem>>, %arg3: memref<6x128xf32, #tpu.memory_space<vmem>>, %arg4: memref<1x128xf32, #tpu.memory_space<vmem>>, %arg5: memref<2x128xf32, #tpu.memory_space<vmem>>) attributes {dimension_semantics = [], scalar_prefetch = 0 : i64, scratch_operands = 0 : i64, tpu.core_type = #tpu.core_type<tc>} {
    %c0 = arith.constant 0 : index
    %c0_0 = arith.constant 0 : index
    %0 = vector.load %arg0[%c0, %c0_0] : memref<2x8xf32, #tpu.memory_space<vmem>>, vector<2x8xf32>
    %c0_1 = arith.constant 0 : index
    %c0_2 = arith.constant 0 : index
    %1 = vector.load %arg1[%c0_1, %c0_2] : memref<8x6xf32, #tpu.memory_space<vmem>>, vector<8x6xf32>
    %cst = arith.constant dense<0.000000e+00> : vector<2x6xf32>
    %2 = tpu.matmul %0, %1, %cst {dimension_numbers = #tpu.dot_dimension_numbers<[1], [0], [0], [1], [0, 0, 1, 1], [], []>} : vector<2x8xf32>, vector<8x6xf32>, vector<2x6xf32> -> vector<2x6xf32>
    %c0_3 = arith.constant 0 : index
    %c0_4 = arith.constant 0 : index
    %3 = vector.load %arg2[%c0_3, %c0_4] : memref<1x6xf32, #tpu.memory_space<vmem>>, vector<1x6xf32>
    %4 = vector.broadcast %3 : vector<1x6xf32> to vector<2x6xf32>
    %5 = arith.addf %2, %4 : vector<2x6xf32>
    %cst_5 = arith.constant 0.000000e+00 : f32
    %6 = vector.broadcast %cst_5 : f32 to vector<2x6xf32>
    %7 = arith.maximumf %5, %6 : vector<2x6xf32>
    %c0_6 = arith.constant 0 : index
    %c0_7 = arith.constant 0 : index
    %8 = vector.load %arg3[%c0_6, %c0_7] : memref<6x128xf32, #tpu.memory_space<vmem>>, vector<6x128xf32>
    %cst_8 = arith.constant dense<0.000000e+00> : vector<2x128xf32>
    %9 = tpu.matmul %7, %8, %cst_8 {dimension_numbers = #tpu.dot_dimension_numbers<[1], [0], [0], [1], [0, 0, 1, 1], [], []>} : vector<2x6xf32>, vector<6x128xf32>, vector<2x128xf32> -> vector<2x128xf32>
    %c0_9 = arith.constant 0 : index
    %c0_10 = arith.constant 0 : index
    %10 = vector.load %arg4[%c0_9, %c0_10] : memref<1x128xf32, #tpu.memory_space<vmem>>, vector<1x128xf32>
    %11 = vector.broadcast %10 : vector<1x128xf32> to vector<2x128xf32>
    %12 = arith.addf %9, %11 : vector<2x128xf32>
    %c0_11 = arith.constant 0 : index
    %c0_12 = arith.constant 0 : index
    %13 = vector.load %arg5[%c0_11, %c0_12] : memref<2x128xf32, #tpu.memory_space<vmem>>, vector<2x128xf32>
    tpu.vector_store %arg5[%c0_11, %c0_12], %12 {strides = array<i32>} : memref<2x128xf32, #tpu.memory_space<vmem>>, vector<2x128xf32>,
    return
  }
}

module attributes {stable_mosaic.version = 11 : i64} {
  func.func @fused_tf_kernel(%arg0: memref<16x1xf32, #tpu.memory_space<vmem>>, %arg1: memref<16x32xf32, #tpu.memory_space<vmem>>, %arg2: memref<8x8xf32, #tpu.memory_space<vmem>>, %arg3: memref<1x16xf32, #tpu.memory_space<vmem>>, %arg4: memref<1x16xf32, #tpu.memory_space<vmem>>, %arg5: memref<16x32xbf16, #tpu.memory_space<vmem>>, %arg6: memref<1x32xf32, #tpu.memory_space<vmem>>, %arg7: memref<8x32x8xbf16, #tpu.memory_space<vmem>>, %arg8: memref<8x32x8xbf16, #tpu.memory_space<vmem>>, %arg9: memref<8x32x8xbf16, #tpu.memory_space<vmem>>, %arg10: memref<8x1x8xf32, #tpu.memory_space<vmem>>, %arg11: memref<8x1x8xf32, #tpu.memory_space<vmem>>, %arg12: memref<8x1x8xf32, #tpu.memory_space<vmem>>, %arg13: memref<8x8x32xbf16, #tpu.memory_space<vmem>>, %arg14: memref<2x1x32xf32, #tpu.memory_space<vmem>>, %arg15: memref<2x1x32xf32, #tpu.memory_space<vmem>>, %arg16: memref<2x1x32xf32, #tpu.memory_space<vmem>>, %arg17: memref<2x32x2048xbf16, #tpu.memory_space<vmem>>, %arg18: memref<2x1x2048xf32, #tpu.memory_space<vmem>>, %arg19: memref<2x2048x32xbf16, #tpu.memory_space<vmem>>, %arg20: memref<2x1x32xf32, #tpu.memory_space<vmem>>, %arg21: memref<2x1x32xf32, #tpu.memory_space<vmem>>, %arg22: memref<2x1x32xf32, #tpu.memory_space<vmem>>, %arg23: memref<32x16xbf16, #tpu.memory_space<vmem>>, %arg24: memref<1x16xf32, #tpu.memory_space<vmem>>, %arg25: memref<16x128xbf16, #tpu.memory_space<vmem>>, %arg26: memref<1x128xf32, #tpu.memory_space<vmem>>, %arg27: memref<16x128xf32, #tpu.memory_space<vmem>>) attributes {dimension_semantics = [], scalar_prefetch = 0 : i64, scratch_operands = 0 : i64, tpu.core_type = #tpu.core_type<tc>} {
    %c0 = arith.constant 0 : index
    %c0_0 = arith.constant 0 : index
    %0 = vector.load %arg0[%c0, %c0_0] : memref<16x1xf32, #tpu.memory_space<vmem>>, vector<16x1xf32>
    %c0_1 = arith.constant 0 : index
    %c0_2 = arith.constant 0 : index
    %1 = vector.load %arg3[%c0_1, %c0_2] : memref<1x16xf32, #tpu.memory_space<vmem>>, vector<1x16xf32>
    %2 = vector.broadcast %0 : vector<16x1xf32> to vector<16x16xf32>
    %3 = vector.broadcast %1 : vector<1x16xf32> to vector<16x16xf32>
    %4 = arith.mulf %2, %3 : vector<16x16xf32>
    %c0_3 = arith.constant 0 : index
    %c0_4 = arith.constant 0 : index
    %5 = vector.load %arg4[%c0_3, %c0_4] : memref<1x16xf32, #tpu.memory_space<vmem>>, vector<1x16xf32>
    %6 = vector.broadcast %5 : vector<1x16xf32> to vector<16x16xf32>
    %7 = arith.addf %4, %6 : vector<16x16xf32>
    %cst = arith.constant 0.000000e+00 : f32
    %8 = vector.broadcast %cst : f32 to vector<16x16xf32>
    %9 = arith.maximumf %7, %8 : vector<16x16xf32>
    %10 = arith.truncf %9 : vector<16x16xf32> to vector<16x16xbf16>
    %c0_5 = arith.constant 0 : index
    %c0_6 = arith.constant 0 : index
    %11 = vector.load %arg5[%c0_5, %c0_6] : memref<16x32xbf16, #tpu.memory_space<vmem>>, vector<16x32xbf16>
    %cst_7 = arith.constant dense<0.000000e+00> : vector<16x32xf32>
    %12 = tpu.matmul %10, %11, %cst_7 {dimension_numbers = #tpu.dot_dimension_numbers<[1], [0], [0], [1], [0, 0, 1, 1], [], []>} : vector<16x16xbf16>, vector<16x32xbf16>, vector<16x32xf32> -> vector<16x32xf32>
    %c0_8 = arith.constant 0 : index
    %c0_9 = arith.constant 0 : index
    %13 = vector.load %arg6[%c0_8, %c0_9] : memref<1x32xf32, #tpu.memory_space<vmem>>, vector<1x32xf32>
    %14 = vector.broadcast %13 : vector<1x32xf32> to vector<16x32xf32>
    %15 = arith.addf %12, %14 : vector<16x32xf32>
    %c0_10 = arith.constant 0 : index
    %c0_11 = arith.constant 0 : index
    %16 = vector.load %arg1[%c0_10, %c0_11] : memref<16x32xf32, #tpu.memory_space<vmem>>, vector<16x32xf32>
    %17 = arith.addf %15, %16 : vector<16x32xf32>
    %c0_12 = arith.constant 0 : index
    %c0_13 = arith.constant 0 : index
    %18 = vector.load %arg2[%c0_12, %c0_13] : memref<8x8xf32, #tpu.memory_space<vmem>>, vector<8x8xf32>
    %19 = arith.truncf %17 : vector<16x32xf32> to vector<16x32xbf16>
    %cst_14 = arith.constant 0.000000e+00 : f32
    %20 = vector.broadcast %cst_14 : f32 to vector<16x32xf32>
    %c0_15 = arith.constant 0 : index
    %c0_16 = arith.constant 0 : index
    %c0_17 = arith.constant 0 : index
    %21 = vector.load %arg7[%c0_15, %c0_16, %c0_17] : memref<8x32x8xbf16, #tpu.memory_space<vmem>>, vector<1x32x8xbf16>
    %22 = vector.shape_cast %21 : vector<1x32x8xbf16> to vector<32x8xbf16>
    %cst_18 = arith.constant dense<0.000000e+00> : vector<16x8xf32>
    %23 = tpu.matmul %19, %22, %cst_18 {dimension_numbers = #tpu.dot_dimension_numbers<[1], [0], [0], [1], [0, 0, 1, 1], [], []>} : vector<16x32xbf16>, vector<32x8xbf16>, vector<16x8xf32> -> vector<16x8xf32>
    %c0_19 = arith.constant 0 : index
    %c0_20 = arith.constant 0 : index
    %c0_21 = arith.constant 0 : index
    %24 = vector.load %arg10[%c0_19, %c0_20, %c0_21] : memref<8x1x8xf32, #tpu.memory_space<vmem>>, vector<1x1x8xf32>
    %25 = vector.shape_cast %24 : vector<1x1x8xf32> to vector<1x8xf32>
    %26 = vector.broadcast %25 : vector<1x8xf32> to vector<16x8xf32>
    %27 = arith.addf %23, %26 : vector<16x8xf32>
    %cst_22 = arith.constant 0.353553385 : f32
    %28 = vector.broadcast %cst_22 : f32 to vector<16x8xf32>
    %29 = arith.mulf %27, %28 : vector<16x8xf32>
    %c0_23 = arith.constant 0 : index
    %c0_24 = arith.constant 0 : index
    %c0_25 = arith.constant 0 : index
    %30 = vector.load %arg8[%c0_23, %c0_24, %c0_25] : memref<8x32x8xbf16, #tpu.memory_space<vmem>>, vector<1x32x8xbf16>
    %31 = vector.shape_cast %30 : vector<1x32x8xbf16> to vector<32x8xbf16>
    %cst_26 = arith.constant dense<0.000000e+00> : vector<16x8xf32>
    %32 = tpu.matmul %19, %31, %cst_26 {dimension_numbers = #tpu.dot_dimension_numbers<[1], [0], [0], [1], [0, 0, 1, 1], [], []>} : vector<16x32xbf16>, vector<32x8xbf16>, vector<16x8xf32> -> vector<16x8xf32>
    %c0_27 = arith.constant 0 : index
    %c0_28 = arith.constant 0 : index
    %c0_29 = arith.constant 0 : index
    %33 = vector.load %arg11[%c0_27, %c0_28, %c0_29] : memref<8x1x8xf32, #tpu.memory_space<vmem>>, vector<1x1x8xf32>
    %34 = vector.shape_cast %33 : vector<1x1x8xf32> to vector<1x8xf32>
    %35 = vector.broadcast %34 : vector<1x8xf32> to vector<16x8xf32>
    %36 = arith.addf %32, %35 : vector<16x8xf32>
    %c0_30 = arith.constant 0 : index
    %c0_31 = arith.constant 0 : index
    %c0_32 = arith.constant 0 : index
    %37 = vector.load %arg9[%c0_30, %c0_31, %c0_32] : memref<8x32x8xbf16, #tpu.memory_space<vmem>>, vector<1x32x8xbf16>
    %38 = vector.shape_cast %37 : vector<1x32x8xbf16> to vector<32x8xbf16>
    %cst_33 = arith.constant dense<0.000000e+00> : vector<16x8xf32>
    %39 = tpu.matmul %19, %38, %cst_33 {dimension_numbers = #tpu.dot_dimension_numbers<[1], [0], [0], [1], [0, 0, 1, 1], [], []>} : vector<16x32xbf16>, vector<32x8xbf16>, vector<16x8xf32> -> vector<16x8xf32>
    %c0_34 = arith.constant 0 : index
    %c0_35 = arith.constant 0 : index
    %c0_36 = arith.constant 0 : index
    %40 = vector.load %arg12[%c0_34, %c0_35, %c0_36] : memref<8x1x8xf32, #tpu.memory_space<vmem>>, vector<1x1x8xf32>
    %41 = vector.shape_cast %40 : vector<1x1x8xf32> to vector<1x8xf32>
    %42 = vector.broadcast %41 : vector<1x8xf32> to vector<16x8xf32>
    %43 = arith.addf %39, %42 : vector<16x8xf32>
    %44 = vector.shape_cast %29 : vector<16x8xf32> to vector<2x8x8xf32>
    %45 = arith.truncf %44 : vector<2x8x8xf32> to vector<2x8x8xbf16>
    %46 = vector.shape_cast %36 : vector<16x8xf32> to vector<2x8x8xf32>
    %47 = arith.truncf %46 : vector<2x8x8xf32> to vector<2x8x8xbf16>
    %48 = vector.shape_cast %43 : vector<16x8xf32> to vector<2x8x8xf32>
    %49 = arith.truncf %48 : vector<2x8x8xf32> to vector<2x8x8xbf16>
    "tpu.trace_start"() <{level = 10 : i32, message = "bqd,bkd->bqk"}> : () -> ()
    %cst_37 = arith.constant dense<0.000000e+00> : vector<2x8x8xf32>
    %50 = tpu.matmul %45, %47, %cst_37 {dimension_numbers = #tpu.dot_dimension_numbers<[2], [2], [1], [1], [0, 0, 0, 1, 1, 1], [0], [0]>} : vector<2x8x8xbf16>, vector<2x8x8xbf16>, vector<2x8x8xf32> -> vector<2x8x8xf32>
    "tpu.trace_stop"() : () -> ()
    %51 = vector.shape_cast %18 : vector<8x8xf32> to vector<1x8x8xf32>
    %52 = vector.broadcast %51 : vector<1x8x8xf32> to vector<2x8x8xf32>
    %53 = arith.addf %50, %52 : vector<2x8x8xf32>
    %cst_38 = arith.constant dense<0xFF800000> : vector<2x8xf32>
    %54 = vector.multi_reduction <maximumf>, %53, %cst_38 [2] : vector<2x8x8xf32> to vector<2x8xf32>
    %55 = vector.shape_cast %54 : vector<2x8xf32> to vector<2x8x1xf32>
    %56 = vector.broadcast %55 : vector<2x8x1xf32> to vector<2x8x8xf32>
    %57 = arith.subf %53, %56 : vector<2x8x8xf32>
    %58 = math.exp %57 : vector<2x8x8xf32>
    %cst_39 = arith.constant dense<0.000000e+00> : vector<2x8xf32>
    %59 = vector.multi_reduction <add>, %58, %cst_39 [2] : vector<2x8x8xf32> to vector<2x8xf32>
    %60 = vector.shape_cast %59 : vector<2x8xf32> to vector<2x8x1xf32>
    %61 = tpu.reciprocal %60 {approx = true} : vector<2x8x1xf32> -> vector<2x8x1xf32>
    %62 = vector.broadcast %61 : vector<2x8x1xf32> to vector<2x8x8xf32>
    %63 = arith.mulf %58, %62 : vector<2x8x8xf32>
    %64 = arith.truncf %63 : vector<2x8x8xf32> to vector<2x8x8xbf16>
    "tpu.trace_start"() <{level = 10 : i32, message = "bqk,bkd->bqd"}> : () -> ()
    %cst_40 = arith.constant dense<0.000000e+00> : vector<2x8x8xf32>
    %65 = tpu.matmul %64, %49, %cst_40 {dimension_numbers = #tpu.dot_dimension_numbers<[2], [1], [1], [2], [0, 0, 0, 1, 1, 2], [0], [0]>} : vector<2x8x8xbf16>, vector<2x8x8xbf16>, vector<2x8x8xf32> -> vector<2x8x8xf32>
    "tpu.trace_stop"() : () -> ()
    %66 = vector.shape_cast %65 : vector<2x8x8xf32> to vector<16x8xf32>
    %67 = arith.truncf %66 : vector<16x8xf32> to vector<16x8xbf16>
    %c0_41 = arith.constant 0 : index
    %c0_42 = arith.constant 0 : index
    %c0_43 = arith.constant 0 : index
    %68 = vector.load %arg13[%c0_41, %c0_42, %c0_43] : memref<8x8x32xbf16, #tpu.memory_space<vmem>>, vector<1x8x32xbf16>
    %69 = vector.shape_cast %68 : vector<1x8x32xbf16> to vector<8x32xbf16>
    %cst_44 = arith.constant dense<0.000000e+00> : vector<16x32xf32>
    %70 = tpu.matmul %67, %69, %cst_44 {dimension_numbers = #tpu.dot_dimension_numbers<[1], [0], [0], [1], [0, 0, 1, 1], [], []>} : vector<16x8xbf16>, vector<8x32xbf16>, vector<16x32xf32> -> vector<16x32xf32>
    %71 = arith.addf %20, %70 : vector<16x32xf32>
    %c1 = arith.constant 1 : index
    %c0_45 = arith.constant 0 : index
    %c0_46 = arith.constant 0 : index
    %72 = vector.load %arg7[%c1, %c0_45, %c0_46] : memref<8x32x8xbf16, #tpu.memory_space<vmem>>, vector<1x32x8xbf16>
    %73 = vector.shape_cast %72 : vector<1x32x8xbf16> to vector<32x8xbf16>
    %cst_47 = arith.constant dense<0.000000e+00> : vector<16x8xf32>
    %74 = tpu.matmul %19, %73, %cst_47 {dimension_numbers = #tpu.dot_dimension_numbers<[1], [0], [0], [1], [0, 0, 1, 1], [], []>} : vector<16x32xbf16>, vector<32x8xbf16>, vector<16x8xf32> -> vector<16x8xf32>
    %c1_48 = arith.constant 1 : index
    %c0_49 = arith.constant 0 : index
    %c0_50 = arith.constant 0 : index
    %75 = vector.load %arg10[%c1_48, %c0_49, %c0_50] : memref<8x1x8xf32, #tpu.memory_space<vmem>>, vector<1x1x8xf32>
    %76 = vector.shape_cast %75 : vector<1x1x8xf32> to vector<1x8xf32>
    %77 = vector.broadcast %76 : vector<1x8xf32> to vector<16x8xf32>
    %78 = arith.addf %74, %77 : vector<16x8xf32>
    %cst_51 = arith.constant 0.353553385 : f32
    %79 = vector.broadcast %cst_51 : f32 to vector<16x8xf32>
    %80 = arith.mulf %78, %79 : vector<16x8xf32>
    %c1_52 = arith.constant 1 : index
    %c0_53 = arith.constant 0 : index
    %c0_54 = arith.constant 0 : index
    %81 = vector.load %arg8[%c1_52, %c0_53, %c0_54] : memref<8x32x8xbf16, #tpu.memory_space<vmem>>, vector<1x32x8xbf16>
    %82 = vector.shape_cast %81 : vector<1x32x8xbf16> to vector<32x8xbf16>
    %cst_55 = arith.constant dense<0.000000e+00> : vector<16x8xf32>
    %83 = tpu.matmul %19, %82, %cst_55 {dimension_numbers = #tpu.dot_dimension_numbers<[1], [0], [0], [1], [0, 0, 1, 1], [], []>} : vector<16x32xbf16>, vector<32x8xbf16>, vector<16x8xf32> -> vector<16x8xf32>
    %c1_56 = arith.constant 1 : index
    %c0_57 = arith.constant 0 : index
    %c0_58 = arith.constant 0 : index
    %84 = vector.load %arg11[%c1_56, %c0_57, %c0_58] : memref<8x1x8xf32, #tpu.memory_space<vmem>>, vector<1x1x8xf32>
    %85 = vector.shape_cast %84 : vector<1x1x8xf32> to vector<1x8xf32>
    %86 = vector.broadcast %85 : vector<1x8xf32> to vector<16x8xf32>
    %87 = arith.addf %83, %86 : vector<16x8xf32>
    %c1_59 = arith.constant 1 : index
    %c0_60 = arith.constant 0 : index
    %c0_61 = arith.constant 0 : index
    %88 = vector.load %arg9[%c1_59, %c0_60, %c0_61] : memref<8x32x8xbf16, #tpu.memory_space<vmem>>, vector<1x32x8xbf16>
    %89 = vector.shape_cast %88 : vector<1x32x8xbf16> to vector<32x8xbf16>
    %cst_62 = arith.constant dense<0.000000e+00> : vector<16x8xf32>
    %90 = tpu.matmul %19, %89, %cst_62 {dimension_numbers = #tpu.dot_dimension_numbers<[1], [0], [0], [1], [0, 0, 1, 1], [], []>} : vector<16x32xbf16>, vector<32x8xbf16>, vector<16x8xf32> -> vector<16x8xf32>
    %c1_63 = arith.constant 1 : index
    %c0_64 = arith.constant 0 : index
    %c0_65 = arith.constant 0 : index
    %91 = vector.load %arg12[%c1_63, %c0_64, %c0_65] : memref<8x1x8xf32, #tpu.memory_space<vmem>>, vector<1x1x8xf32>
    %92 = vector.shape_cast %91 : vector<1x1x8xf32> to vector<1x8xf32>
    %93 = vector.broadcast %92 : vector<1x8xf32> to vector<16x8xf32>
    %94 = arith.addf %90, %93 : vector<16x8xf32>
    %95 = vector.shape_cast %80 : vector<16x8xf32> to vector<2x8x8xf32>
    %96 = arith.truncf %95 : vector<2x8x8xf32> to vector<2x8x8xbf16>
    %97 = vector.shape_cast %87 : vector<16x8xf32> to vector<2x8x8xf32>
    %98 = arith.truncf %97 : vector<2x8x8xf32> to vector<2x8x8xbf16>
    %99 = vector.shape_cast %94 : vector<16x8xf32> to vector<2x8x8xf32>
    %100 = arith.truncf %99 : vector<2x8x8xf32> to vector<2x8x8xbf16>
    "tpu.trace_start"() <{level = 10 : i32, message = "bqd,bkd->bqk"}> : () -> ()
    %cst_66 = arith.constant dense<0.000000e+00> : vector<2x8x8xf32>
    %101 = tpu.matmul %96, %98, %cst_66 {dimension_numbers = #tpu.dot_dimension_numbers<[2], [2], [1], [1], [0, 0, 0, 1, 1, 1], [0], [0]>} : vector<2x8x8xbf16>, vector<2x8x8xbf16>, vector<2x8x8xf32> -> vector<2x8x8xf32>
    "tpu.trace_stop"() : () -> ()
    %102 = vector.shape_cast %18 : vector<8x8xf32> to vector<1x8x8xf32>
    %103 = vector.broadcast %102 : vector<1x8x8xf32> to vector<2x8x8xf32>
    %104 = arith.addf %101, %103 : vector<2x8x8xf32>
    %cst_67 = arith.constant dense<0xFF800000> : vector<2x8xf32>
    %105 = vector.multi_reduction <maximumf>, %104, %cst_67 [2] : vector<2x8x8xf32> to vector<2x8xf32>
    %106 = vector.shape_cast %105 : vector<2x8xf32> to vector<2x8x1xf32>
    %107 = vector.broadcast %106 : vector<2x8x1xf32> to vector<2x8x8xf32>
    %108 = arith.subf %104, %107 : vector<2x8x8xf32>
    %109 = math.exp %108 : vector<2x8x8xf32>
    %cst_68 = arith.constant dense<0.000000e+00> : vector<2x8xf32>
    %110 = vector.multi_reduction <add>, %109, %cst_68 [2] : vector<2x8x8xf32> to vector<2x8xf32>
    %111 = vector.shape_cast %110 : vector<2x8xf32> to vector<2x8x1xf32>
    %112 = tpu.reciprocal %111 {approx = true} : vector<2x8x1xf32> -> vector<2x8x1xf32>
    %113 = vector.broadcast %112 : vector<2x8x1xf32> to vector<2x8x8xf32>
    %114 = arith.mulf %109, %113 : vector<2x8x8xf32>
    %115 = arith.truncf %114 : vector<2x8x8xf32> to vector<2x8x8xbf16>
    "tpu.trace_start"() <{level = 10 : i32, message = "bqk,bkd->bqd"}> : () -> ()
    %cst_69 = arith.constant dense<0.000000e+00> : vector<2x8x8xf32>
    %116 = tpu.matmul %115, %100, %cst_69 {dimension_numbers = #tpu.dot_dimension_numbers<[2], [1], [1], [2], [0, 0, 0, 1, 1, 2], [0], [0]>} : vector<2x8x8xbf16>, vector<2x8x8xbf16>, vector<2x8x8xf32> -> vector<2x8x8xf32>
    "tpu.trace_stop"() : () -> ()
    %117 = vector.shape_cast %116 : vector<2x8x8xf32> to vector<16x8xf32>
    %118 = arith.truncf %117 : vector<16x8xf32> to vector<16x8xbf16>
    %c1_70 = arith.constant 1 : index
    %c0_71 = arith.constant 0 : index
    %c0_72 = arith.constant 0 : index
    %119 = vector.load %arg13[%c1_70, %c0_71, %c0_72] : memref<8x8x32xbf16, #tpu.memory_space<vmem>>, vector<1x8x32xbf16>
    %120 = vector.shape_cast %119 : vector<1x8x32xbf16> to vector<8x32xbf16>
    %cst_73 = arith.constant dense<0.000000e+00> : vector<16x32xf32>
    %121 = tpu.matmul %118, %120, %cst_73 {dimension_numbers = #tpu.dot_dimension_numbers<[1], [0], [0], [1], [0, 0, 1, 1], [], []>} : vector<16x8xbf16>, vector<8x32xbf16>, vector<16x32xf32> -> vector<16x32xf32>
    %122 = arith.addf %71, %121 : vector<16x32xf32>
    %c2 = arith.constant 2 : index
    %c0_74 = arith.constant 0 : index
    %c0_75 = arith.constant 0 : index
    %123 = vector.load %arg7[%c2, %c0_74, %c0_75] : memref<8x32x8xbf16, #tpu.memory_space<vmem>>, vector<1x32x8xbf16>
    %124 = vector.shape_cast %123 : vector<1x32x8xbf16> to vector<32x8xbf16>
    %cst_76 = arith.constant dense<0.000000e+00> : vector<16x8xf32>
    %125 = tpu.matmul %19, %124, %cst_76 {dimension_numbers = #tpu.dot_dimension_numbers<[1], [0], [0], [1], [0, 0, 1, 1], [], []>} : vector<16x32xbf16>, vector<32x8xbf16>, vector<16x8xf32> -> vector<16x8xf32>
    %c2_77 = arith.constant 2 : index
    %c0_78 = arith.constant 0 : index
    %c0_79 = arith.constant 0 : index
    %126 = vector.load %arg10[%c2_77, %c0_78, %c0_79] : memref<8x1x8xf32, #tpu.memory_space<vmem>>, vector<1x1x8xf32>
    %127 = vector.shape_cast %126 : vector<1x1x8xf32> to vector<1x8xf32>
    %128 = vector.broadcast %127 : vector<1x8xf32> to vector<16x8xf32>
    %129 = arith.addf %125, %128 : vector<16x8xf32>
    %cst_80 = arith.constant 0.353553385 : f32
    %130 = vector.broadcast %cst_80 : f32 to vector<16x8xf32>
    %131 = arith.mulf %129, %130 : vector<16x8xf32>
    %c2_81 = arith.constant 2 : index
    %c0_82 = arith.constant 0 : index
    %c0_83 = arith.constant 0 : index
    %132 = vector.load %arg8[%c2_81, %c0_82, %c0_83] : memref<8x32x8xbf16, #tpu.memory_space<vmem>>, vector<1x32x8xbf16>
    %133 = vector.shape_cast %132 : vector<1x32x8xbf16> to vector<32x8xbf16>
    %cst_84 = arith.constant dense<0.000000e+00> : vector<16x8xf32>
    %134 = tpu.matmul %19, %133, %cst_84 {dimension_numbers = #tpu.dot_dimension_numbers<[1], [0], [0], [1], [0, 0, 1, 1], [], []>} : vector<16x32xbf16>, vector<32x8xbf16>, vector<16x8xf32> -> vector<16x8xf32>
    %c2_85 = arith.constant 2 : index
    %c0_86 = arith.constant 0 : index
    %c0_87 = arith.constant 0 : index
    %135 = vector.load %arg11[%c2_85, %c0_86, %c0_87] : memref<8x1x8xf32, #tpu.memory_space<vmem>>, vector<1x1x8xf32>
    %136 = vector.shape_cast %135 : vector<1x1x8xf32> to vector<1x8xf32>
    %137 = vector.broadcast %136 : vector<1x8xf32> to vector<16x8xf32>
    %138 = arith.addf %134, %137 : vector<16x8xf32>
    %c2_88 = arith.constant 2 : index
    %c0_89 = arith.constant 0 : index
    %c0_90 = arith.constant 0 : index
    %139 = vector.load %arg9[%c2_88, %c0_89, %c0_90] : memref<8x32x8xbf16, #tpu.memory_space<vmem>>, vector<1x32x8xbf16>
    %140 = vector.shape_cast %139 : vector<1x32x8xbf16> to vector<32x8xbf16>
    %cst_91 = arith.constant dense<0.000000e+00> : vector<16x8xf32>
    %141 = tpu.matmul %19, %140, %cst_91 {dimension_numbers = #tpu.dot_dimension_numbers<[1], [0], [0], [1], [0, 0, 1, 1], [], []>} : vector<16x32xbf16>, vector<32x8xbf16>, vector<16x8xf32> -> vector<16x8xf32>
    %c2_92 = arith.constant 2 : index
    %c0_93 = arith.constant 0 : index
    %c0_94 = arith.constant 0 : index
    %142 = vector.load %arg12[%c2_92, %c0_93, %c0_94] : memref<8x1x8xf32, #tpu.memory_space<vmem>>, vector<1x1x8xf32>
    %143 = vector.shape_cast %142 : vector<1x1x8xf32> to vector<1x8xf32>
    %144 = vector.broadcast %143 : vector<1x8xf32> to vector<16x8xf32>
    %145 = arith.addf %141, %144 : vector<16x8xf32>
    %146 = vector.shape_cast %131 : vector<16x8xf32> to vector<2x8x8xf32>
    %147 = arith.truncf %146 : vector<2x8x8xf32> to vector<2x8x8xbf16>
    %148 = vector.shape_cast %138 : vector<16x8xf32> to vector<2x8x8xf32>
    %149 = arith.truncf %148 : vector<2x8x8xf32> to vector<2x8x8xbf16>
    %150 = vector.shape_cast %145 : vector<16x8xf32> to vector<2x8x8xf32>
    %151 = arith.truncf %150 : vector<2x8x8xf32> to vector<2x8x8xbf16>
    "tpu.trace_start"() <{level = 10 : i32, message = "bqd,bkd->bqk"}> : () -> ()
    %cst_95 = arith.constant dense<0.000000e+00> : vector<2x8x8xf32>
    %152 = tpu.matmul %147, %149, %cst_95 {dimension_numbers = #tpu.dot_dimension_numbers<[2], [2], [1], [1], [0, 0, 0, 1, 1, 1], [0], [0]>} : vector<2x8x8xbf16>, vector<2x8x8xbf16>, vector<2x8x8xf32> -> vector<2x8x8xf32>
    "tpu.trace_stop"() : () -> ()
    %153 = vector.shape_cast %18 : vector<8x8xf32> to vector<1x8x8xf32>
    %154 = vector.broadcast %153 : vector<1x8x8xf32> to vector<2x8x8xf32>
    %155 = arith.addf %152, %154 : vector<2x8x8xf32>
    %cst_96 = arith.constant dense<0xFF800000> : vector<2x8xf32>
    %156 = vector.multi_reduction <maximumf>, %155, %cst_96 [2] : vector<2x8x8xf32> to vector<2x8xf32>
    %157 = vector.shape_cast %156 : vector<2x8xf32> to vector<2x8x1xf32>
    %158 = vector.broadcast %157 : vector<2x8x1xf32> to vector<2x8x8xf32>
    %159 = arith.subf %155, %158 : vector<2x8x8xf32>
    %160 = math.exp %159 : vector<2x8x8xf32>
    %cst_97 = arith.constant dense<0.000000e+00> : vector<2x8xf32>
    %161 = vector.multi_reduction <add>, %160, %cst_97 [2] : vector<2x8x8xf32> to vector<2x8xf32>
    %162 = vector.shape_cast %161 : vector<2x8xf32> to vector<2x8x1xf32>
    %163 = tpu.reciprocal %162 {approx = true} : vector<2x8x1xf32> -> vector<2x8x1xf32>
    %164 = vector.broadcast %163 : vector<2x8x1xf32> to vector<2x8x8xf32>
    %165 = arith.mulf %160, %164 : vector<2x8x8xf32>
    %166 = arith.truncf %165 : vector<2x8x8xf32> to vector<2x8x8xbf16>
    "tpu.trace_start"() <{level = 10 : i32, message = "bqk,bkd->bqd"}> : () -> ()
    %cst_98 = arith.constant dense<0.000000e+00> : vector<2x8x8xf32>
    %167 = tpu.matmul %166, %151, %cst_98 {dimension_numbers = #tpu.dot_dimension_numbers<[2], [1], [1], [2], [0, 0, 0, 1, 1, 2], [0], [0]>} : vector<2x8x8xbf16>, vector<2x8x8xbf16>, vector<2x8x8xf32> -> vector<2x8x8xf32>
    "tpu.trace_stop"() : () -> ()
    %168 = vector.shape_cast %167 : vector<2x8x8xf32> to vector<16x8xf32>
    %169 = arith.truncf %168 : vector<16x8xf32> to vector<16x8xbf16>
    %c2_99 = arith.constant 2 : index
    %c0_100 = arith.constant 0 : index
    %c0_101 = arith.constant 0 : index
    %170 = vector.load %arg13[%c2_99, %c0_100, %c0_101] : memref<8x8x32xbf16, #tpu.memory_space<vmem>>, vector<1x8x32xbf16>
    %171 = vector.shape_cast %170 : vector<1x8x32xbf16> to vector<8x32xbf16>
    %cst_102 = arith.constant dense<0.000000e+00> : vector<16x32xf32>
    %172 = tpu.matmul %169, %171, %cst_102 {dimension_numbers = #tpu.dot_dimension_numbers<[1], [0], [0], [1], [0, 0, 1, 1], [], []>} : vector<16x8xbf16>, vector<8x32xbf16>, vector<16x32xf32> -> vector<16x32xf32>
    %173 = arith.addf %122, %172 : vector<16x32xf32>
    %c3 = arith.constant 3 : index
    %c0_103 = arith.constant 0 : index
    %c0_104 = arith.constant 0 : index
    %174 = vector.load %arg7[%c3, %c0_103, %c0_104] : memref<8x32x8xbf16, #tpu.memory_space<vmem>>, vector<1x32x8xbf16>
    %175 = vector.shape_cast %174 : vector<1x32x8xbf16> to vector<32x8xbf16>
    %cst_105 = arith.constant dense<0.000000e+00> : vector<16x8xf32>
    %176 = tpu.matmul %19, %175, %cst_105 {dimension_numbers = #tpu.dot_dimension_numbers<[1], [0], [0], [1], [0, 0, 1, 1], [], []>} : vector<16x32xbf16>, vector<32x8xbf16>, vector<16x8xf32> -> vector<16x8xf32>
    %c3_106 = arith.constant 3 : index
    %c0_107 = arith.constant 0 : index
    %c0_108 = arith.constant 0 : index
    %177 = vector.load %arg10[%c3_106, %c0_107, %c0_108] : memref<8x1x8xf32, #tpu.memory_space<vmem>>, vector<1x1x8xf32>
    %178 = vector.shape_cast %177 : vector<1x1x8xf32> to vector<1x8xf32>
    %179 = vector.broadcast %178 : vector<1x8xf32> to vector<16x8xf32>
    %180 = arith.addf %176, %179 : vector<16x8xf32>
    %cst_109 = arith.constant 0.353553385 : f32
    %181 = vector.broadcast %cst_109 : f32 to vector<16x8xf32>
    %182 = arith.mulf %180, %181 : vector<16x8xf32>
    %c3_110 = arith.constant 3 : index
    %c0_111 = arith.constant 0 : index
    %c0_112 = arith.constant 0 : index
    %183 = vector.load %arg8[%c3_110, %c0_111, %c0_112] : memref<8x32x8xbf16, #tpu.memory_space<vmem>>, vector<1x32x8xbf16>
    %184 = vector.shape_cast %183 : vector<1x32x8xbf16> to vector<32x8xbf16>
    %cst_113 = arith.constant dense<0.000000e+00> : vector<16x8xf32>
    %185 = tpu.matmul %19, %184, %cst_113 {dimension_numbers = #tpu.dot_dimension_numbers<[1], [0], [0], [1], [0, 0, 1, 1], [], []>} : vector<16x32xbf16>, vector<32x8xbf16>, vector<16x8xf32> -> vector<16x8xf32>
    %c3_114 = arith.constant 3 : index
    %c0_115 = arith.constant 0 : index
    %c0_116 = arith.constant 0 : index
    %186 = vector.load %arg11[%c3_114, %c0_115, %c0_116] : memref<8x1x8xf32, #tpu.memory_space<vmem>>, vector<1x1x8xf32>
    %187 = vector.shape_cast %186 : vector<1x1x8xf32> to vector<1x8xf32>
    %188 = vector.broadcast %187 : vector<1x8xf32> to vector<16x8xf32>
    %189 = arith.addf %185, %188 : vector<16x8xf32>
    %c3_117 = arith.constant 3 : index
    %c0_118 = arith.constant 0 : index
    %c0_119 = arith.constant 0 : index
    %190 = vector.load %arg9[%c3_117, %c0_118, %c0_119] : memref<8x32x8xbf16, #tpu.memory_space<vmem>>, vector<1x32x8xbf16>
    %191 = vector.shape_cast %190 : vector<1x32x8xbf16> to vector<32x8xbf16>
    %cst_120 = arith.constant dense<0.000000e+00> : vector<16x8xf32>
    %192 = tpu.matmul %19, %191, %cst_120 {dimension_numbers = #tpu.dot_dimension_numbers<[1], [0], [0], [1], [0, 0, 1, 1], [], []>} : vector<16x32xbf16>, vector<32x8xbf16>, vector<16x8xf32> -> vector<16x8xf32>
    %c3_121 = arith.constant 3 : index
    %c0_122 = arith.constant 0 : index
    %c0_123 = arith.constant 0 : index
    %193 = vector.load %arg12[%c3_121, %c0_122, %c0_123] : memref<8x1x8xf32, #tpu.memory_space<vmem>>, vector<1x1x8xf32>
    %194 = vector.shape_cast %193 : vector<1x1x8xf32> to vector<1x8xf32>
    %195 = vector.broadcast %194 : vector<1x8xf32> to vector<16x8xf32>
    %196 = arith.addf %192, %195 : vector<16x8xf32>
    %197 = vector.shape_cast %182 : vector<16x8xf32> to vector<2x8x8xf32>
    %198 = arith.truncf %197 : vector<2x8x8xf32> to vector<2x8x8xbf16>
    %199 = vector.shape_cast %189 : vector<16x8xf32> to vector<2x8x8xf32>
    %200 = arith.truncf %199 : vector<2x8x8xf32> to vector<2x8x8xbf16>
    %201 = vector.shape_cast %196 : vector<16x8xf32> to vector<2x8x8xf32>
    %202 = arith.truncf %201 : vector<2x8x8xf32> to vector<2x8x8xbf16>
    "tpu.trace_start"() <{level = 10 : i32, message = "bqd,bkd->bqk"}> : () -> ()
    %cst_124 = arith.constant dense<0.000000e+00> : vector<2x8x8xf32>
    %203 = tpu.matmul %198, %200, %cst_124 {dimension_numbers = #tpu.dot_dimension_numbers<[2], [2], [1], [1], [0, 0, 0, 1, 1, 1], [0], [0]>} : vector<2x8x8xbf16>, vector<2x8x8xbf16>, vector<2x8x8xf32> -> vector<2x8x8xf32>
    "tpu.trace_stop"() : () -> ()
    %204 = vector.shape_cast %18 : vector<8x8xf32> to vector<1x8x8xf32>
    %205 = vector.broadcast %204 : vector<1x8x8xf32> to vector<2x8x8xf32>
    %206 = arith.addf %203, %205 : vector<2x8x8xf32>
    %cst_125 = arith.constant dense<0xFF800000> : vector<2x8xf32>
    %207 = vector.multi_reduction <maximumf>, %206, %cst_125 [2] : vector<2x8x8xf32> to vector<2x8xf32>
    %208 = vector.shape_cast %207 : vector<2x8xf32> to vector<2x8x1xf32>
    %209 = vector.broadcast %208 : vector<2x8x1xf32> to vector<2x8x8xf32>
    %210 = arith.subf %206, %209 : vector<2x8x8xf32>
    %211 = math.exp %210 : vector<2x8x8xf32>
    %cst_126 = arith.constant dense<0.000000e+00> : vector<2x8xf32>
    %212 = vector.multi_reduction <add>, %211, %cst_126 [2] : vector<2x8x8xf32> to vector<2x8xf32>
    %213 = vector.shape_cast %212 : vector<2x8xf32> to vector<2x8x1xf32>
    %214 = tpu.reciprocal %213 {approx = true} : vector<2x8x1xf32> -> vector<2x8x1xf32>
    %215 = vector.broadcast %214 : vector<2x8x1xf32> to vector<2x8x8xf32>
    %216 = arith.mulf %211, %215 : vector<2x8x8xf32>
    %217 = arith.truncf %216 : vector<2x8x8xf32> to vector<2x8x8xbf16>
    "tpu.trace_start"() <{level = 10 : i32, message = "bqk,bkd->bqd"}> : () -> ()
    %cst_127 = arith.constant dense<0.000000e+00> : vector<2x8x8xf32>
    %218 = tpu.matmul %217, %202, %cst_127 {dimension_numbers = #tpu.dot_dimension_numbers<[2], [1], [1], [2], [0, 0, 0, 1, 1, 2], [0], [0]>} : vector<2x8x8xbf16>, vector<2x8x8xbf16>, vector<2x8x8xf32> -> vector<2x8x8xf32>
    "tpu.trace_stop"() : () -> ()
    %219 = vector.shape_cast %218 : vector<2x8x8xf32> to vector<16x8xf32>
    %220 = arith.truncf %219 : vector<16x8xf32> to vector<16x8xbf16>
    %c3_128 = arith.constant 3 : index
    %c0_129 = arith.constant 0 : index
    %c0_130 = arith.constant 0 : index
    %221 = vector.load %arg13[%c3_128, %c0_129, %c0_130] : memref<8x8x32xbf16, #tpu.memory_space<vmem>>, vector<1x8x32xbf16>
    %222 = vector.shape_cast %221 : vector<1x8x32xbf16> to vector<8x32xbf16>
    %cst_131 = arith.constant dense<0.000000e+00> : vector<16x32xf32>
    %223 = tpu.matmul %220, %222, %cst_131 {dimension_numbers = #tpu.dot_dimension_numbers<[1], [0], [0], [1], [0, 0, 1, 1], [], []>} : vector<16x8xbf16>, vector<8x32xbf16>, vector<16x32xf32> -> vector<16x32xf32>
    %224 = arith.addf %173, %223 : vector<16x32xf32>
    %c0_132 = arith.constant 0 : index
    %c0_133 = arith.constant 0 : index
    %c0_134 = arith.constant 0 : index
    %225 = vector.load %arg14[%c0_132, %c0_133, %c0_134] : memref<2x1x32xf32, #tpu.memory_space<vmem>>, vector<1x1x32xf32>
    %226 = vector.shape_cast %225 : vector<1x1x32xf32> to vector<1x32xf32>
    %227 = vector.broadcast %226 : vector<1x32xf32> to vector<16x32xf32>
    %228 = arith.addf %224, %227 : vector<16x32xf32>
    %229 = arith.addf %17, %228 : vector<16x32xf32>
    %c0_135 = arith.constant 0 : index
    %c0_136 = arith.constant 0 : index
    %c0_137 = arith.constant 0 : index
    %230 = vector.load %arg15[%c0_135, %c0_136, %c0_137] : memref<2x1x32xf32, #tpu.memory_space<vmem>>, vector<1x1x32xf32>
    %231 = vector.shape_cast %230 : vector<1x1x32xf32> to vector<1x32xf32>
    %c0_138 = arith.constant 0 : index
    %c0_139 = arith.constant 0 : index
    %c0_140 = arith.constant 0 : index
    %232 = vector.load %arg16[%c0_138, %c0_139, %c0_140] : memref<2x1x32xf32, #tpu.memory_space<vmem>>, vector<1x1x32xf32>
    %233 = vector.shape_cast %232 : vector<1x1x32xf32> to vector<1x32xf32>
    %cst_141 = arith.constant dense<0.000000e+00> : vector<16xf32>
    %234 = vector.multi_reduction <add>, %229, %cst_141 [1] : vector<16x32xf32> to vector<16xf32>
    %235 = vector.shape_cast %234 : vector<16xf32> to vector<16x1xf32>
    %cst_142 = arith.constant 3.200000e+01 : f32
    %236 = vector.broadcast %cst_142 : f32 to vector<16x1xf32>
    %237 = arith.divf %235, %236 : vector<16x1xf32>
    %238 = vector.broadcast %237 : vector<16x1xf32> to vector<16x32xf32>
    %239 = arith.subf %229, %238 : vector<16x32xf32>
    %240 = arith.mulf %239, %239 : vector<16x32xf32>
    %cst_143 = arith.constant dense<0.000000e+00> : vector<16xf32>
    %241 = vector.multi_reduction <add>, %240, %cst_143 [1] : vector<16x32xf32> to vector<16xf32>
    %242 = vector.shape_cast %241 : vector<16xf32> to vector<16x1xf32>
    %cst_144 = arith.constant 3.200000e+01 : f32
    %243 = vector.broadcast %cst_144 : f32 to vector<16x1xf32>
    %244 = arith.divf %242, %243 : vector<16x1xf32>
    %245 = vector.broadcast %237 : vector<16x1xf32> to vector<16x32xf32>
    %246 = arith.subf %229, %245 : vector<16x32xf32>
    %cst_145 = arith.constant 9.99999974E-6 : f32
    %247 = vector.broadcast %cst_145 : f32 to vector<16x1xf32>
    %248 = arith.addf %244, %247 : vector<16x1xf32>
    %249 = math.rsqrt %248 : vector<16x1xf32>
    %250 = vector.broadcast %249 : vector<16x1xf32> to vector<16x32xf32>
    %251 = arith.mulf %246, %250 : vector<16x32xf32>
    %252 = vector.broadcast %231 : vector<1x32xf32> to vector<16x32xf32>
    %253 = arith.mulf %251, %252 : vector<16x32xf32>
    %254 = vector.broadcast %233 : vector<1x32xf32> to vector<16x32xf32>
    %255 = arith.addf %253, %254 : vector<16x32xf32>
    %256 = arith.truncf %255 : vector<16x32xf32> to vector<16x32xbf16>
    %c0_146 = arith.constant 0 : index
    %c0_147 = arith.constant 0 : index
    %c0_148 = arith.constant 0 : index
    %257 = vector.load %arg17[%c0_146, %c0_147, %c0_148] : memref<2x32x2048xbf16, #tpu.memory_space<vmem>>, vector<1x32x2048xbf16>
    %258 = vector.shape_cast %257 : vector<1x32x2048xbf16> to vector<32x2048xbf16>
    %cst_149 = arith.constant dense<0.000000e+00> : vector<16x2048xf32>
    %259 = tpu.matmul %256, %258, %cst_149 {dimension_numbers = #tpu.dot_dimension_numbers<[1], [0], [0], [1], [0, 0, 1, 1], [], []>} : vector<16x32xbf16>, vector<32x2048xbf16>, vector<16x2048xf32> -> vector<16x2048xf32>
    %c0_150 = arith.constant 0 : index
    %c0_151 = arith.constant 0 : index
    %c0_152 = arith.constant 0 : index
    %260 = vector.load %arg18[%c0_150, %c0_151, %c0_152] : memref<2x1x2048xf32, #tpu.memory_space<vmem>>, vector<1x1x2048xf32>
    %261 = vector.shape_cast %260 : vector<1x1x2048xf32> to vector<1x2048xf32>
    %262 = vector.broadcast %261 : vector<1x2048xf32> to vector<16x2048xf32>
    %263 = arith.addf %259, %262 : vector<16x2048xf32>
    %cst_153 = arith.constant 0.000000e+00 : f32
    %264 = vector.broadcast %cst_153 : f32 to vector<16x2048xf32>
    %265 = arith.maximumf %263, %264 : vector<16x2048xf32>
    %266 = arith.truncf %265 : vector<16x2048xf32> to vector<16x2048xbf16>
    %c0_154 = arith.constant 0 : index
    %c0_155 = arith.constant 0 : index
    %c0_156 = arith.constant 0 : index
    %267 = vector.load %arg19[%c0_154, %c0_155, %c0_156] : memref<2x2048x32xbf16, #tpu.memory_space<vmem>>, vector<1x2048x32xbf16>
    %268 = vector.shape_cast %267 : vector<1x2048x32xbf16> to vector<2048x32xbf16>
    %cst_157 = arith.constant dense<0.000000e+00> : vector<16x32xf32>
    %269 = tpu.matmul %266, %268, %cst_157 {dimension_numbers = #tpu.dot_dimension_numbers<[1], [0], [0], [1], [0, 0, 1, 1], [], []>} : vector<16x2048xbf16>, vector<2048x32xbf16>, vector<16x32xf32> -> vector<16x32xf32>
    %c0_158 = arith.constant 0 : index
    %c0_159 = arith.constant 0 : index
    %c0_160 = arith.constant 0 : index
    %270 = vector.load %arg20[%c0_158, %c0_159, %c0_160] : memref<2x1x32xf32, #tpu.memory_space<vmem>>, vector<1x1x32xf32>
    %271 = vector.shape_cast %270 : vector<1x1x32xf32> to vector<1x32xf32>
    %272 = vector.broadcast %271 : vector<1x32xf32> to vector<16x32xf32>
    %273 = arith.addf %269, %272 : vector<16x32xf32>
    %274 = arith.addf %255, %273 : vector<16x32xf32>
    %c0_161 = arith.constant 0 : index
    %c0_162 = arith.constant 0 : index
    %c0_163 = arith.constant 0 : index
    %275 = vector.load %arg21[%c0_161, %c0_162, %c0_163] : memref<2x1x32xf32, #tpu.memory_space<vmem>>, vector<1x1x32xf32>
    %276 = vector.shape_cast %275 : vector<1x1x32xf32> to vector<1x32xf32>
    %c0_164 = arith.constant 0 : index
    %c0_165 = arith.constant 0 : index
    %c0_166 = arith.constant 0 : index
    %277 = vector.load %arg22[%c0_164, %c0_165, %c0_166] : memref<2x1x32xf32, #tpu.memory_space<vmem>>, vector<1x1x32xf32>
    %278 = vector.shape_cast %277 : vector<1x1x32xf32> to vector<1x32xf32>
    %cst_167 = arith.constant dense<0.000000e+00> : vector<16xf32>
    %279 = vector.multi_reduction <add>, %274, %cst_167 [1] : vector<16x32xf32> to vector<16xf32>
    %280 = vector.shape_cast %279 : vector<16xf32> to vector<16x1xf32>
    %cst_168 = arith.constant 3.200000e+01 : f32
    %281 = vector.broadcast %cst_168 : f32 to vector<16x1xf32>
    %282 = arith.divf %280, %281 : vector<16x1xf32>
    %283 = vector.broadcast %282 : vector<16x1xf32> to vector<16x32xf32>
    %284 = arith.subf %274, %283 : vector<16x32xf32>
    %285 = arith.mulf %284, %284 : vector<16x32xf32>
    %cst_169 = arith.constant dense<0.000000e+00> : vector<16xf32>
    %286 = vector.multi_reduction <add>, %285, %cst_169 [1] : vector<16x32xf32> to vector<16xf32>
    %287 = vector.shape_cast %286 : vector<16xf32> to vector<16x1xf32>
    %cst_170 = arith.constant 3.200000e+01 : f32
    %288 = vector.broadcast %cst_170 : f32 to vector<16x1xf32>
    %289 = arith.divf %287, %288 : vector<16x1xf32>
    %290 = vector.broadcast %282 : vector<16x1xf32> to vector<16x32xf32>
    %291 = arith.subf %274, %290 : vector<16x32xf32>
    %cst_171 = arith.constant 9.99999974E-6 : f32
    %292 = vector.broadcast %cst_171 : f32 to vector<16x1xf32>
    %293 = arith.addf %289, %292 : vector<16x1xf32>
    %294 = math.rsqrt %293 : vector<16x1xf32>
    %295 = vector.broadcast %294 : vector<16x1xf32> to vector<16x32xf32>
    %296 = arith.mulf %291, %295 : vector<16x32xf32>
    %297 = vector.broadcast %276 : vector<1x32xf32> to vector<16x32xf32>
    %298 = arith.mulf %296, %297 : vector<16x32xf32>
    %299 = vector.broadcast %278 : vector<1x32xf32> to vector<16x32xf32>
    %300 = arith.addf %298, %299 : vector<16x32xf32>
    %301 = arith.truncf %300 : vector<16x32xf32> to vector<16x32xbf16>
    %cst_172 = arith.constant 0.000000e+00 : f32
    %302 = vector.broadcast %cst_172 : f32 to vector<16x32xf32>
    %c4 = arith.constant 4 : index
    %c0_173 = arith.constant 0 : index
    %c0_174 = arith.constant 0 : index
    %303 = vector.load %arg7[%c4, %c0_173, %c0_174] : memref<8x32x8xbf16, #tpu.memory_space<vmem>>, vector<1x32x8xbf16>
    %304 = vector.shape_cast %303 : vector<1x32x8xbf16> to vector<32x8xbf16>
    %cst_175 = arith.constant dense<0.000000e+00> : vector<16x8xf32>
    %305 = tpu.matmul %301, %304, %cst_175 {dimension_numbers = #tpu.dot_dimension_numbers<[1], [0], [0], [1], [0, 0, 1, 1], [], []>} : vector<16x32xbf16>, vector<32x8xbf16>, vector<16x8xf32> -> vector<16x8xf32>
    %c4_176 = arith.constant 4 : index
    %c0_177 = arith.constant 0 : index
    %c0_178 = arith.constant 0 : index
    %306 = vector.load %arg10[%c4_176, %c0_177, %c0_178] : memref<8x1x8xf32, #tpu.memory_space<vmem>>, vector<1x1x8xf32>
    %307 = vector.shape_cast %306 : vector<1x1x8xf32> to vector<1x8xf32>
    %308 = vector.broadcast %307 : vector<1x8xf32> to vector<16x8xf32>
    %309 = arith.addf %305, %308 : vector<16x8xf32>
    %cst_179 = arith.constant 0.353553385 : f32
    %310 = vector.broadcast %cst_179 : f32 to vector<16x8xf32>
    %311 = arith.mulf %309, %310 : vector<16x8xf32>
    %c4_180 = arith.constant 4 : index
    %c0_181 = arith.constant 0 : index
    %c0_182 = arith.constant 0 : index
    %312 = vector.load %arg8[%c4_180, %c0_181, %c0_182] : memref<8x32x8xbf16, #tpu.memory_space<vmem>>, vector<1x32x8xbf16>
    %313 = vector.shape_cast %312 : vector<1x32x8xbf16> to vector<32x8xbf16>
    %cst_183 = arith.constant dense<0.000000e+00> : vector<16x8xf32>
    %314 = tpu.matmul %301, %313, %cst_183 {dimension_numbers = #tpu.dot_dimension_numbers<[1], [0], [0], [1], [0, 0, 1, 1], [], []>} : vector<16x32xbf16>, vector<32x8xbf16>, vector<16x8xf32> -> vector<16x8xf32>
    %c4_184 = arith.constant 4 : index
    %c0_185 = arith.constant 0 : index
    %c0_186 = arith.constant 0 : index
    %315 = vector.load %arg11[%c4_184, %c0_185, %c0_186] : memref<8x1x8xf32, #tpu.memory_space<vmem>>, vector<1x1x8xf32>
    %316 = vector.shape_cast %315 : vector<1x1x8xf32> to vector<1x8xf32>
    %317 = vector.broadcast %316 : vector<1x8xf32> to vector<16x8xf32>
    %318 = arith.addf %314, %317 : vector<16x8xf32>
    %c4_187 = arith.constant 4 : index
    %c0_188 = arith.constant 0 : index
    %c0_189 = arith.constant 0 : index
    %319 = vector.load %arg9[%c4_187, %c0_188, %c0_189] : memref<8x32x8xbf16, #tpu.memory_space<vmem>>, vector<1x32x8xbf16>
    %320 = vector.shape_cast %319 : vector<1x32x8xbf16> to vector<32x8xbf16>
    %cst_190 = arith.constant dense<0.000000e+00> : vector<16x8xf32>
    %321 = tpu.matmul %301, %320, %cst_190 {dimension_numbers = #tpu.dot_dimension_numbers<[1], [0], [0], [1], [0, 0, 1, 1], [], []>} : vector<16x32xbf16>, vector<32x8xbf16>, vector<16x8xf32> -> vector<16x8xf32>
    %c4_191 = arith.constant 4 : index
    %c0_192 = arith.constant 0 : index
    %c0_193 = arith.constant 0 : index
    %322 = vector.load %arg12[%c4_191, %c0_192, %c0_193] : memref<8x1x8xf32, #tpu.memory_space<vmem>>, vector<1x1x8xf32>
    %323 = vector.shape_cast %322 : vector<1x1x8xf32> to vector<1x8xf32>
    %324 = vector.broadcast %323 : vector<1x8xf32> to vector<16x8xf32>
    %325 = arith.addf %321, %324 : vector<16x8xf32>
    %326 = vector.shape_cast %311 : vector<16x8xf32> to vector<2x8x8xf32>
    %327 = arith.truncf %326 : vector<2x8x8xf32> to vector<2x8x8xbf16>
    %328 = vector.shape_cast %318 : vector<16x8xf32> to vector<2x8x8xf32>
    %329 = arith.truncf %328 : vector<2x8x8xf32> to vector<2x8x8xbf16>
    %330 = vector.shape_cast %325 : vector<16x8xf32> to vector<2x8x8xf32>
    %331 = arith.truncf %330 : vector<2x8x8xf32> to vector<2x8x8xbf16>
    "tpu.trace_start"() <{level = 10 : i32, message = "bqd,bkd->bqk"}> : () -> ()
    %cst_194 = arith.constant dense<0.000000e+00> : vector<2x8x8xf32>
    %332 = tpu.matmul %327, %329, %cst_194 {dimension_numbers = #tpu.dot_dimension_numbers<[2], [2], [1], [1], [0, 0, 0, 1, 1, 1], [0], [0]>} : vector<2x8x8xbf16>, vector<2x8x8xbf16>, vector<2x8x8xf32> -> vector<2x8x8xf32>
    "tpu.trace_stop"() : () -> ()
    %333 = vector.shape_cast %18 : vector<8x8xf32> to vector<1x8x8xf32>
    %334 = vector.broadcast %333 : vector<1x8x8xf32> to vector<2x8x8xf32>
    %335 = arith.addf %332, %334 : vector<2x8x8xf32>
    %cst_195 = arith.constant dense<0xFF800000> : vector<2x8xf32>
    %336 = vector.multi_reduction <maximumf>, %335, %cst_195 [2] : vector<2x8x8xf32> to vector<2x8xf32>
    %337 = vector.shape_cast %336 : vector<2x8xf32> to vector<2x8x1xf32>
    %338 = vector.broadcast %337 : vector<2x8x1xf32> to vector<2x8x8xf32>
    %339 = arith.subf %335, %338 : vector<2x8x8xf32>
    %340 = math.exp %339 : vector<2x8x8xf32>
    %cst_196 = arith.constant dense<0.000000e+00> : vector<2x8xf32>
    %341 = vector.multi_reduction <add>, %340, %cst_196 [2] : vector<2x8x8xf32> to vector<2x8xf32>
    %342 = vector.shape_cast %341 : vector<2x8xf32> to vector<2x8x1xf32>
    %343 = tpu.reciprocal %342 {approx = true} : vector<2x8x1xf32> -> vector<2x8x1xf32>
    %344 = vector.broadcast %343 : vector<2x8x1xf32> to vector<2x8x8xf32>
    %345 = arith.mulf %340, %344 : vector<2x8x8xf32>
    %346 = arith.truncf %345 : vector<2x8x8xf32> to vector<2x8x8xbf16>
    "tpu.trace_start"() <{level = 10 : i32, message = "bqk,bkd->bqd"}> : () -> ()
    %cst_197 = arith.constant dense<0.000000e+00> : vector<2x8x8xf32>
    %347 = tpu.matmul %346, %331, %cst_197 {dimension_numbers = #tpu.dot_dimension_numbers<[2], [1], [1], [2], [0, 0, 0, 1, 1, 2], [0], [0]>} : vector<2x8x8xbf16>, vector<2x8x8xbf16>, vector<2x8x8xf32> -> vector<2x8x8xf32>
    "tpu.trace_stop"() : () -> ()
    %348 = vector.shape_cast %347 : vector<2x8x8xf32> to vector<16x8xf32>
    %349 = arith.truncf %348 : vector<16x8xf32> to vector<16x8xbf16>
    %c4_198 = arith.constant 4 : index
    %c0_199 = arith.constant 0 : index
    %c0_200 = arith.constant 0 : index
    %350 = vector.load %arg13[%c4_198, %c0_199, %c0_200] : memref<8x8x32xbf16, #tpu.memory_space<vmem>>, vector<1x8x32xbf16>
    %351 = vector.shape_cast %350 : vector<1x8x32xbf16> to vector<8x32xbf16>
    %cst_201 = arith.constant dense<0.000000e+00> : vector<16x32xf32>
    %352 = tpu.matmul %349, %351, %cst_201 {dimension_numbers = #tpu.dot_dimension_numbers<[1], [0], [0], [1], [0, 0, 1, 1], [], []>} : vector<16x8xbf16>, vector<8x32xbf16>, vector<16x32xf32> -> vector<16x32xf32>
    %353 = arith.addf %302, %352 : vector<16x32xf32>
    %c5 = arith.constant 5 : index
    %c0_202 = arith.constant 0 : index
    %c0_203 = arith.constant 0 : index
    %354 = vector.load %arg7[%c5, %c0_202, %c0_203] : memref<8x32x8xbf16, #tpu.memory_space<vmem>>, vector<1x32x8xbf16>
    %355 = vector.shape_cast %354 : vector<1x32x8xbf16> to vector<32x8xbf16>
    %cst_204 = arith.constant dense<0.000000e+00> : vector<16x8xf32>
    %356 = tpu.matmul %301, %355, %cst_204 {dimension_numbers = #tpu.dot_dimension_numbers<[1], [0], [0], [1], [0, 0, 1, 1], [], []>} : vector<16x32xbf16>, vector<32x8xbf16>, vector<16x8xf32> -> vector<16x8xf32>
    %c5_205 = arith.constant 5 : index
    %c0_206 = arith.constant 0 : index
    %c0_207 = arith.constant 0 : index
    %357 = vector.load %arg10[%c5_205, %c0_206, %c0_207] : memref<8x1x8xf32, #tpu.memory_space<vmem>>, vector<1x1x8xf32>
    %358 = vector.shape_cast %357 : vector<1x1x8xf32> to vector<1x8xf32>
    %359 = vector.broadcast %358 : vector<1x8xf32> to vector<16x8xf32>
    %360 = arith.addf %356, %359 : vector<16x8xf32>
    %cst_208 = arith.constant 0.353553385 : f32
    %361 = vector.broadcast %cst_208 : f32 to vector<16x8xf32>
    %362 = arith.mulf %360, %361 : vector<16x8xf32>
    %c5_209 = arith.constant 5 : index
    %c0_210 = arith.constant 0 : index
    %c0_211 = arith.constant 0 : index
    %363 = vector.load %arg8[%c5_209, %c0_210, %c0_211] : memref<8x32x8xbf16, #tpu.memory_space<vmem>>, vector<1x32x8xbf16>
    %364 = vector.shape_cast %363 : vector<1x32x8xbf16> to vector<32x8xbf16>
    %cst_212 = arith.constant dense<0.000000e+00> : vector<16x8xf32>
    %365 = tpu.matmul %301, %364, %cst_212 {dimension_numbers = #tpu.dot_dimension_numbers<[1], [0], [0], [1], [0, 0, 1, 1], [], []>} : vector<16x32xbf16>, vector<32x8xbf16>, vector<16x8xf32> -> vector<16x8xf32>
    %c5_213 = arith.constant 5 : index
    %c0_214 = arith.constant 0 : index
    %c0_215 = arith.constant 0 : index
    %366 = vector.load %arg11[%c5_213, %c0_214, %c0_215] : memref<8x1x8xf32, #tpu.memory_space<vmem>>, vector<1x1x8xf32>
    %367 = vector.shape_cast %366 : vector<1x1x8xf32> to vector<1x8xf32>
    %368 = vector.broadcast %367 : vector<1x8xf32> to vector<16x8xf32>
    %369 = arith.addf %365, %368 : vector<16x8xf32>
    %c5_216 = arith.constant 5 : index
    %c0_217 = arith.constant 0 : index
    %c0_218 = arith.constant 0 : index
    %370 = vector.load %arg9[%c5_216, %c0_217, %c0_218] : memref<8x32x8xbf16, #tpu.memory_space<vmem>>, vector<1x32x8xbf16>
    %371 = vector.shape_cast %370 : vector<1x32x8xbf16> to vector<32x8xbf16>
    %cst_219 = arith.constant dense<0.000000e+00> : vector<16x8xf32>
    %372 = tpu.matmul %301, %371, %cst_219 {dimension_numbers = #tpu.dot_dimension_numbers<[1], [0], [0], [1], [0, 0, 1, 1], [], []>} : vector<16x32xbf16>, vector<32x8xbf16>, vector<16x8xf32> -> vector<16x8xf32>
    %c5_220 = arith.constant 5 : index
    %c0_221 = arith.constant 0 : index
    %c0_222 = arith.constant 0 : index
    %373 = vector.load %arg12[%c5_220, %c0_221, %c0_222] : memref<8x1x8xf32, #tpu.memory_space<vmem>>, vector<1x1x8xf32>
    %374 = vector.shape_cast %373 : vector<1x1x8xf32> to vector<1x8xf32>
    %375 = vector.broadcast %374 : vector<1x8xf32> to vector<16x8xf32>
    %376 = arith.addf %372, %375 : vector<16x8xf32>
    %377 = vector.shape_cast %362 : vector<16x8xf32> to vector<2x8x8xf32>
    %378 = arith.truncf %377 : vector<2x8x8xf32> to vector<2x8x8xbf16>
    %379 = vector.shape_cast %369 : vector<16x8xf32> to vector<2x8x8xf32>
    %380 = arith.truncf %379 : vector<2x8x8xf32> to vector<2x8x8xbf16>
    %381 = vector.shape_cast %376 : vector<16x8xf32> to vector<2x8x8xf32>
    %382 = arith.truncf %381 : vector<2x8x8xf32> to vector<2x8x8xbf16>
    "tpu.trace_start"() <{level = 10 : i32, message = "bqd,bkd->bqk"}> : () -> ()
    %cst_223 = arith.constant dense<0.000000e+00> : vector<2x8x8xf32>
    %383 = tpu.matmul %378, %380, %cst_223 {dimension_numbers = #tpu.dot_dimension_numbers<[2], [2], [1], [1], [0, 0, 0, 1, 1, 1], [0], [0]>} : vector<2x8x8xbf16>, vector<2x8x8xbf16>, vector<2x8x8xf32> -> vector<2x8x8xf32>
    "tpu.trace_stop"() : () -> ()
    %384 = vector.shape_cast %18 : vector<8x8xf32> to vector<1x8x8xf32>
    %385 = vector.broadcast %384 : vector<1x8x8xf32> to vector<2x8x8xf32>
    %386 = arith.addf %383, %385 : vector<2x8x8xf32>
    %cst_224 = arith.constant dense<0xFF800000> : vector<2x8xf32>
    %387 = vector.multi_reduction <maximumf>, %386, %cst_224 [2] : vector<2x8x8xf32> to vector<2x8xf32>
    %388 = vector.shape_cast %387 : vector<2x8xf32> to vector<2x8x1xf32>
    %389 = vector.broadcast %388 : vector<2x8x1xf32> to vector<2x8x8xf32>
    %390 = arith.subf %386, %389 : vector<2x8x8xf32>
    %391 = math.exp %390 : vector<2x8x8xf32>
    %cst_225 = arith.constant dense<0.000000e+00> : vector<2x8xf32>
    %392 = vector.multi_reduction <add>, %391, %cst_225 [2] : vector<2x8x8xf32> to vector<2x8xf32>
    %393 = vector.shape_cast %392 : vector<2x8xf32> to vector<2x8x1xf32>
    %394 = tpu.reciprocal %393 {approx = true} : vector<2x8x1xf32> -> vector<2x8x1xf32>
    %395 = vector.broadcast %394 : vector<2x8x1xf32> to vector<2x8x8xf32>
    %396 = arith.mulf %391, %395 : vector<2x8x8xf32>
    %397 = arith.truncf %396 : vector<2x8x8xf32> to vector<2x8x8xbf16>
    "tpu.trace_start"() <{level = 10 : i32, message = "bqk,bkd->bqd"}> : () -> ()
    %cst_226 = arith.constant dense<0.000000e+00> : vector<2x8x8xf32>
    %398 = tpu.matmul %397, %382, %cst_226 {dimension_numbers = #tpu.dot_dimension_numbers<[2], [1], [1], [2], [0, 0, 0, 1, 1, 2], [0], [0]>} : vector<2x8x8xbf16>, vector<2x8x8xbf16>, vector<2x8x8xf32> -> vector<2x8x8xf32>
    "tpu.trace_stop"() : () -> ()
    %399 = vector.shape_cast %398 : vector<2x8x8xf32> to vector<16x8xf32>
    %400 = arith.truncf %399 : vector<16x8xf32> to vector<16x8xbf16>
    %c5_227 = arith.constant 5 : index
    %c0_228 = arith.constant 0 : index
    %c0_229 = arith.constant 0 : index
    %401 = vector.load %arg13[%c5_227, %c0_228, %c0_229] : memref<8x8x32xbf16, #tpu.memory_space<vmem>>, vector<1x8x32xbf16>
    %402 = vector.shape_cast %401 : vector<1x8x32xbf16> to vector<8x32xbf16>
    %cst_230 = arith.constant dense<0.000000e+00> : vector<16x32xf32>
    %403 = tpu.matmul %400, %402, %cst_230 {dimension_numbers = #tpu.dot_dimension_numbers<[1], [0], [0], [1], [0, 0, 1, 1], [], []>} : vector<16x8xbf16>, vector<8x32xbf16>, vector<16x32xf32> -> vector<16x32xf32>
    %404 = arith.addf %353, %403 : vector<16x32xf32>
    %c6 = arith.constant 6 : index
    %c0_231 = arith.constant 0 : index
    %c0_232 = arith.constant 0 : index
    %405 = vector.load %arg7[%c6, %c0_231, %c0_232] : memref<8x32x8xbf16, #tpu.memory_space<vmem>>, vector<1x32x8xbf16>
    %406 = vector.shape_cast %405 : vector<1x32x8xbf16> to vector<32x8xbf16>
    %cst_233 = arith.constant dense<0.000000e+00> : vector<16x8xf32>
    %407 = tpu.matmul %301, %406, %cst_233 {dimension_numbers = #tpu.dot_dimension_numbers<[1], [0], [0], [1], [0, 0, 1, 1], [], []>} : vector<16x32xbf16>, vector<32x8xbf16>, vector<16x8xf32> -> vector<16x8xf32>
    %c6_234 = arith.constant 6 : index
    %c0_235 = arith.constant 0 : index
    %c0_236 = arith.constant 0 : index
    %408 = vector.load %arg10[%c6_234, %c0_235, %c0_236] : memref<8x1x8xf32, #tpu.memory_space<vmem>>, vector<1x1x8xf32>
    %409 = vector.shape_cast %408 : vector<1x1x8xf32> to vector<1x8xf32>
    %410 = vector.broadcast %409 : vector<1x8xf32> to vector<16x8xf32>
    %411 = arith.addf %407, %410 : vector<16x8xf32>
    %cst_237 = arith.constant 0.353553385 : f32
    %412 = vector.broadcast %cst_237 : f32 to vector<16x8xf32>
    %413 = arith.mulf %411, %412 : vector<16x8xf32>
    %c6_238 = arith.constant 6 : index
    %c0_239 = arith.constant 0 : index
    %c0_240 = arith.constant 0 : index
    %414 = vector.load %arg8[%c6_238, %c0_239, %c0_240] : memref<8x32x8xbf16, #tpu.memory_space<vmem>>, vector<1x32x8xbf16>
    %415 = vector.shape_cast %414 : vector<1x32x8xbf16> to vector<32x8xbf16>
    %cst_241 = arith.constant dense<0.000000e+00> : vector<16x8xf32>
    %416 = tpu.matmul %301, %415, %cst_241 {dimension_numbers = #tpu.dot_dimension_numbers<[1], [0], [0], [1], [0, 0, 1, 1], [], []>} : vector<16x32xbf16>, vector<32x8xbf16>, vector<16x8xf32> -> vector<16x8xf32>
    %c6_242 = arith.constant 6 : index
    %c0_243 = arith.constant 0 : index
    %c0_244 = arith.constant 0 : index
    %417 = vector.load %arg11[%c6_242, %c0_243, %c0_244] : memref<8x1x8xf32, #tpu.memory_space<vmem>>, vector<1x1x8xf32>
    %418 = vector.shape_cast %417 : vector<1x1x8xf32> to vector<1x8xf32>
    %419 = vector.broadcast %418 : vector<1x8xf32> to vector<16x8xf32>
    %420 = arith.addf %416, %419 : vector<16x8xf32>
    %c6_245 = arith.constant 6 : index
    %c0_246 = arith.constant 0 : index
    %c0_247 = arith.constant 0 : index
    %421 = vector.load %arg9[%c6_245, %c0_246, %c0_247] : memref<8x32x8xbf16, #tpu.memory_space<vmem>>, vector<1x32x8xbf16>
    %422 = vector.shape_cast %421 : vector<1x32x8xbf16> to vector<32x8xbf16>
    %cst_248 = arith.constant dense<0.000000e+00> : vector<16x8xf32>
    %423 = tpu.matmul %301, %422, %cst_248 {dimension_numbers = #tpu.dot_dimension_numbers<[1], [0], [0], [1], [0, 0, 1, 1], [], []>} : vector<16x32xbf16>, vector<32x8xbf16>, vector<16x8xf32> -> vector<16x8xf32>
    %c6_249 = arith.constant 6 : index
    %c0_250 = arith.constant 0 : index
    %c0_251 = arith.constant 0 : index
    %424 = vector.load %arg12[%c6_249, %c0_250, %c0_251] : memref<8x1x8xf32, #tpu.memory_space<vmem>>, vector<1x1x8xf32>
    %425 = vector.shape_cast %424 : vector<1x1x8xf32> to vector<1x8xf32>
    %426 = vector.broadcast %425 : vector<1x8xf32> to vector<16x8xf32>
    %427 = arith.addf %423, %426 : vector<16x8xf32>
    %428 = vector.shape_cast %413 : vector<16x8xf32> to vector<2x8x8xf32>
    %429 = arith.truncf %428 : vector<2x8x8xf32> to vector<2x8x8xbf16>
    %430 = vector.shape_cast %420 : vector<16x8xf32> to vector<2x8x8xf32>
    %431 = arith.truncf %430 : vector<2x8x8xf32> to vector<2x8x8xbf16>
    %432 = vector.shape_cast %427 : vector<16x8xf32> to vector<2x8x8xf32>
    %433 = arith.truncf %432 : vector<2x8x8xf32> to vector<2x8x8xbf16>
    "tpu.trace_start"() <{level = 10 : i32, message = "bqd,bkd->bqk"}> : () -> ()
    %cst_252 = arith.constant dense<0.000000e+00> : vector<2x8x8xf32>
    %434 = tpu.matmul %429, %431, %cst_252 {dimension_numbers = #tpu.dot_dimension_numbers<[2], [2], [1], [1], [0, 0, 0, 1, 1, 1], [0], [0]>} : vector<2x8x8xbf16>, vector<2x8x8xbf16>, vector<2x8x8xf32> -> vector<2x8x8xf32>
    "tpu.trace_stop"() : () -> ()
    %435 = vector.shape_cast %18 : vector<8x8xf32> to vector<1x8x8xf32>
    %436 = vector.broadcast %435 : vector<1x8x8xf32> to vector<2x8x8xf32>
    %437 = arith.addf %434, %436 : vector<2x8x8xf32>
    %cst_253 = arith.constant dense<0xFF800000> : vector<2x8xf32>
    %438 = vector.multi_reduction <maximumf>, %437, %cst_253 [2] : vector<2x8x8xf32> to vector<2x8xf32>
    %439 = vector.shape_cast %438 : vector<2x8xf32> to vector<2x8x1xf32>
    %440 = vector.broadcast %439 : vector<2x8x1xf32> to vector<2x8x8xf32>
    %441 = arith.subf %437, %440 : vector<2x8x8xf32>
    %442 = math.exp %441 : vector<2x8x8xf32>
    %cst_254 = arith.constant dense<0.000000e+00> : vector<2x8xf32>
    %443 = vector.multi_reduction <add>, %442, %cst_254 [2] : vector<2x8x8xf32> to vector<2x8xf32>
    %444 = vector.shape_cast %443 : vector<2x8xf32> to vector<2x8x1xf32>
    %445 = tpu.reciprocal %444 {approx = true} : vector<2x8x1xf32> -> vector<2x8x1xf32>
    %446 = vector.broadcast %445 : vector<2x8x1xf32> to vector<2x8x8xf32>
    %447 = arith.mulf %442, %446 : vector<2x8x8xf32>
    %448 = arith.truncf %447 : vector<2x8x8xf32> to vector<2x8x8xbf16>
    "tpu.trace_start"() <{level = 10 : i32, message = "bqk,bkd->bqd"}> : () -> ()
    %cst_255 = arith.constant dense<0.000000e+00> : vector<2x8x8xf32>
    %449 = tpu.matmul %448, %433, %cst_255 {dimension_numbers = #tpu.dot_dimension_numbers<[2], [1], [1], [2], [0, 0, 0, 1, 1, 2], [0], [0]>} : vector<2x8x8xbf16>, vector<2x8x8xbf16>, vector<2x8x8xf32> -> vector<2x8x8xf32>
    "tpu.trace_stop"() : () -> ()
    %450 = vector.shape_cast %449 : vector<2x8x8xf32> to vector<16x8xf32>
    %451 = arith.truncf %450 : vector<16x8xf32> to vector<16x8xbf16>
    %c6_256 = arith.constant 6 : index
    %c0_257 = arith.constant 0 : index
    %c0_258 = arith.constant 0 : index
    %452 = vector.load %arg13[%c6_256, %c0_257, %c0_258] : memref<8x8x32xbf16, #tpu.memory_space<vmem>>, vector<1x8x32xbf16>
    %453 = vector.shape_cast %452 : vector<1x8x32xbf16> to vector<8x32xbf16>
    %cst_259 = arith.constant dense<0.000000e+00> : vector<16x32xf32>
    %454 = tpu.matmul %451, %453, %cst_259 {dimension_numbers = #tpu.dot_dimension_numbers<[1], [0], [0], [1], [0, 0, 1, 1], [], []>} : vector<16x8xbf16>, vector<8x32xbf16>, vector<16x32xf32> -> vector<16x32xf32>
    %455 = arith.addf %404, %454 : vector<16x32xf32>
    %c7 = arith.constant 7 : index
    %c0_260 = arith.constant 0 : index
    %c0_261 = arith.constant 0 : index
    %456 = vector.load %arg7[%c7, %c0_260, %c0_261] : memref<8x32x8xbf16, #tpu.memory_space<vmem>>, vector<1x32x8xbf16>
    %457 = vector.shape_cast %456 : vector<1x32x8xbf16> to vector<32x8xbf16>
    %cst_262 = arith.constant dense<0.000000e+00> : vector<16x8xf32>
    %458 = tpu.matmul %301, %457, %cst_262 {dimension_numbers = #tpu.dot_dimension_numbers<[1], [0], [0], [1], [0, 0, 1, 1], [], []>} : vector<16x32xbf16>, vector<32x8xbf16>, vector<16x8xf32> -> vector<16x8xf32>
    %c7_263 = arith.constant 7 : index
    %c0_264 = arith.constant 0 : index
    %c0_265 = arith.constant 0 : index
    %459 = vector.load %arg10[%c7_263, %c0_264, %c0_265] : memref<8x1x8xf32, #tpu.memory_space<vmem>>, vector<1x1x8xf32>
    %460 = vector.shape_cast %459 : vector<1x1x8xf32> to vector<1x8xf32>
    %461 = vector.broadcast %460 : vector<1x8xf32> to vector<16x8xf32>
    %462 = arith.addf %458, %461 : vector<16x8xf32>
    %cst_266 = arith.constant 0.353553385 : f32
    %463 = vector.broadcast %cst_266 : f32 to vector<16x8xf32>
    %464 = arith.mulf %462, %463 : vector<16x8xf32>
    %c7_267 = arith.constant 7 : index
    %c0_268 = arith.constant 0 : index
    %c0_269 = arith.constant 0 : index
    %465 = vector.load %arg8[%c7_267, %c0_268, %c0_269] : memref<8x32x8xbf16, #tpu.memory_space<vmem>>, vector<1x32x8xbf16>
    %466 = vector.shape_cast %465 : vector<1x32x8xbf16> to vector<32x8xbf16>
    %cst_270 = arith.constant dense<0.000000e+00> : vector<16x8xf32>
    %467 = tpu.matmul %301, %466, %cst_270 {dimension_numbers = #tpu.dot_dimension_numbers<[1], [0], [0], [1], [0, 0, 1, 1], [], []>} : vector<16x32xbf16>, vector<32x8xbf16>, vector<16x8xf32> -> vector<16x8xf32>
    %c7_271 = arith.constant 7 : index
    %c0_272 = arith.constant 0 : index
    %c0_273 = arith.constant 0 : index
    %468 = vector.load %arg11[%c7_271, %c0_272, %c0_273] : memref<8x1x8xf32, #tpu.memory_space<vmem>>, vector<1x1x8xf32>
    %469 = vector.shape_cast %468 : vector<1x1x8xf32> to vector<1x8xf32>
    %470 = vector.broadcast %469 : vector<1x8xf32> to vector<16x8xf32>
    %471 = arith.addf %467, %470 : vector<16x8xf32>
    %c7_274 = arith.constant 7 : index
    %c0_275 = arith.constant 0 : index
    %c0_276 = arith.constant 0 : index
    %472 = vector.load %arg9[%c7_274, %c0_275, %c0_276] : memref<8x32x8xbf16, #tpu.memory_space<vmem>>, vector<1x32x8xbf16>
    %473 = vector.shape_cast %472 : vector<1x32x8xbf16> to vector<32x8xbf16>
    %cst_277 = arith.constant dense<0.000000e+00> : vector<16x8xf32>
    %474 = tpu.matmul %301, %473, %cst_277 {dimension_numbers = #tpu.dot_dimension_numbers<[1], [0], [0], [1], [0, 0, 1, 1], [], []>} : vector<16x32xbf16>, vector<32x8xbf16>, vector<16x8xf32> -> vector<16x8xf32>
    %c7_278 = arith.constant 7 : index
    %c0_279 = arith.constant 0 : index
    %c0_280 = arith.constant 0 : index
    %475 = vector.load %arg12[%c7_278, %c0_279, %c0_280] : memref<8x1x8xf32, #tpu.memory_space<vmem>>, vector<1x1x8xf32>
    %476 = vector.shape_cast %475 : vector<1x1x8xf32> to vector<1x8xf32>
    %477 = vector.broadcast %476 : vector<1x8xf32> to vector<16x8xf32>
    %478 = arith.addf %474, %477 : vector<16x8xf32>
    %479 = vector.shape_cast %464 : vector<16x8xf32> to vector<2x8x8xf32>
    %480 = arith.truncf %479 : vector<2x8x8xf32> to vector<2x8x8xbf16>
    %481 = vector.shape_cast %471 : vector<16x8xf32> to vector<2x8x8xf32>
    %482 = arith.truncf %481 : vector<2x8x8xf32> to vector<2x8x8xbf16>
    %483 = vector.shape_cast %478 : vector<16x8xf32> to vector<2x8x8xf32>
    %484 = arith.truncf %483 : vector<2x8x8xf32> to vector<2x8x8xbf16>
    "tpu.trace_start"() <{level = 10 : i32, message = "bqd,bkd->bqk"}> : () -> ()
    %cst_281 = arith.constant dense<0.000000e+00> : vector<2x8x8xf32>
    %485 = tpu.matmul %480, %482, %cst_281 {dimension_numbers = #tpu.dot_dimension_numbers<[2], [2], [1], [1], [0, 0, 0, 1, 1, 1], [0], [0]>} : vector<2x8x8xbf16>, vector<2x8x8xbf16>, vector<2x8x8xf32> -> vector<2x8x8xf32>
    "tpu.trace_stop"() : () -> ()
    %486 = vector.shape_cast %18 : vector<8x8xf32> to vector<1x8x8xf32>
    %487 = vector.broadcast %486 : vector<1x8x8xf32> to vector<2x8x8xf32>
    %488 = arith.addf %485, %487 : vector<2x8x8xf32>
    %cst_282 = arith.constant dense<0xFF800000> : vector<2x8xf32>
    %489 = vector.multi_reduction <maximumf>, %488, %cst_282 [2] : vector<2x8x8xf32> to vector<2x8xf32>
    %490 = vector.shape_cast %489 : vector<2x8xf32> to vector<2x8x1xf32>
    %491 = vector.broadcast %490 : vector<2x8x1xf32> to vector<2x8x8xf32>
    %492 = arith.subf %488, %491 : vector<2x8x8xf32>
    %493 = math.exp %492 : vector<2x8x8xf32>
    %cst_283 = arith.constant dense<0.000000e+00> : vector<2x8xf32>
    %494 = vector.multi_reduction <add>, %493, %cst_283 [2] : vector<2x8x8xf32> to vector<2x8xf32>
    %495 = vector.shape_cast %494 : vector<2x8xf32> to vector<2x8x1xf32>
    %496 = tpu.reciprocal %495 {approx = true} : vector<2x8x1xf32> -> vector<2x8x1xf32>
    %497 = vector.broadcast %496 : vector<2x8x1xf32> to vector<2x8x8xf32>
    %498 = arith.mulf %493, %497 : vector<2x8x8xf32>
    %499 = arith.truncf %498 : vector<2x8x8xf32> to vector<2x8x8xbf16>
    "tpu.trace_start"() <{level = 10 : i32, message = "bqk,bkd->bqd"}> : () -> ()
    %cst_284 = arith.constant dense<0.000000e+00> : vector<2x8x8xf32>
    %500 = tpu.matmul %499, %484, %cst_284 {dimension_numbers = #tpu.dot_dimension_numbers<[2], [1], [1], [2], [0, 0, 0, 1, 1, 2], [0], [0]>} : vector<2x8x8xbf16>, vector<2x8x8xbf16>, vector<2x8x8xf32> -> vector<2x8x8xf32>
    "tpu.trace_stop"() : () -> ()
    %501 = vector.shape_cast %500 : vector<2x8x8xf32> to vector<16x8xf32>
    %502 = arith.truncf %501 : vector<16x8xf32> to vector<16x8xbf16>
    %c7_285 = arith.constant 7 : index
    %c0_286 = arith.constant 0 : index
    %c0_287 = arith.constant 0 : index
    %503 = vector.load %arg13[%c7_285, %c0_286, %c0_287] : memref<8x8x32xbf16, #tpu.memory_space<vmem>>, vector<1x8x32xbf16>
    %504 = vector.shape_cast %503 : vector<1x8x32xbf16> to vector<8x32xbf16>
    %cst_288 = arith.constant dense<0.000000e+00> : vector<16x32xf32>
    %505 = tpu.matmul %502, %504, %cst_288 {dimension_numbers = #tpu.dot_dimension_numbers<[1], [0], [0], [1], [0, 0, 1, 1], [], []>} : vector<16x8xbf16>, vector<8x32xbf16>, vector<16x32xf32> -> vector<16x32xf32>
    %506 = arith.addf %455, %505 : vector<16x32xf32>
    %c1_289 = arith.constant 1 : index
    %c0_290 = arith.constant 0 : index
    %c0_291 = arith.constant 0 : index
    %507 = vector.load %arg14[%c1_289, %c0_290, %c0_291] : memref<2x1x32xf32, #tpu.memory_space<vmem>>, vector<1x1x32xf32>
    %508 = vector.shape_cast %507 : vector<1x1x32xf32> to vector<1x32xf32>
    %509 = vector.broadcast %508 : vector<1x32xf32> to vector<16x32xf32>
    %510 = arith.addf %506, %509 : vector<16x32xf32>
    %511 = arith.addf %300, %510 : vector<16x32xf32>
    %c1_292 = arith.constant 1 : index
    %c0_293 = arith.constant 0 : index
    %c0_294 = arith.constant 0 : index
    %512 = vector.load %arg15[%c1_292, %c0_293, %c0_294] : memref<2x1x32xf32, #tpu.memory_space<vmem>>, vector<1x1x32xf32>
    %513 = vector.shape_cast %512 : vector<1x1x32xf32> to vector<1x32xf32>
    %c1_295 = arith.constant 1 : index
    %c0_296 = arith.constant 0 : index
    %c0_297 = arith.constant 0 : index
    %514 = vector.load %arg16[%c1_295, %c0_296, %c0_297] : memref<2x1x32xf32, #tpu.memory_space<vmem>>, vector<1x1x32xf32>
    %515 = vector.shape_cast %514 : vector<1x1x32xf32> to vector<1x32xf32>
    %cst_298 = arith.constant dense<0.000000e+00> : vector<16xf32>
    %516 = vector.multi_reduction <add>, %511, %cst_298 [1] : vector<16x32xf32> to vector<16xf32>
    %517 = vector.shape_cast %516 : vector<16xf32> to vector<16x1xf32>
    %cst_299 = arith.constant 3.200000e+01 : f32
    %518 = vector.broadcast %cst_299 : f32 to vector<16x1xf32>
    %519 = arith.divf %517, %518 : vector<16x1xf32>
    %520 = vector.broadcast %519 : vector<16x1xf32> to vector<16x32xf32>
    %521 = arith.subf %511, %520 : vector<16x32xf32>
    %522 = arith.mulf %521, %521 : vector<16x32xf32>
    %cst_300 = arith.constant dense<0.000000e+00> : vector<16xf32>
    %523 = vector.multi_reduction <add>, %522, %cst_300 [1] : vector<16x32xf32> to vector<16xf32>
    %524 = vector.shape_cast %523 : vector<16xf32> to vector<16x1xf32>
    %cst_301 = arith.constant 3.200000e+01 : f32
    %525 = vector.broadcast %cst_301 : f32 to vector<16x1xf32>
    %526 = arith.divf %524, %525 : vector<16x1xf32>
    %527 = vector.broadcast %519 : vector<16x1xf32> to vector<16x32xf32>
    %528 = arith.subf %511, %527 : vector<16x32xf32>
    %cst_302 = arith.constant 9.99999974E-6 : f32
    %529 = vector.broadcast %cst_302 : f32 to vector<16x1xf32>
    %530 = arith.addf %526, %529 : vector<16x1xf32>
    %531 = math.rsqrt %530 : vector<16x1xf32>
    %532 = vector.broadcast %531 : vector<16x1xf32> to vector<16x32xf32>
    %533 = arith.mulf %528, %532 : vector<16x32xf32>
    %534 = vector.broadcast %513 : vector<1x32xf32> to vector<16x32xf32>
    %535 = arith.mulf %533, %534 : vector<16x32xf32>
    %536 = vector.broadcast %515 : vector<1x32xf32> to vector<16x32xf32>
    %537 = arith.addf %535, %536 : vector<16x32xf32>
    %538 = arith.truncf %537 : vector<16x32xf32> to vector<16x32xbf16>
    %c1_303 = arith.constant 1 : index
    %c0_304 = arith.constant 0 : index
    %c0_305 = arith.constant 0 : index
    %539 = vector.load %arg17[%c1_303, %c0_304, %c0_305] : memref<2x32x2048xbf16, #tpu.memory_space<vmem>>, vector<1x32x2048xbf16>
    %540 = vector.shape_cast %539 : vector<1x32x2048xbf16> to vector<32x2048xbf16>
    %cst_306 = arith.constant dense<0.000000e+00> : vector<16x2048xf32>
    %541 = tpu.matmul %538, %540, %cst_306 {dimension_numbers = #tpu.dot_dimension_numbers<[1], [0], [0], [1], [0, 0, 1, 1], [], []>} : vector<16x32xbf16>, vector<32x2048xbf16>, vector<16x2048xf32> -> vector<16x2048xf32>
    %c1_307 = arith.constant 1 : index
    %c0_308 = arith.constant 0 : index
    %c0_309 = arith.constant 0 : index
    %542 = vector.load %arg18[%c1_307, %c0_308, %c0_309] : memref<2x1x2048xf32, #tpu.memory_space<vmem>>, vector<1x1x2048xf32>
    %543 = vector.shape_cast %542 : vector<1x1x2048xf32> to vector<1x2048xf32>
    %544 = vector.broadcast %543 : vector<1x2048xf32> to vector<16x2048xf32>
    %545 = arith.addf %541, %544 : vector<16x2048xf32>
    %cst_310 = arith.constant 0.000000e+00 : f32
    %546 = vector.broadcast %cst_310 : f32 to vector<16x2048xf32>
    %547 = arith.maximumf %545, %546 : vector<16x2048xf32>
    %548 = arith.truncf %547 : vector<16x2048xf32> to vector<16x2048xbf16>
    %c1_311 = arith.constant 1 : index
    %c0_312 = arith.constant 0 : index
    %c0_313 = arith.constant 0 : index
    %549 = vector.load %arg19[%c1_311, %c0_312, %c0_313] : memref<2x2048x32xbf16, #tpu.memory_space<vmem>>, vector<1x2048x32xbf16>
    %550 = vector.shape_cast %549 : vector<1x2048x32xbf16> to vector<2048x32xbf16>
    %cst_314 = arith.constant dense<0.000000e+00> : vector<16x32xf32>
    %551 = tpu.matmul %548, %550, %cst_314 {dimension_numbers = #tpu.dot_dimension_numbers<[1], [0], [0], [1], [0, 0, 1, 1], [], []>} : vector<16x2048xbf16>, vector<2048x32xbf16>, vector<16x32xf32> -> vector<16x32xf32>
    %c1_315 = arith.constant 1 : index
    %c0_316 = arith.constant 0 : index
    %c0_317 = arith.constant 0 : index
    %552 = vector.load %arg20[%c1_315, %c0_316, %c0_317] : memref<2x1x32xf32, #tpu.memory_space<vmem>>, vector<1x1x32xf32>
    %553 = vector.shape_cast %552 : vector<1x1x32xf32> to vector<1x32xf32>
    %554 = vector.broadcast %553 : vector<1x32xf32> to vector<16x32xf32>
    %555 = arith.addf %551, %554 : vector<16x32xf32>
    %556 = arith.addf %537, %555 : vector<16x32xf32>
    %c1_318 = arith.constant 1 : index
    %c0_319 = arith.constant 0 : index
    %c0_320 = arith.constant 0 : index
    %557 = vector.load %arg21[%c1_318, %c0_319, %c0_320] : memref<2x1x32xf32, #tpu.memory_space<vmem>>, vector<1x1x32xf32>
    %558 = vector.shape_cast %557 : vector<1x1x32xf32> to vector<1x32xf32>
    %c1_321 = arith.constant 1 : index
    %c0_322 = arith.constant 0 : index
    %c0_323 = arith.constant 0 : index
    %559 = vector.load %arg22[%c1_321, %c0_322, %c0_323] : memref<2x1x32xf32, #tpu.memory_space<vmem>>, vector<1x1x32xf32>
    %560 = vector.shape_cast %559 : vector<1x1x32xf32> to vector<1x32xf32>
    %cst_324 = arith.constant dense<0.000000e+00> : vector<16xf32>
    %561 = vector.multi_reduction <add>, %556, %cst_324 [1] : vector<16x32xf32> to vector<16xf32>
    %562 = vector.shape_cast %561 : vector<16xf32> to vector<16x1xf32>
    %cst_325 = arith.constant 3.200000e+01 : f32
    %563 = vector.broadcast %cst_325 : f32 to vector<16x1xf32>
    %564 = arith.divf %562, %563 : vector<16x1xf32>
    %565 = vector.broadcast %564 : vector<16x1xf32> to vector<16x32xf32>
    %566 = arith.subf %556, %565 : vector<16x32xf32>
    %567 = arith.mulf %566, %566 : vector<16x32xf32>
    %cst_326 = arith.constant dense<0.000000e+00> : vector<16xf32>
    %568 = vector.multi_reduction <add>, %567, %cst_326 [1] : vector<16x32xf32> to vector<16xf32>
    %569 = vector.shape_cast %568 : vector<16xf32> to vector<16x1xf32>
    %cst_327 = arith.constant 3.200000e+01 : f32
    %570 = vector.broadcast %cst_327 : f32 to vector<16x1xf32>
    %571 = arith.divf %569, %570 : vector<16x1xf32>
    %572 = vector.broadcast %564 : vector<16x1xf32> to vector<16x32xf32>
    %573 = arith.subf %556, %572 : vector<16x32xf32>
    %cst_328 = arith.constant 9.99999974E-6 : f32
    %574 = vector.broadcast %cst_328 : f32 to vector<16x1xf32>
    %575 = arith.addf %571, %574 : vector<16x1xf32>
    %576 = math.rsqrt %575 : vector<16x1xf32>
    %577 = vector.broadcast %576 : vector<16x1xf32> to vector<16x32xf32>
    %578 = arith.mulf %573, %577 : vector<16x32xf32>
    %579 = vector.broadcast %558 : vector<1x32xf32> to vector<16x32xf32>
    %580 = arith.mulf %578, %579 : vector<16x32xf32>
    %581 = vector.broadcast %560 : vector<1x32xf32> to vector<16x32xf32>
    %582 = arith.addf %580, %581 : vector<16x32xf32>
    %583 = arith.truncf %582 : vector<16x32xf32> to vector<16x32xbf16>
    %c0_329 = arith.constant 0 : index
    %c0_330 = arith.constant 0 : index
    %584 = vector.load %arg23[%c0_329, %c0_330] : memref<32x16xbf16, #tpu.memory_space<vmem>>, vector<32x16xbf16>
    %cst_331 = arith.constant dense<0.000000e+00> : vector<16x16xf32>
    %585 = tpu.matmul %583, %584, %cst_331 {dimension_numbers = #tpu.dot_dimension_numbers<[1], [0], [0], [1], [0, 0, 1, 1], [], []>} : vector<16x32xbf16>, vector<32x16xbf16>, vector<16x16xf32> -> vector<16x16xf32>
    %c0_332 = arith.constant 0 : index
    %c0_333 = arith.constant 0 : index
    %586 = vector.load %arg24[%c0_332, %c0_333] : memref<1x16xf32, #tpu.memory_space<vmem>>, vector<1x16xf32>
    %587 = vector.broadcast %586 : vector<1x16xf32> to vector<16x16xf32>
    %588 = arith.addf %585, %587 : vector<16x16xf32>
    %cst_334 = arith.constant 0.000000e+00 : f32
    %589 = vector.broadcast %cst_334 : f32 to vector<16x16xf32>
    %590 = arith.maximumf %588, %589 : vector<16x16xf32>
    %591 = arith.truncf %590 : vector<16x16xf32> to vector<16x16xbf16>
    %c0_335 = arith.constant 0 : index
    %c0_336 = arith.constant 0 : index
    %592 = vector.load %arg25[%c0_335, %c0_336] : memref<16x128xbf16, #tpu.memory_space<vmem>>, vector<16x128xbf16>
    %cst_337 = arith.constant dense<0.000000e+00> : vector<16x128xf32>
    %593 = tpu.matmul %591, %592, %cst_337 {dimension_numbers = #tpu.dot_dimension_numbers<[1], [0], [0], [1], [0, 0, 1, 1], [], []>} : vector<16x16xbf16>, vector<16x128xbf16>, vector<16x128xf32> -> vector<16x128xf32>
    %c0_338 = arith.constant 0 : index
    %c0_339 = arith.constant 0 : index
    %594 = vector.load %arg26[%c0_338, %c0_339] : memref<1x128xf32, #tpu.memory_space<vmem>>, vector<1x128xf32>
    %595 = vector.broadcast %594 : vector<1x128xf32> to vector<16x128xf32>
    %596 = arith.addf %593, %595 : vector<16x128xf32>
    %c0_340 = arith.constant 0 : index
    %c0_341 = arith.constant 0 : index
    %597 = vector.load %arg27[%c0_340, %c0_341] : memref<16x128xf32, #tpu.memory_space<vmem>>, vector<16x128xf32>
    tpu.vector_store %arg27[%c0_340, %c0_341], %596 {strides = array<i32>} : memref<16x128xf32, #tpu.memory_space<vmem>>, vector<16x128xf32>,
    return
  }
}

</mosaic_0001>

<bundles_post_ra>
// kernel: squeeze.1
= control target key start
LH: loop header
LB: loop body
LE: loop exit
PB: predicated region body
PF: predicated region fallthrough
CT: control target
= control target key end

     0   :  { %vm7_vm0 = vcmask 64512   ;;  %s39_s0 = inlined_call_operand.vmem [shape: f32[16], index: 0, kind: input, shape index: {}]   ;;  %s40_s1 = inlined_call_operand.vmem [shape: f32[2,8], index: 1, kind: output, shape index: {}]  }
   0x1   :  { %v4_v0 = vld [vmem:[%s39_s0] sm:$0x1]  ;;  %s22_s0 = smov 120  }
   0x2   :  { %5 = vst [vmem:[#allocation1] sm:$0x1] %v4_v0 }
   0x9   :  { %v9_v1 = vld [vmem:[#allocation1] sm:$0x1]  }
   0xa   :  { %v6_v2 = vld [vmem:[#allocation1] sm:$0x1]   ;;  %10 = vrot.lane.b32.xlu0 %v9_v1, %s22_s0 }
   0xb   :  { %8 = vst.msk [vmem:[#allocation0] sm:$0x1] %vm7_vm0, %v6_v2  }
  0x7c   :  { %v11_v3 = vpop.permute.xlu0 %10  }
  0x7d   :  { %14 = vst.msk [vmem:[#allocation0 + $0x1] sm:$0x1] %vm7_vm0, %v11_v3  }
  0x84   :  { %v18_v4 = vld [vmem:[#allocation0] sm:$0x3] }
  0x85   :  { %20 = vst [vmem:[%s40_s1] sm:$0x3] %v18_v4 }

// kernel: tf_model_forward.3
= control target key start
LH: loop header
LB: loop body
LE: loop exit
PB: predicated region body
PF: predicated region fallthrough
CT: control target
= control target key end

     0   :  { %vm30_vm0 = vcmask 64512   ;;  %v252_v2 = vmov 0.0   ;;  %vm253_vm1 = vmmov 0   ;;  %s312_s0 = inlined_call_operand.vmem [shape: f32[2,8], index: 0, kind: input, shape index: {}]   ;;  %s313_s1 = inlined_call_operand.vmem [shape: f32[8,6], index: 1, kind: input, shape index: {}]   ;;  %s314_s2 = inlined_call_operand.vmem [shape: f32[1,6], index: 2, kind: input, shape index: {}]   ;;  %s315_s3 = inlined_call_operand.vmem [shape: f32[6,128], index: 3, kind: input, shape index: {}]   ;;  %s316_s4 = inlined_call_operand.vmem [shape: f32[1,128], index: 4, kind: input, shape index: {}]   ;;  %s317_s5 = inlined_call_operand.hbm [shape: f32[2,128], index: 5, kind: output, shape index: {}]  }
   0x1   :  { %v22_v0 = vld [vmem:[%s313_s1] sm:$0xff]  ;;  %215 = vmatprep.subr.mxu0 %v252_v2  ;;  %217 = vmatprep.mubr.msk.f32.mxu0 %vm253_vm1, %v252_v2 }
   0x2   :  { %v21_v1 = vld [vmem:[%s312_s0] sm:$0x3] }
   0x3   :  { %10 = vsyncpa [#allocation3], 0  ;;  %216 = vmatpush3.msra.mxu0 %v22_v0  ;;  %220 = vmatprep.subr.mxu1 %v252_v2  ;;  %v105_v3 = vld [vmem:[%s315_s3] sm:$0x3f]  ;;  %vm117_vm2 = vcmask 1045504   ;;  %vm113_vm3 = vcmask 48128  }
   0x4   :  { %218 = vmatmul.mubr.msk.f32.vlgmr.msra.gmra.mrb[0].mxu0 %vm30_vm0, %v21_v1  ;;  %222 = vmatprep.mubr.msk.f32.mxu1 %vm253_vm1, %v252_v2  ;;  %v206_v4 = vld [vmem:[%s314_s2] ss:$0 sm:$0xff]  ;;  %s254_s26 = smov [#allocation2]  }
   0x5   :  { %221 = vmatpush3.msk.msra.mxu1 %vm117_vm2, %v105_v3  ;;  %v208_v9 = vld [vmem:[%s316_s4] ss:$0 sm:$0xff]  ;;  %s198_s27 = sshll.u32 %s254_s26, 4  ;;  %s199_s27 = int_to_ptr.vmem [resolvable:$true] %s198_s27 }
   0x6   :  { %s228_s3 = scalar_lea.vmem %s199_s27, 32  ;;  %p233_p1 = scmp.lt.s32.totalorder %s199_s27, %s199_s27 }
   0x7   :  { %p229_p0 = scmp.ne.s32.totalorder %s199_s27, %s228_s3  ;;  %p234_p2 = scmp.lt.s32.totalorder %s228_s3, %s228_s3 }
   0x9   :  { %p235_p3 = por %p234_p2, %p233_p1 }
   0xb   :  { %p236_p4 = pnand %p235_p3, %p229_p0 }
  0xd7   :  { %v100_v5 = vpop.f32.mrb[0].mxu0 }
  0xd8   :  { %v101_v6 = vadd.f32 %v206_v4, %v100_v5  ;;  %v219_v7 = vpop.f32.mrb[1].mxu0 }
  0xda   :  { %v104_v8 = vmax.f32 %v101_v6, 0.0 }
  0xdc   :  { %223 = vmatmul.mubr.msk.f32.vlgmr.msra.gmra.mrb[0].mxu1 %vm113_vm3, %v104_v8 }
 0x1af   :  { %v187_v10 = vpop.f32.mrb[0].mxu1 }
 0x1b0   :  { %v188_v11 = vadd.f32 %v208_v9, %v187_v10  ;;  %v224_v12 = vpop.f32.mrb[1].mxu1 }
 0x1b2   :  { %191 = vst [vmem:[#allocation2] sm:$0x3] %v188_v11 }
 0x1b3   :  { %239 = shalt.err (!%p236_p4)
}
 0x1b4   :  { %s240_s29 = scalar_lea.hbm %s317_s5, 32 }
 0x1b5   :  { %p241_p5 = scmp.ne.s32.totalorder %s317_s5, %s240_s29  ;;  %p244_p6 = scmp.lt.u32.totalorder %s240_s29, %s317_s5 }
 0x1b7   :  { %p246_p7 = pnand %p244_p6, %p241_p5 }
 0x1b9   :  { %249 = shalt.err (!%p246_p7)
}
 0x1ba   :  { %201 = dma.vmem_to_hbm [thread:$0]  %s199_s27, 32, %s317_s5, [#allocation3]  }
 0x1bb   :  { %250 = dma.done.wait [#allocation3], 32  }
 0x1bc   :  { %251 = vsyncadd [#allocation3], 4294967264 }
 0x1bd   :  { %205 = vsyncpa [#allocation3], 1 }

// kernel: tf_model_forward.2
= control target key start
LH: loop header
LB: loop body
LE: loop exit
PB: predicated region body
PF: predicated region fallthrough
CT: control target
= control target key end

     0   :  { %v10579_v0 = vmov 0   ;;  %v10580_v4 = vmov 0.0   ;;  %vm10581_vm0 = vmmov 0   ;;  %vm135_vm1 = vcmask 130048   ;;  %s12705_s0 = inlined_call_operand.vmem [shape: f32[16,1], index: 0, kind: input, shape index: {}]   ;;  %s12706_s5 = inlined_call_operand.vmem [shape: bf16[16,32], index: 5, kind: input, shape index: {}]   ;;  %s12707_s3 = inlined_call_operand.vmem [shape: f32[1,16], index: 3, kind: input, shape index: {}]   ;;  %s12708_s4 = inlined_call_operand.vmem [shape: f32[1,16], index: 4, kind: input, shape index: {}]   ;;  %s12709_s7 = inlined_call_operand.vmem [shape: bf16[8,32,8], index: 7, kind: input, shape index: {}]   ;;  %s12710_s8 = inlined_call_operand.vmem [shape: bf16[8,32,8], index: 8, kind: input, shape index: {}]   ;;  %s12711_s9 = inlined_call_operand.vmem [shape: bf16[8,32,8], index: 9, kind: input, shape index: {}]   ;;  %s12712_s6 = inlined_call_operand.vmem [shape: f32[1,32], index: 6, kind: input, shape index: {}]   ;;  %s12713_s1 = inlined_call_operand.vmem [shape: f32[16,32], index: 1, kind: input, shape index: {}]   ;;  %s12714_s11 = inlined_call_operand.vmem [shape: f32[8,1,8], index: 11, kind: input, shape index: {}]   ;;  %s12715_s10 = inlined_call_operand.vmem [shape: f32[8,1,8], index: 10, kind: input, shape index: {}]   ;;  %s12716_s12 = inlined_call_operand.vmem [shape: f32[8,1,8], index: 12, kind: input, shape index: {}]   ;;  %s12717_s2 = inlined_call_operand.vmem [shape: f32[8,8], index: 2, kind: input, shape index: {}]   ;;  %s12718_s13 = inlined_call_operand.vmem [shape: bf16[8,8,32], index: 13, kind: input, shape index: {}]   ;;  %s12719_s14 = inlined_call_operand.vmem [shape: f32[2,1,32], index: 14, kind: input, shape index: {}]   ;;  %s12720_s17 = inlined_call_operand.vmem [shape: bf16[2,32,2048], index: 17, kind: input, shape index: {}]   ;;  %s12721_s19 = inlined_call_operand.vmem [shape: bf16[2,2048,32], index: 19, kind: input, shape index: {}]   ;;  %s12722_s15 = inlined_call_operand.vmem [shape: f32[2,1,32], index: 15, kind: input, shape index: {}]   ;;  %s12723_s16 = inlined_call_operand.vmem [shape: f32[2,1,32], index: 16, kind: input, shape index: {}]   ;;  %s12724_s18 = inlined_call_operand.vmem [shape: f32[2,1,2048], index: 18, kind: input, shape index: {}]   ;;  %s12725_s20 = inlined_call_operand.vmem [shape: f32[2,1,32], index: 20, kind: input, shape index: {}]   ;;  %s12726_s21 = inlined_call_operand.vmem [shape: f32[2,1,32], index: 21, kind: input, shape index: {}]   ;;  %s12727_s22 = inlined_call_operand.vmem [shape: f32[2,1,32], index: 22, kind: input, shape index: {}]   ;;  %s12728_s23 = inlined_call_operand.vmem [shape: bf16[32,16], index: 23, kind: input, shape index: {}]   ;;  %s12729_s25 = inlined_call_operand.vmem [shape: bf16[16,128], index: 25, kind: input, shape index: {}]   ;;  %s12730_s24 = inlined_call_operand.vmem [shape: f32[1,16], index: 24, kind: input, shape index: {}]   ;;  %s12731_s26 = inlined_call_operand.vmem [shape: f32[1,128], index: 26, kind: input, shape index: {}]   ;;  %s12732_s27 = inlined_call_operand.vmem [shape: f32[16,128], index: 27, kind: output, shape index: {}]  }
   0x1   :  { %12742 = sst [smem:[#allocation2_spill]] %s12705_s0  ;;  %10189 = vset.pattern.permute.xlu0 %v10579_v0  ;;  %9734 = vmatprep.subr.bf16.mxu0 %v10580_v4  ;;  %vm209_vm2 = vcmask 261120   ;;  %vm390_vm3 = vcmask 64512   ;;  %vm510_vm4 = vcmask 1043456  }
   0x2   :  { %12743 = sst [smem:[#allocation3_spill]] %s12706_s5  ;;  %9740 = vmatprep.subr.bf16.mxu1 %v10580_v4  ;;  %9736 = vmatprep.mubr.msk.bf16.mxu0 %vm10581_vm0, %v10580_v4 }
   0x3   :  { %12744 = sst [smem:[#allocation4_spill]] %s12707_s3  ;;  %s12756_s0 = sld [smem:[#allocation3_spill]]  ;;  %9744 = vmatprep.mubr.msk.bf16.mxu1 %vm10581_vm0, %v10580_v4 }
   0x4   :  { %12745 = sst [smem:[#allocation5_spill]] %s12708_s4  ;;  %s12757_s4 = sld [smem:[#allocation4_spill]] }
   0x5   :  { %12746 = sst [smem:[#allocation6_spill]] %s12709_s7  ;;  %s12755_s7 = sld [smem:[#allocation2_spill]] }
   0x6   :  { %12747 = sst [smem:[#allocation7_spill]] %s12710_s8  ;;  %s12758_s3 = sld [smem:[#allocation5_spill]] }
   0x7   :  { %12748 = sst [smem:[#allocation8_spill]] %s12711_s9 }
   0x8   :  { %12749 = sst [smem:[#allocation9_spill]] %s12712_s6  ;;  %s12759_s6 = sld [smem:[#allocation6_spill]] }
   0x9   :  { %12750 = sst [smem:[#allocation10_spill]] %s12713_s1  ;;  %v10190_v3 = vld [vmem:[%s12756_s0] sm:$0xff]   ;;  %s12761_s9 = sld [smem:[#allocation9_spill]] }
   0xa   :  { %12751 = sst [smem:[#allocation11_spill]] %s12714_s11  ;;  %9735 = vmatpush3.bf16.msra.mxu0 %v10190_v3  ;;  %v8319_v5 = vld [vmem:[%s12757_s4] ss:$0 sm:$0xff]  ;;  %s12760_s11 = sld [smem:[#allocation7_spill]] }
   0xb   :  { %12752 = sst [smem:[#allocation12_spill]] %s12715_s10  ;;  %v87_v1 = vld [vmem:[%s12755_s7] sm:$0xff]  ;;  %v88_v2 = vld [vmem:[%s12755_s7 + $0x8] sm:$0xff]  ;;  %9748 = vmatprep.subr.bf16.mxu0 %v10580_v4  ;;  %s12762_s5 = sld [smem:[#allocation10_spill]] }
   0xc   :  { %12753 = sst [smem:[#allocation13_spill]] %s12716_s12  ;;  %92 = vperm.xlu0 %10189, %v87_v1   ;;  %v8320_v8 = vld [vmem:[%s12758_s3] ss:$0 sm:$0xff]  ;;  %s12763_s28 = sld [smem:[#allocation8_spill]] }
   0xd   :  { %12754 = sst [smem:[#allocation14_spill]] %s12732_s27  ;;  %s12766_s30 = sld [smem:[#allocation13_spill]] }
   0xe   :  { %v10191_v16 = vld [vmem:[%s12759_s6] sm:$0xff]   ;;  %v10193_v18 = vld [vmem:[%s12759_s6 + $0x8] sm:$0xff]  }
   0xf   :  { %9741 = vmatpush3.bf16.msra.mxu1 %v10191_v16  ;;  %v8321_v20 = vld [vmem:[%s12761_s9] ss:$0 sm:$0xff]  ;;  %s12764_s9 = sld [smem:[#allocation11_spill]] }
  0x10   :  { %97 = vperm.xlu0 %10189, %v88_v2   ;;  %v10192_v17 = vld [vmem:[%s12760_s11] sm:$0xff]   ;;  %9742 = vmatprep.subr.bf16.mxu1 %v10580_v4  ;;  %v10194_v19 = vld [vmem:[%s12760_s11 + $0x8] sm:$0xff]  }
  0x11   :  { %v180_v24 = vld [vmem:[%s12762_s5] sm:$0xff]  ;;  %v181_v26 = vld [vmem:[%s12762_s5 + $0x8] sm:$0xff]  ;;  %s12765_s5 = sld [smem:[#allocation12_spill]] }
  0x12   :  { %v10195_v31 = vld [vmem:[%s12763_s28] sm:$0xff]   ;;  %v10196_v33 = vld [vmem:[%s12763_s28 + $0x8] sm:$0xff]  }
  0x13   :  { %9743 = vmatpush3.bf16.msra.mxu1 %v10193_v18  ;;  %v8332_v51 = vld [vmem:[%s12766_s30] ss:$0 sm:$0xff] }
  0x14   :  { %9756 = vmatprep.subr.bf16.mxu1 %v10580_v4 }
  0x15   :  { %v8328_v34 = vld [vmem:[%s12764_s9] ss:$0 sm:$0xff] }
  0x17   :  { %v8324_v35 = vld [vmem:[%s12765_s5] ss:$0 sm:$0xff] }
  0x8b   :  { %v93_v6 = vpop.permute.xlu0 %92 }
  0x8c   :  { %v106_v7 = vmul.f32 %v8319_v5, %v93_v6 }
  0x8e   :  { %v115_v10 = vadd.f32 %v8320_v8, %v106_v7  ;;  %v10827_v7 = vld [vmem:[%s12717_s2] sm:$0xff] }
  0x8f   :  { %v98_v9 = vpop.permute.xlu0 %97 }
  0x90   :  { %v107_v11 = vmul.f32 %v8319_v5, %v98_v9  ;;  %v117_v13 = vmax.f32 %v115_v10, 0.0 }
  0x92   :  { %v116_v12 = vadd.f32 %v8320_v8, %v107_v11 }
  0x94   :  { %v118_v14 = vmax.f32 %v116_v12, 0.0 }
  0x96   :  { %v119_v15 = vpack.c.bf16 %v118_v14, %v117_v13 }
  0x98   :  { %9737 = vmatmul.mubr.msk.bf16.vlgmr.msra.gmra.mrb[0].mxu0 %vm135_vm1, %v119_v15 }
  0x99   :  { %9752 = vmatprep.mubr.msk.bf16.mxu0 %vm10581_vm0, %v10580_v4  ;;  %9749 = vmatpush3.bf16.msra.mxu0 %v10192_v17 }
  0x9a   :  { %9750 = vmatprep.subr.bf16.mxu0 %v10580_v4 }
  0x9d   :  { %9751 = vmatpush3.bf16.msra.mxu0 %v10194_v19 }
  0x9e   :  { %9764 = vmatprep.subr.bf16.mxu0 %v10580_v4 }
 0x16b   :  { %v173_v21 = vpop.f32.mrb[0].mxu0 }
 0x16c   :  { %v174_v22 = vadd.f32 %v8321_v20, %v173_v21  ;;  %v9738_v23 = vpop.f32.mrb[1].mxu0 }
 0x16d   :  { %v176_v25 = vpop.f32.mrb[2].mxu0 }
 0x16e   :  { %v177_v27 = vadd.f32 %v8321_v20, %v176_v25  ;;  %v9739_v28 = vpop.f32.mrb[3].mxu0  ;;  %v10773_v29 = vadd.f32 %v180_v24, %v174_v22 }
 0x170   :  { %v10775_v30 = vadd.f32 %v181_v26, %v177_v27 }
 0x172   :  { %v10782_v32 = vpack.c.bf16 %v10775_v30, %v10773_v29 }
 0x174   :  { %9745 = vmatmul.mubr.msk.bf16.vlgmr.msra.gmra.mrb[0].mxu1 %vm209_vm2, %v10782_v32  ;;  %9753 = vmatmul.mubr.msk.bf16.vlgmr.msra.gmra.mrb[4].mxu0 %vm209_vm2, %v10782_v32 }
 0x175   :  { %9757 = vmatpush3.bf16.msra.mxu1 %v10195_v31  ;;  %9760 = vmatprep.mubr.msk.bf16.mxu1 %vm10581_vm0, %v10580_v4 }
 0x176   :  { %9758 = vmatprep.subr.bf16.mxu1 %v10580_v4  ;;  %9766 = vmatprep.mubr.msk.bf16.mxu0 %vm10581_vm0, %v10580_v4 }
 0x179   :  { %9759 = vmatpush3.bf16.msra.mxu1 %v10196_v33 }
 0x17a   :  { %9770 = vmatprep.subr.bf16.mxu1 %v10580_v4 }
 0x17c   :  { %9761 = vmatmul.mubr.msk.bf16.vlgmr.msra.gmra.mrb[4].mxu1 %vm209_vm2, %v10782_v32 }
 0x17d   :  { %9772 = vmatprep.mubr.msk.bf16.mxu1 %vm10581_vm0, %v10580_v4 }
 0x247   :  { %v247_v36 = vpop.f32.mrb[0].mxu1  ;;  %v313_v37 = vpop.f32.mrb[4].mxu0 }
 0x248   :  { %v314_v38 = vadd.f32 %v8328_v34, %v313_v37  ;;  %v9746_v39 = vpop.f32.mrb[1].mxu1  ;;  %v9754_v40 = vpop.f32.mrb[5].mxu0  ;;  %v248_v43 = vadd.f32 %v8324_v35, %v247_v36 }
 0x249   :  { %v250_v41 = vpop.f32.mrb[2].mxu1  ;;  %v316_v42 = vpop.f32.mrb[6].mxu0  ;;  %v10198_v39 = vld [vmem:[%s12759_s6 + $0x10] sm:$0xff]   ;;  %v10199_v40 = vld [vmem:[%s12760_s11 + $0x18] sm:$0xff]  }
 0x24a   :  { %v386_v44 = vpack.c.bf16 %v314_v38, %v314_v38  ;;  %v317_v45 = vadd.f32 %v8328_v34, %v316_v42  ;;  %v9747_v46 = vpop.f32.mrb[3].mxu1  ;;  %v9755_v47 = vpop.f32.mrb[7].mxu0  ;;  %v251_v49 = vadd.f32 %v8324_v35, %v250_v41  ;;  %v254_v52 = vmul.f32 0.35355338, %v248_v43  ;;  %v10197_v35 = vld [vmem:[%s12760_s11 + $0x10] sm:$0xff]   ;;  %v10200_v42 = vld [vmem:[%s12759_s6 + $0x18] sm:$0xff]  }
 0x24b   :  { %v10201_v43 = vld [vmem:[%s12763_s28 + $0x10] sm:$0xff]  }
 0x24c   :  { %v395_v48 = vsel %vm390_vm3, %v386_v44, 0  ;;  %v387_v50 = vpack.c.bf16 %v317_v45, %v317_v45  ;;  %v255_v55 = vmul.f32 0.35355338, %v251_v49  ;;  %v384_v59 = vpack.c.bf16 %v254_v52, %v254_v52  ;;  %v10202_v44 = vld [vmem:[%s12763_s28 + $0x18] sm:$0xff]  }
 0x24d   :  { %9765 = vmatpush3.bf16.xpose.msra.mxu0 %v395_v48 }
 0x24e   :  { %v441_v53 = vsel %vm390_vm3, %v387_v50, 0  ;;  %9776 = vmatprep.subr.bf16.mxu0 %v10580_v4  ;;  %v385_v63 = vpack.c.bf16 %v255_v55, %v255_v55 }
 0x24f   :  { %v377_v54 = vpop.f32.mrb[4].mxu1  ;;  %9771 = vmatpush3.bf16.xpose.msra.mxu1 %v441_v53  ;;  %v8354_v53 = vld [vmem:[%s12764_s9 + $0x1] ss:$0 sm:$0xff] }
 0x250   :  { %v378_v56 = vadd.f32 %v8332_v51, %v377_v54  ;;  %v9762_v57 = vpop.f32.mrb[5].mxu1  ;;  %9782 = vmatprep.subr.bf16.mxu1 %v10580_v4 }
 0x251   :  { %v380_v58 = vpop.f32.mrb[6].mxu1 }
 0x252   :  { %v388_v60 = vpack.c.bf16 %v378_v56, %v378_v56  ;;  %v381_v61 = vadd.f32 %v8332_v51, %v380_v58  ;;  %v9763_v62 = vpop.f32.mrb[7].mxu1 }
 0x254   :  { %v512_v1 = vsel %vm510_vm4, %v388_v60, 0  ;;  %v389_v2 = vpack.c.bf16 %v381_v61, %v381_v61  ;;  %9767 = vmatmul.mubr.msk.bf16.vlgmr.msra.gmra.mrb[8].mxu0 %vm390_vm3, %v384_v59  ;;  %v8345_v59 = vld [vmem:[%s12765_s5 + $0x1] ss:$0 sm:$0xff] }
 0x255   :  { %9777 = vmatpush3.bf16.msra.mxu0 %v512_v1  ;;  %9778 = vmatprep.mubr.msk.bf16.mxu0 %vm10581_vm0, %v10580_v4 }
 0x256   :  { %v558_v3 = vsel %vm510_vm4, %v389_v2, 0  ;;  %9773 = vmatmul.mubr.msk.bf16.vlgmr.msra.gmra.mrb[8].mxu1 %vm390_vm3, %v385_v63  ;;  %9788 = vmatprep.subr.bf16.mxu0 %v10580_v4 }
 0x257   :  { %9783 = vmatpush3.bf16.msra.mxu1 %v558_v3  ;;  %9784 = vmatprep.mubr.msk.bf16.mxu1 %vm10581_vm0, %v10580_v4 }
 0x258   :  { %9796 = vmatprep.subr.bf16.mxu1 %v10580_v4 }
 0x327   :  { %v431_v5 = vpop.f32.mrb[8].mxu0 }
 0x328   :  { %v9768_v6 = vpop.f32.mrb[9].mxu0  ;;  %v432_v14 = vadd.f32 %v431_v5, %v10827_v7 }
 0x329   :  { %v434_v8 = vpop.f32.mrb[10].mxu0  ;;  %v477_v9 = vpop.f32.mrb[8].mxu1 }
 0x32a   :  { %v478_v10 = vadd.f32 %v477_v9, %v10827_v7  ;;  %v9769_v11 = vpop.f32.mrb[11].mxu0  ;;  %v9774_v12 = vpop.f32.mrb[9].mxu1  ;;  %v483_v17 = vsel %vm390_vm3, %v432_v14, -inf }
 0x32b   :  { %v480_v13 = vpop.f32.mrb[10].mxu1 }
 0x32c   :  { %v9775_v15 = vpop.f32.mrb[11].mxu1  ;;  %v486_v16 = vsel %vm390_vm3, %v478_v10, -inf  ;;  %v8363_v13 = vld [vmem:[%s12766_s30 + $0x1] ss:$0 sm:$0xff] }
 0x32d   :  { %487 = vmax.xlane.f32.xlu1 %v486_v16 }
 0x331   :  { %484 = vmax.xlane.f32.xlu1 %v483_v17 }
 0x3ba   :  { %v488_v18 = vpop.xlane.xlu1 %487 }
 0x3bb   :  { %v490_v19 = vsub.f32 %v478_v10, %v488_v18 }
 0x3bd   :  { %v493_v20 = vmul.f32 1.442695, %v490_v19 }
 0x3be   :  { %v485_v21 = vpop.xlane.xlu1 %484 }
 0x3bf   :  { %10498 = vpow2.f32 %v493_v20  ;;  %v489_v22 = vsub.f32 %v432_v14, %v485_v21 }
 0x3c1   :  { %v491_v23 = vmul.f32 1.442695, %v489_v22 }
 0x3c3   :  { %10500 = vpow2.f32 %v491_v23 }
 0x3c9   :  { %v10499_v24 = vpop.eup %10498 }
 0x3ca   :  { %v498_v25 = vsel %vm390_vm3, %v10499_v24, 0.0 }
 0x3cb   :  { %499 = vadd.xlane.f32.xlu0 %v498_v25 }
 0x3cd   :  { %v10501_v26 = vpop.eup %10500 }
 0x3ce   :  { %v495_v27 = vsel %vm390_vm3, %v10501_v26, 0.0 }
 0x3cf   :  { %496 = vadd.xlane.f32.xlu1 %v495_v27 }
 0x458   :  { %v500_v28 = vpop.xlane.xlu0 %499 }
 0x459   :  { %10502 = vrcp.f32 %v500_v28 }
 0x45c   :  { %v497_v31 = vpop.xlane.xlu1 %496 }
 0x45d   :  { %10504 = vrcp.f32 %v497_v31 }
 0x463   :  { %v10503_v33 = vpop.eup %10502 }
 0x464   :  { %v504_v34 = vmul.f32 %v10503_v33, %v10499_v24 }
 0x466   :  { %v506_v36 = vpack.c.bf16 %v504_v34, %v504_v34 }
 0x467   :  { %v10505_v37 = vpop.eup %10504 }
 0x468   :  { %v503_v38 = vmul.f32 %v10505_v37, %v10501_v26  ;;  %9785 = vmatmul.mubr.msk.bf16.vlgmr.msra.gmra.mrb[12].mxu1 %vm390_vm3, %v506_v36 }
 0x469   :  { %9797 = vmatpush3.bf16.msra.mxu1 %v10197_v35  ;;  %9800 = vmatprep.mubr.msk.bf16.mxu1 %vm10581_vm0, %v10580_v4 }
 0x46a   :  { %v505_v41 = vpack.c.bf16 %v503_v38, %v503_v38  ;;  %9798 = vmatprep.subr.bf16.mxu1 %v10580_v4 }
 0x46c   :  { %9779 = vmatmul.mubr.msk.bf16.vlgmr.msra.gmra.mrb[12].mxu0 %vm390_vm3, %v505_v41 }
 0x46d   :  { %9789 = vmatpush3.bf16.msra.mxu0 %v10198_v39  ;;  %9799 = vmatpush3.bf16.msra.mxu1 %v10199_v40 }
 0x46e   :  { %9790 = vmatprep.subr.bf16.mxu0 %v10580_v4  ;;  %9792 = vmatprep.mubr.msk.bf16.mxu0 %vm10581_vm0, %v10580_v4 }
 0x46f   :  { %9812 = vmatprep.subr.bf16.mxu1 %v10580_v4 }
 0x470   :  { %9801 = vmatmul.mubr.msk.bf16.vlgmr.msra.gmra.mrb[16].mxu1 %vm209_vm2, %v10782_v32 }
 0x471   :  { %9791 = vmatpush3.bf16.msra.mxu0 %v10200_v42  ;;  %9814 = vmatprep.mubr.msk.bf16.mxu1 %vm10581_vm0, %v10580_v4 }
 0x472   :  { %9804 = vmatprep.subr.bf16.mxu0 %v10580_v4 }
 0x474   :  { %9793 = vmatmul.mubr.msk.bf16.vlgmr.msra.gmra.mrb[16].mxu0 %vm209_vm2, %v10782_v32 }
 0x475   :  { %9805 = vmatpush3.bf16.msra.mxu0 %v10201_v43  ;;  %9808 = vmatprep.mubr.msk.bf16.mxu0 %vm10581_vm0, %v10580_v4 }
 0x476   :  { %9806 = vmatprep.subr.bf16.mxu0 %v10580_v4 }
 0x479   :  { %9807 = vmatpush3.bf16.msra.mxu0 %v10202_v44 }
 0x47a   :  { %9818 = vmatprep.subr.bf16.mxu0 %v10580_v4 }
 0x47c   :  { %9809 = vmatmul.mubr.msk.bf16.vlgmr.msra.gmra.mrb[20].mxu0 %vm209_vm2, %v10782_v32 }
 0x47d   :  { %9820 = vmatprep.mubr.msk.bf16.mxu0 %vm10581_vm0, %v10580_v4 }
 0x53b   :  { %v10877_v45 = vpop.f32.mrb[12].mxu1 }
 0x53c   :  { %v9786_v46 = vpop.f32.mrb[13].mxu1 }
 0x53d   :  { %v597_v47 = vpop.f32.mrb[14].mxu1 }
 0x53e   :  { %v9787_v48 = vpop.f32.mrb[15].mxu1 }
 0x53f   :  { %v10879_v49 = vpop.f32.mrb[12].mxu0 }
 0x540   :  { %v600_v50 = vpack.c.bf16 %v10877_v45, %v10879_v49  ;;  %v9780_v51 = vpop.f32.mrb[13].mxu0  ;;  %v8371_v45 = vld [vmem:[%s12718_s13 + $0x4] sm:$0xf] }
 0x541   :  { %v551_v52 = vpop.f32.mrb[14].mxu0  ;;  %v1023_v49 = vsel %vm510_vm4, %v8371_v45, 0 }
 0x542   :  { %v9781_v54 = vpop.f32.mrb[15].mxu0 }
 0x543   :  { %v729_v55 = vpop.f32.mrb[16].mxu1 }
 0x544   :  { %v730_v56 = vadd.f32 %v8354_v53, %v729_v55  ;;  %v9802_v57 = vpop.f32.mrb[17].mxu1 }
 0x545   :  { %v732_v58 = vpop.f32.mrb[18].mxu1 }
 0x546   :  { %v804_v60 = vpack.c.bf16 %v730_v56, %v730_v56  ;;  %v733_v61 = vadd.f32 %v8354_v53, %v732_v58  ;;  %v9803_v62 = vpop.f32.mrb[19].mxu1 }
 0x547   :  { %v661_v63 = vpop.f32.mrb[16].mxu0 }
 0x548   :  { %v812_v1 = vsel %vm390_vm3, %v804_v60, 0  ;;  %v805_v2 = vpack.c.bf16 %v733_v61, %v733_v61  ;;  %v662_v3 = vadd.f32 %v8345_v59, %v661_v63  ;;  %v9794_v5 = vpop.f32.mrb[17].mxu0  ;;  %v601_v60 = vld [vmem:[%s12718_s13] sm:$0xf] }
 0x549   :  { %v664_v6 = vpop.f32.mrb[18].mxu0  ;;  %9813 = vmatpush3.bf16.xpose.msra.mxu1 %v812_v1  ;;  %v1070_v63 = vsel %vm510_vm4, %v601_v60, 0  ;;  %v10203_v1 = vld [vmem:[%s12760_s11 + $0x20] sm:$0xff]  }
 0x54a   :  { %v858_v8 = vsel %vm390_vm3, %v805_v2, 0  ;;  %v668_v9 = vmul.f32 0.35355338, %v662_v3  ;;  %v665_v10 = vadd.f32 %v8345_v59, %v664_v6  ;;  %v9795_v11 = vpop.f32.mrb[19].mxu0  ;;  %9824 = vmatprep.subr.bf16.mxu1 %v10580_v4  ;;  %v10204_v2 = vld [vmem:[%s12760_s11 + $0x28] sm:$0xff]  }
 0x54b   :  { %9819 = vmatpush3.bf16.xpose.msra.mxu0 %v858_v8 }
 0x54c   :  { %v669_v12 = vmul.f32 0.35355338, %v665_v10  ;;  %9830 = vmatprep.subr.bf16.mxu0 %v10580_v4  ;;  %v802_v14 = vpack.c.bf16 %v668_v9, %v668_v9  ;;  %v10205_v9 = vld [vmem:[%s12759_s6 + $0x20] sm:$0xff]  }
 0x54e   :  { %v803_v16 = vpack.c.bf16 %v669_v12, %v669_v12 }
 0x54f   :  { %v795_v15 = vpop.f32.mrb[20].mxu0 }
 0x550   :  { %v796_v17 = vadd.f32 %v8363_v13, %v795_v15  ;;  %v9810_v18 = vpop.f32.mrb[21].mxu0  ;;  %9815 = vmatmul.mubr.msk.bf16.vlgmr.msra.gmra.mrb[20].mxu1 %vm390_vm3, %v802_v14  ;;  %v10206_v14 = vld [vmem:[%s12759_s6 + $0x28] sm:$0xff]  }
 0x551   :  { %v798_v19 = vpop.f32.mrb[22].mxu0  ;;  %9826 = vmatprep.mubr.msk.bf16.mxu1 %vm10581_vm0, %v10580_v4 }
 0x552   :  { %v806_v20 = vpack.c.bf16 %v796_v17, %v796_v17  ;;  %v799_v21 = vadd.f32 %v8363_v13, %v798_v19  ;;  %v9811_v22 = vpop.f32.mrb[23].mxu0  ;;  %9821 = vmatmul.mubr.msk.bf16.vlgmr.msra.gmra.mrb[24].mxu0 %vm390_vm3, %v803_v16  ;;  %v10207_v16 = vld [vmem:[%s12763_s28 + $0x20] sm:$0xff]  }
 0x553   :  { %9832 = vmatprep.mubr.msk.bf16.mxu0 %vm10581_vm0, %v10580_v4 }
 0x554   :  { %v928_v23 = vsel %vm510_vm4, %v806_v20, 0  ;;  %v807_v24 = vpack.c.bf16 %v799_v21, %v799_v21  ;;  %v10208_v20 = vld [vmem:[%s12763_s28 + $0x28] sm:$0xff]   ;;  %v8388_v21 = vld [vmem:[%s12764_s9 + $0x2] ss:$0 sm:$0xff] }
 0x555   :  { %9825 = vmatpush3.bf16.msra.mxu1 %v928_v23 }
 0x556   :  { %v974_v25 = vsel %vm510_vm4, %v807_v24, 0  ;;  %9836 = vmatprep.subr.bf16.mxu1 %v10580_v4 }
 0x557   :  { %9831 = vmatpush3.bf16.msra.mxu0 %v974_v25 }
 0x558   :  { %9842 = vmatprep.subr.bf16.mxu0 %v10580_v4 }
 0x623   :  { %v848_v26 = vpop.f32.mrb[20].mxu1 }
 0x624   :  { %v849_v27 = vadd.f32 %v848_v26, %v10827_v7  ;;  %v9816_v28 = vpop.f32.mrb[21].mxu1 }
 0x625   :  { %v851_v31 = vpop.f32.mrb[22].mxu1  ;;  %v894_v33 = vpop.f32.mrb[24].mxu0 }
 0x626   :  { %v895_v34 = vadd.f32 %v894_v33, %v10827_v7  ;;  %v9817_v35 = vpop.f32.mrb[23].mxu1  ;;  %v9822_v36 = vpop.f32.mrb[25].mxu0  ;;  %v900_v37 = vsel %vm390_vm3, %v849_v27, -inf }
 0x627   :  { %901 = vmax.xlane.f32.xlu1 %v900_v37  ;;  %v897_v38 = vpop.f32.mrb[26].mxu0 }
 0x628   :  { %v9823_v39 = vpop.f32.mrb[27].mxu0  ;;  %v903_v40 = vsel %vm390_vm3, %v895_v34, -inf }
 0x62b   :  { %904 = vmax.xlane.f32.xlu1 %v903_v40 }
 0x6b4   :  { %v902_v41 = vpop.xlane.xlu1 %901 }
 0x6b5   :  { %v906_v42 = vsub.f32 %v849_v27, %v902_v41  ;;  %v8379_v41 = vld [vmem:[%s12765_s5 + $0x2] ss:$0 sm:$0xff] }
 0x6b7   :  { %v908_v43 = vmul.f32 1.442695, %v906_v42 }
 0x6b8   :  { %v905_v44 = vpop.xlane.xlu1 %904 }
 0x6b9   :  { %10506 = vpow2.f32 %v908_v43  ;;  %v907_v46 = vsub.f32 %v895_v34, %v905_v44 }
 0x6bb   :  { %v910_v47 = vmul.f32 1.442695, %v907_v46 }
 0x6bd   :  { %10508 = vpow2.f32 %v910_v47 }
 0x6c3   :  { %v10507_v48 = vpop.eup %10506 }
 0x6c4   :  { %v912_v51 = vsel %vm390_vm3, %v10507_v48, 0.0 }
 0x6c5   :  { %913 = vadd.xlane.f32.xlu1 %v912_v51 }
 0x6c7   :  { %v10509_v52 = vpop.eup %10508 }
 0x6c8   :  { %v915_v53 = vsel %vm390_vm3, %v10509_v52, 0.0 }
 0x6c9   :  { %916 = vadd.xlane.f32.xlu1 %v915_v53 }
 0x752   :  { %v914_v54 = vpop.xlane.xlu1 %913 }
 0x753   :  { %10510 = vrcp.f32 %v914_v54  ;;  %v8397_v54 = vld [vmem:[%s12766_s30 + $0x2] ss:$0 sm:$0xff] }
 0x756   :  { %v917_v55 = vpop.xlane.xlu1 %916 }
 0x757   :  { %10512 = vrcp.f32 %v917_v55 }
 0x75d   :  { %v10511_v56 = vpop.eup %10510 }
 0x75e   :  { %v920_v57 = vmul.f32 %v10511_v56, %v10507_v48 }
 0x760   :  { %v922_v58 = vpack.c.bf16 %v920_v57, %v920_v57 }
 0x761   :  { %v10513_v59 = vpop.eup %10512 }
 0x762   :  { %v921_v61 = vmul.f32 %v10513_v59, %v10509_v52  ;;  %9827 = vmatmul.mubr.msk.bf16.vlgmr.msra.gmra.mrb[24].mxu1 %vm390_vm3, %v922_v58 }
 0x763   :  { %9838 = vmatprep.mubr.msk.bf16.mxu1 %vm10581_vm0, %v10580_v4  ;;  %9837 = vmatpush3.bf16.msra.mxu1 %v1023_v49 }
 0x764   :  { %v923_v62 = vpack.c.bf16 %v921_v61, %v921_v61  ;;  %9848 = vmatprep.subr.bf16.mxu1 %v10580_v4 }
 0x766   :  { %9833 = vmatmul.mubr.msk.bf16.vlgmr.msra.gmra.mrb[28].mxu0 %vm390_vm3, %v923_v62 }
 0x767   :  { %9843 = vmatpush3.bf16.msra.mxu0 %v1070_v63  ;;  %9844 = vmatprep.mubr.msk.bf16.mxu0 %vm10581_vm0, %v10580_v4 }
 0x768   :  { %9856 = vmatprep.subr.bf16.mxu0 %v10580_v4 }
 0x76e   :  { %9845 = vmatmul.mubr.msk.bf16.vlgmr.msra.gmra.mrb[32].mxu0 %vm390_vm3, %v600_v50 }
 0x76f   :  { %9857 = vmatpush3.bf16.msra.mxu0 %v10203_v1  ;;  %9860 = vmatprep.mubr.msk.bf16.mxu0 %vm10581_vm0, %v10580_v4 }
 0x770   :  { %9858 = vmatprep.subr.bf16.mxu0 %v10580_v4 }
 0x773   :  { %9859 = vmatpush3.bf16.msra.mxu0 %v10204_v2 }
 0x774   :  { %9872 = vmatprep.subr.bf16.mxu0 %v10580_v4 }
 0x776   :  { %9861 = vmatmul.mubr.msk.bf16.vlgmr.msra.gmra.mrb[36].mxu0 %vm209_vm2, %v10782_v32 }
 0x777   :  { %9874 = vmatprep.mubr.msk.bf16.mxu0 %vm10581_vm0, %v10580_v4 }
 0x835   :  { %v964_v50 = vpop.f32.mrb[24].mxu1 }
 0x836   :  { %v9828_v3 = vpop.f32.mrb[25].mxu1 }
 0x837   :  { %v967_v5 = vpop.f32.mrb[26].mxu1 }
 0x838   :  { %v9829_v6 = vpop.f32.mrb[27].mxu1 }
 0x839   :  { %v1010_v8 = vpop.f32.mrb[28].mxu0 }
 0x83a   :  { %v1016_v10 = vpack.c.bf16 %v1010_v8, %v964_v50  ;;  %v9834_v11 = vpop.f32.mrb[29].mxu0 }
 0x83b   :  { %v1013_v12 = vpop.f32.mrb[30].mxu0 }
 0x83c   :  { %v9835_v13 = vpop.f32.mrb[31].mxu0  ;;  %9839 = vmatmul.mubr.msk.bf16.vlgmr.msra.gmra.mrb[28].mxu1 %vm390_vm3, %v1016_v10 }
 0x83d   :  { %9849 = vmatpush3.bf16.msra.mxu1 %v10205_v9  ;;  %9852 = vmatprep.mubr.msk.bf16.mxu1 %vm10581_vm0, %v10580_v4 }
 0x83e   :  { %9850 = vmatprep.subr.bf16.mxu1 %v10580_v4 }
 0x841   :  { %9851 = vmatpush3.bf16.msra.mxu1 %v10206_v14  ;;  %v1106_v15 = vpop.f32.mrb[32].mxu0 }
 0x842   :  { %v9846_v17 = vpop.f32.mrb[33].mxu0  ;;  %9864 = vmatprep.subr.bf16.mxu1 %v10580_v4 }
 0x843   :  { %v1109_v18 = vpop.f32.mrb[34].mxu0 }
 0x844   :  { %v9847_v19 = vpop.f32.mrb[35].mxu0  ;;  %9853 = vmatmul.mubr.msk.bf16.vlgmr.msra.gmra.mrb[32].mxu1 %vm209_vm2, %v10782_v32 }
 0x845   :  { %9865 = vmatpush3.bf16.msra.mxu1 %v10207_v16  ;;  %9868 = vmatprep.mubr.msk.bf16.mxu1 %vm10581_vm0, %v10580_v4 }
 0x846   :  { %9866 = vmatprep.subr.bf16.mxu1 %v10580_v4 }
 0x849   :  { %9867 = vmatpush3.bf16.msra.mxu1 %v10208_v20  ;;  %v1240_v22 = vpop.f32.mrb[36].mxu0 }
 0x84a   :  { %v1241_v23 = vadd.f32 %v8388_v21, %v1240_v22  ;;  %v9862_v24 = vpop.f32.mrb[37].mxu0  ;;  %9878 = vmatprep.subr.bf16.mxu1 %v10580_v4 }
 0x84b   :  { %v1243_v25 = vpop.f32.mrb[38].mxu0 }
 0x84c   :  { %v1315_v26 = vpack.c.bf16 %v1241_v23, %v1241_v23  ;;  %v1244_v27 = vadd.f32 %v8388_v21, %v1243_v25  ;;  %v9863_v28 = vpop.f32.mrb[39].mxu0  ;;  %9869 = vmatmul.mubr.msk.bf16.vlgmr.msra.gmra.mrb[36].mxu1 %vm209_vm2, %v10782_v32 }
 0x84d   :  { %9880 = vmatprep.mubr.msk.bf16.mxu1 %vm10581_vm0, %v10580_v4 }
 0x84e   :  { %v1323_v31 = vsel %vm390_vm3, %v1315_v26, 0  ;;  %v1316_v33 = vpack.c.bf16 %v1244_v27, %v1244_v27 }
 0x84f   :  { %9873 = vmatpush3.bf16.xpose.msra.mxu0 %v1323_v31 }
 0x850   :  { %v1369_v34 = vsel %vm390_vm3, %v1316_v33, 0  ;;  %9884 = vmatprep.subr.bf16.mxu0 %v10580_v4 }
 0x852   :  { %9879 = vmatpush3.bf16.xpose.msra.mxu1 %v1369_v34  ;;  %v10209_v34 = vld [vmem:[%s12759_s6 + $0x30] sm:$0xff]  }
 0x853   :  { %9890 = vmatprep.subr.bf16.mxu1 %v10580_v4 }
 0x90f   :  { %v1059_v35 = vpop.f32.mrb[28].mxu1 }
 0x910   :  { %v10980_v36 = vadd.f32 %v1106_v15, %v1059_v35  ;;  %v9840_v37 = vpop.f32.mrb[29].mxu1 }
 0x911   :  { %v1062_v38 = vpop.f32.mrb[30].mxu1  ;;  %v10210_v37 = vld [vmem:[%s12759_s6 + $0x38] sm:$0xff]  }
 0x912   :  { %v10982_v39 = vadd.f32 %v1109_v18, %v1062_v38  ;;  %v9841_v40 = vpop.f32.mrb[31].mxu1  ;;  %v10211_v38 = vld [vmem:[%s12763_s28 + $0x30] sm:$0xff]  }
 0x913   :  { %v10212_v40 = vld [vmem:[%s12763_s28 + $0x38] sm:$0xff]  }
 0x917   :  { %v1172_v42 = vpop.f32.mrb[32].mxu1 }
 0x918   :  { %v1173_v43 = vadd.f32 %v8379_v41, %v1172_v42  ;;  %v9854_v44 = vpop.f32.mrb[33].mxu1 }
 0x919   :  { %v1175_v46 = vpop.f32.mrb[34].mxu1 }
 0x91a   :  { %v1179_v47 = vmul.f32 0.35355338, %v1173_v43  ;;  %v1176_v48 = vadd.f32 %v8379_v41, %v1175_v46  ;;  %v9855_v51 = vpop.f32.mrb[35].mxu1  ;;  %v8405_v41 = vld [vmem:[%s12718_s13 + $0x8] sm:$0xf] }
 0x91b   :  { %v1534_v42 = vsel %vm510_vm4, %v8405_v41, 0  ;;  %v10213_v51 = vld [vmem:[%s12760_s11 + $0x30] sm:$0xff]  }
 0x91c   :  { %v1313_v52 = vpack.c.bf16 %v1179_v47, %v1179_v47  ;;  %v1180_v53 = vmul.f32 0.35355338, %v1176_v48 }
 0x91e   :  { %v1314_v55 = vpack.c.bf16 %v1180_v53, %v1180_v53  ;;  %9875 = vmatmul.mubr.msk.bf16.vlgmr.msra.gmra.mrb[40].mxu0 %vm390_vm3, %v1313_v52 }
 0x91f   :  { %v1306_v56 = vpop.f32.mrb[36].mxu1  ;;  %9886 = vmatprep.mubr.msk.bf16.mxu0 %vm10581_vm0, %v10580_v4 }
 0x920   :  { %v1307_v57 = vadd.f32 %v8397_v54, %v1306_v56  ;;  %v9870_v58 = vpop.f32.mrb[37].mxu1  ;;  %9881 = vmatmul.mubr.msk.bf16.vlgmr.msra.gmra.mrb[40].mxu1 %vm390_vm3, %v1314_v55  ;;  %v10214_v56 = vld [vmem:[%s12760_s11 + $0x38] sm:$0xff]  }
 0x921   :  { %v1309_v59 = vpop.f32.mrb[38].mxu1  ;;  %9892 = vmatprep.mubr.msk.bf16.mxu1 %vm10581_vm0, %v10580_v4 }
 0x922   :  { %v1317_v60 = vpack.c.bf16 %v1307_v57, %v1307_v57  ;;  %v1310_v61 = vadd.f32 %v8397_v54, %v1309_v59  ;;  %v9871_v62 = vpop.f32.mrb[39].mxu1 }
 0x924   :  { %v1439_v63 = vsel %vm510_vm4, %v1317_v60, 0  ;;  %v1318_v1 = vpack.c.bf16 %v1310_v61, %v1310_v61 }
 0x925   :  { %9885 = vmatpush3.bf16.msra.mxu0 %v1439_v63 }
 0x926   :  { %v1485_v2 = vsel %vm510_vm4, %v1318_v1, 0  ;;  %9896 = vmatprep.subr.bf16.mxu0 %v10580_v4 }
 0x927   :  { %9891 = vmatpush3.bf16.msra.mxu1 %v1485_v2 }
 0x928   :  { %9902 = vmatprep.subr.bf16.mxu1 %v10580_v4 }
 0x9f1   :  { %v1359_v45 = vpop.f32.mrb[40].mxu0 }
 0x9f2   :  { %v1360_v49 = vadd.f32 %v1359_v45, %v10827_v7  ;;  %v9876_v50 = vpop.f32.mrb[41].mxu0 }
 0x9f3   :  { %v1362_v3 = vpop.f32.mrb[42].mxu0  ;;  %v1405_v5 = vpop.f32.mrb[40].mxu1 }
 0x9f4   :  { %v1406_v6 = vadd.f32 %v1405_v5, %v10827_v7  ;;  %v9877_v8 = vpop.f32.mrb[43].mxu0  ;;  %v9882_v9 = vpop.f32.mrb[41].mxu1  ;;  %v1411_v10 = vsel %vm390_vm3, %v1360_v49, -inf }
 0x9f5   :  { %v1408_v11 = vpop.f32.mrb[42].mxu1  ;;  %1412 = vmax.xlane.f32.xlu1 %v1411_v10 }
 0x9f6   :  { %v9883_v12 = vpop.f32.mrb[43].mxu1  ;;  %v1414_v13 = vsel %vm390_vm3, %v1406_v6, -inf }
 0x9f9   :  { %1415 = vmax.xlane.f32.xlu1 %v1414_v13 }
 0xa82   :  { %v1413_v14 = vpop.xlane.xlu1 %1412 }
 0xa83   :  { %v1417_v15 = vsub.f32 %v1360_v49, %v1413_v14 }
 0xa85   :  { %v1419_v16 = vmul.f32 1.442695, %v1417_v15 }
 0xa86   :  { %v1416_v17 = vpop.xlane.xlu1 %1415 }
 0xa87   :  { %10514 = vpow2.f32 %v1419_v16  ;;  %v1418_v18 = vsub.f32 %v1406_v6, %v1416_v17  ;;  %v8412_v6 = vld [vmem:[%s12765_s5 + $0x3] ss:$0 sm:$0xff] }
 0xa89   :  { %v1421_v19 = vmul.f32 1.442695, %v1418_v18 }
 0xa8b   :  { %10516 = vpow2.f32 %v1421_v19 }
 0xa91   :  { %v10515_v20 = vpop.eup %10514 }
 0xa92   :  { %v1423_v21 = vsel %vm390_vm3, %v10515_v20, 0.0 }
 0xa93   :  { %1424 = vadd.xlane.f32.xlu1 %v1423_v21 }
 0xa95   :  { %v10517_v22 = vpop.eup %10516 }
 0xa96   :  { %v1426_v23 = vsel %vm390_vm3, %v10517_v22, 0.0 }
 0xa97   :  { %1427 = vadd.xlane.f32.xlu0 %v1426_v23 }
 0xb20   :  { %v1425_v24 = vpop.xlane.xlu1 %1424 }
 0xb21   :  { %10518 = vrcp.f32 %v1425_v24 }
 0xb24   :  { %v1428_v25 = vpop.xlane.xlu0 %1427 }
 0xb25   :  { %10520 = vrcp.f32 %v1428_v25 }
 0xb2b   :  { %v10519_v26 = vpop.eup %10518 }
 0xb2c   :  { %v1431_v27 = vmul.f32 %v10519_v26, %v10515_v20 }
 0xb2e   :  { %v1433_v28 = vpack.c.bf16 %v1431_v27, %v1431_v27 }
 0xb2f   :  { %v10521_v31 = vpop.eup %10520 }
 0xb30   :  { %v1432_v33 = vmul.f32 %v10521_v31, %v10517_v22  ;;  %9887 = vmatmul.mubr.msk.bf16.vlgmr.msra.gmra.mrb[44].mxu0 %vm390_vm3, %v1433_v28 }
 0xb31   :  { %9898 = vmatprep.mubr.msk.bf16.mxu0 %vm10581_vm0, %v10580_v4  ;;  %9897 = vmatpush3.bf16.msra.mxu0 %v1534_v42 }
 0xb32   :  { %v1434_v35 = vpack.c.bf16 %v1432_v33, %v1432_v33  ;;  %9910 = vmatprep.subr.bf16.mxu0 %v10580_v4 }
 0xb34   :  { %9893 = vmatmul.mubr.msk.bf16.vlgmr.msra.gmra.mrb[44].mxu1 %vm390_vm3, %v1434_v35 }
 0xb35   :  { %9903 = vmatpush3.bf16.msra.mxu1 %v10209_v34  ;;  %9906 = vmatprep.mubr.msk.bf16.mxu1 %vm10581_vm0, %v10580_v4 }
 0xb36   :  { %9904 = vmatprep.subr.bf16.mxu1 %v10580_v4 }
 0xb39   :  { %9905 = vmatpush3.bf16.msra.mxu1 %v10210_v37 }
 0xb3a   :  { %9918 = vmatprep.subr.bf16.mxu1 %v10580_v4 }
 0xb3c   :  { %9907 = vmatmul.mubr.msk.bf16.vlgmr.msra.gmra.mrb[48].mxu1 %vm209_vm2, %v10782_v32 }
 0xb3d   :  { %9919 = vmatpush3.bf16.msra.mxu1 %v10211_v38  ;;  %9922 = vmatprep.mubr.msk.bf16.mxu1 %vm10581_vm0, %v10580_v4 }
 0xb3e   :  { %9920 = vmatprep.subr.bf16.mxu1 %v10580_v4 }
 0xb41   :  { %9921 = vmatpush3.bf16.msra.mxu1 %v10212_v40 }
 0xb42   :  { %9932 = vmatprep.subr.bf16.mxu1 %v10580_v4 }
 0xb44   :  { %9923 = vmatmul.mubr.msk.bf16.vlgmr.msra.gmra.mrb[52].mxu1 %vm209_vm2, %v10782_v32 }
 0xb45   :  { %9934 = vmatprep.mubr.msk.bf16.mxu1 %vm10581_vm0, %v10580_v4 }
 0xc03   :  { %v1475_v43 = vpop.f32.mrb[44].mxu0 }
 0xc04   :  { %v9888_v44 = vpop.f32.mrb[45].mxu0 }
 0xc05   :  { %v1478_v46 = vpop.f32.mrb[46].mxu0 }
 0xc06   :  { %v9889_v47 = vpop.f32.mrb[47].mxu0 }
 0xc07   :  { %v1521_v48 = vpop.f32.mrb[44].mxu1 }
 0xc08   :  { %v1527_v52 = vpack.c.bf16 %v1521_v48, %v1475_v43  ;;  %v9894_v53 = vpop.f32.mrb[45].mxu1 }
 0xc09   :  { %v1524_v54 = vpop.f32.mrb[46].mxu1 }
 0xc0a   :  { %v9895_v55 = vpop.f32.mrb[47].mxu1  ;;  %9899 = vmatmul.mubr.msk.bf16.vlgmr.msra.gmra.mrb[48].mxu0 %vm390_vm3, %v1527_v52 }
 0xc0b   :  { %9911 = vmatpush3.bf16.msra.mxu0 %v10213_v51  ;;  %9914 = vmatprep.mubr.msk.bf16.mxu0 %vm10581_vm0, %v10580_v4 }
 0xc0c   :  { %9912 = vmatprep.subr.bf16.mxu0 %v10580_v4 }
 0xc0f   :  { %v1638_v57 = vpop.f32.mrb[48].mxu1  ;;  %9913 = vmatpush3.bf16.msra.mxu0 %v10214_v56 }
 0xc10   :  { %v9908_v58 = vpop.f32.mrb[49].mxu1  ;;  %9926 = vmatprep.subr.bf16.mxu0 %v10580_v4  ;;  %v1639_v12 = vadd.f32 %v8412_v6, %v1638_v57 }
 0xc11   :  { %v1641_v59 = vpop.f32.mrb[50].mxu1 }
 0xc12   :  { %v9909_v60 = vpop.f32.mrb[51].mxu1  ;;  %9915 = vmatmul.mubr.msk.bf16.vlgmr.msra.gmra.mrb[52].mxu0 %vm209_vm2, %v10782_v32  ;;  %v8421_v32 = vld [vmem:[%s12764_s9 + $0x3] ss:$0 sm:$0xff]  ;;  %v1642_v15 = vadd.f32 %v8412_v6, %v1641_v59  ;;  %v1645_v19 = vmul.f32 0.35355338, %v1639_v12 }
 0xc13   :  { %9928 = vmatprep.mubr.msk.bf16.mxu0 %vm10581_vm0, %v10580_v4 }
 0xc14   :  { %v1646_v22 = vmul.f32 0.35355338, %v1642_v15  ;;  %v1779_v24 = vpack.c.bf16 %v1645_v19, %v1645_v19 }
 0xc16   :  { %v1780_v26 = vpack.c.bf16 %v1646_v22, %v1646_v22 }
 0xc17   :  { %v1772_v61 = vpop.f32.mrb[52].mxu1 }
 0xc18   :  { %v9924_v62 = vpop.f32.mrb[53].mxu1 }
 0xc19   :  { %v1775_v63 = vpop.f32.mrb[54].mxu1 }
 0xc1a   :  { %v9925_v1 = vpop.f32.mrb[55].mxu1 }
 0xcdd   :  { %v1570_v2 = vpop.f32.mrb[48].mxu0 }
 0xcde   :  { %v11057_v45 = vadd.f32 %v1570_v2, %v10980_v36  ;;  %v9900_v49 = vpop.f32.mrb[49].mxu0  ;;  %v8430_v36 = vld [vmem:[%s12766_s30 + $0x3] ss:$0 sm:$0xff] }
 0xcdf   :  { %v1573_v50 = vpop.f32.mrb[50].mxu0  ;;  %v1773_v16 = vadd.f32 %v8430_v36, %v1772_v61  ;;  %v1776_v20 = vadd.f32 %v8430_v36, %v1775_v63  ;;  %v8438_v61 = vld [vmem:[%s12718_s13 + $0xc] sm:$0xf] }
 0xce0   :  { %v11060_v3 = vadd.f32 %v1573_v50, %v10982_v39  ;;  %v9901_v5 = vpop.f32.mrb[51].mxu0  ;;  %v2000_v49 = vsel %vm510_vm4, %v8438_v61, 0 }
 0xce1   :  { %v1783_v23 = vpack.c.bf16 %v1773_v16, %v1773_v16  ;;  %v1784_v25 = vpack.c.bf16 %v1776_v20, %v1776_v20 }
 0xce3   :  { %v1905_v27 = vsel %vm510_vm4, %v1783_v23, 0  ;;  %v1951_v28 = vsel %vm510_vm4, %v1784_v25, 0 }
 0xce5   :  { %v1706_v8 = vpop.f32.mrb[52].mxu0 }
 0xce6   :  { %v1707_v9 = vadd.f32 %v8421_v32, %v1706_v8  ;;  %v9916_v10 = vpop.f32.mrb[53].mxu0 }
 0xce7   :  { %v1709_v11 = vpop.f32.mrb[54].mxu0 }
 0xce8   :  { %v1781_v39 = vpack.c.bf16 %v1707_v9, %v1707_v9  ;;  %v1710_v13 = vadd.f32 %v8421_v32, %v1709_v11  ;;  %v9917_v14 = vpop.f32.mrb[55].mxu0 }
 0xcea   :  { %v1789_v17 = vsel %vm390_vm3, %v1781_v39, 0  ;;  %v1782_v18 = vpack.c.bf16 %v1710_v13, %v1710_v13  ;;  %v8440_v13 = vld [vmem:[%s12719_s14] ss:$0 sm:$0xff] }
 0xceb   :  { %9927 = vmatpush3.bf16.xpose.msra.mxu0 %v1789_v17 }
 0xcec   :  { %v1835_v21 = vsel %vm390_vm3, %v1782_v18, 0  ;;  %9938 = vmatprep.subr.bf16.mxu0 %v10580_v4 }
 0xced   :  { %9933 = vmatpush3.bf16.xpose.msra.mxu1 %v1835_v21 }
 0xcee   :  { %9944 = vmatprep.subr.bf16.mxu1 %v10580_v4 }
 0xcf2   :  { %9929 = vmatmul.mubr.msk.bf16.vlgmr.msra.gmra.mrb[56].mxu0 %vm390_vm3, %v1779_v24 }
 0xcf3   :  { %9939 = vmatpush3.bf16.msra.mxu0 %v1905_v27  ;;  %9940 = vmatprep.mubr.msk.bf16.mxu0 %vm10581_vm0, %v10580_v4 }
 0xcf4   :  { %9935 = vmatmul.mubr.msk.bf16.vlgmr.msra.gmra.mrb[56].mxu1 %vm390_vm3, %v1780_v26  ;;  %9950 = vmatprep.subr.bf16.mxu0 %v10580_v4 }
 0xcf5   :  { %9945 = vmatpush3.bf16.msra.mxu1 %v1951_v28  ;;  %9946 = vmatprep.mubr.msk.bf16.mxu1 %vm10581_vm0, %v10580_v4 }
 0xdc5   :  { %v1825_v31 = vpop.f32.mrb[56].mxu0 }
 0xdc6   :  { %v1826_v33 = vadd.f32 %v1825_v31, %v10827_v7  ;;  %v9930_v34 = vpop.f32.mrb[57].mxu0 }
 0xdc7   :  { %v1828_v35 = vpop.f32.mrb[58].mxu0  ;;  %v1871_v37 = vpop.f32.mrb[56].mxu1 }
 0xdc8   :  { %v1872_v38 = vadd.f32 %v1871_v37, %v10827_v7  ;;  %v9931_v40 = vpop.f32.mrb[59].mxu0  ;;  %v9936_v41 = vpop.f32.mrb[57].mxu1  ;;  %v1877_v42 = vsel %vm390_vm3, %v1826_v33, -inf  ;;  %v2110_v35 = vld [vmem:[%s12720_s17 + $0x40] sm:$0xff]  ;;  %v2103_v37 = vld [vmem:[%s12720_s17 + $0x8] sm:$0xff] }
 0xdc9   :  { %v1874_v43 = vpop.f32.mrb[58].mxu1  ;;  %1878 = vmax.xlane.f32.xlu1 %v1877_v42  ;;  %v2111_v40 = vld [vmem:[%s12720_s17 + $0x48] sm:$0xff] }
 0xdca   :  { %v9937_v44 = vpop.f32.mrb[59].mxu1  ;;  %v1880_v46 = vsel %vm390_vm3, %v1872_v38, -inf  ;;  %v8445_v42 = vcombine.low %v2103_v37, %v2111_v40  ;;  %v8446_v43 = vcombine.high %v2103_v37, %v2111_v40  ;;  %v2117_v37 = vld [vmem:[%s12720_s17 + $0x78] sm:$0xff] }
 0xdcb   :  { %1881 = vmax.xlane.f32.xlu0 %v1880_v46  ;;  %v2118_v44 = vld [vmem:[%s12720_s17 + $0x80] sm:$0xff] }
 0xdcc   :  { %v2126_v46 = vld [vmem:[%s12720_s17 + $0xc0] sm:$0xff] }
 0xe56   :  { %v1879_v47 = vpop.xlane.xlu1 %1878 }
 0xe57   :  { %v1883_v48 = vsub.f32 %v1826_v33, %v1879_v47  ;;  %v2119_v47 = vld [vmem:[%s12720_s17 + $0x88] sm:$0xff] }
 0xe58   :  { %v1882_v51 = vpop.xlane.xlu0 %1881 }
 0xe59   :  { %v1885_v52 = vmul.f32 1.442695, %v1883_v48  ;;  %v1884_v53 = vsub.f32 %v1872_v38, %v1882_v51  ;;  %v8460_v48 = vcombine.high %v2118_v44, %v2126_v46  ;;  %v2127_v51 = vld [vmem:[%s12720_s17 + $0xc8] sm:$0xff] }
 0xe5b   :  { %10522 = vpow2.f32 %v1885_v52  ;;  %v1887_v54 = vmul.f32 1.442695, %v1884_v53  ;;  %v8459_v52 = vcombine.low %v2118_v44, %v2126_v46  ;;  %v8461_v53 = vcombine.low %v2119_v47, %v2127_v51  ;;  %v2132_v44 = vld [vmem:[%s12720_s17 + $0xf0] sm:$0xff]  ;;  %v2125_v46 = vld [vmem:[%s12720_s17 + $0xb8] sm:$0xff] }
 0xe5d   :  { %10524 = vpow2.f32 %v1887_v54  ;;  %v8462_v54 = vcombine.high %v2119_v47, %v2127_v51  ;;  %v2133_v47 = vld [vmem:[%s12720_s17 + $0xf8] sm:$0xff] }
 0xe65   :  { %v10523_v55 = vpop.eup %10522 }
 0xe66   :  { %v1889_v7 = vsel %vm390_vm3, %v10523_v55, 0.0 }
 0xe67   :  { %v10525_v56 = vpop.eup %10524  ;;  %1890 = vadd.xlane.f32.xlu1 %v1889_v7  ;;  %v2112_v7 = vld [vmem:[%s12720_s17 + $0x50] sm:$0xff] }
 0xe68   :  { %v1892_v57 = vsel %vm390_vm3, %v10525_v56, 0.0 }
 0xe69   :  { %1893 = vadd.xlane.f32.xlu0 %v1892_v57 }
 0xef4   :  { %v1891_v58 = vpop.xlane.xlu1 %1890 }
 0xef5   :  { %10526 = vrcp.f32 %v1891_v58  ;;  %v2113_v58 = vld [vmem:[%s12720_s17 + $0x58] sm:$0xff] }
 0xef6   :  { %v1894_v59 = vpop.xlane.xlu0 %1893 }
 0xef7   :  { %10528 = vrcp.f32 %v1894_v59 }
 0xeff   :  { %v10527_v60 = vpop.eup %10526 }
 0xf00   :  { %v1897_v62 = vmul.f32 %v10527_v60, %v10523_v55  ;;  %v2104_v55 = vld [vmem:[%s12720_s17 + $0x10] sm:$0xff] }
 0xf01   :  { %v10529_v63 = vpop.eup %10528  ;;  %v8448_v57 = vcombine.high %v2104_v55, %v2112_v7  ;;  %v8447_v59 = vcombine.low %v2104_v55, %v2112_v7  ;;  %v8474_v55 = vcombine.high %v2125_v46, %v2133_v47  ;;  %v10215_v7 = vld [vmem:[%s12721_s19 + $0x40] sm:$0xff]  }
 0xf02   :  { %v1898_v1 = vmul.f32 %v10529_v63, %v10525_v56  ;;  %v1899_v2 = vpack.c.bf16 %v1897_v62, %v1897_v62  ;;  %v2105_v56 = vld [vmem:[%s12720_s17 + $0x18] sm:$0xff] }
 0xf03   :  { %v8449_v60 = vcombine.low %v2105_v56, %v2113_v58  ;;  %v8450_v61 = vcombine.high %v2105_v56, %v2113_v58  ;;  %v10216_v56 = vld [vmem:[%s12721_s19 + $0xc0] sm:$0xff]   ;;  %v8473_v58 = vcombine.low %v2125_v46, %v2133_v47 }
 0xf04   :  { %9941 = vmatmul.mubr.msk.bf16.vlgmr.msra.gmra.mrb[60].mxu0 %vm390_vm3, %v1899_v2  ;;  %v1900_v50 = vpack.c.bf16 %v1898_v1, %v1898_v1 }
 0xf05   :  { %9951 = vmatpush3.bf16.msra.mxu0 %v2000_v49  ;;  %9952 = vmatprep.mubr.msk.bf16.mxu0 %vm10581_vm0, %v10580_v4 }
 0xf06   :  { %9947 = vmatmul.mubr.msk.bf16.vlgmr.msra.gmra.mrb[60].mxu1 %vm390_vm3, %v1900_v50  ;;  %2424 = vmatprep.subr.bf16.mxu0 %v8446_v43  ;;  %v2124_v43 = vld [vmem:[%s12720_s17 + $0xb0] sm:$0xff] }
 0xf07   :  { %2413 = vmatprep.mubr.bf16.mxu1 %v10579_v0 }
 0xfd7   :  { %v1941_v5 = vpop.f32.mrb[60].mxu0 }
 0xfd8   :  { %v9942_v32 = vpop.f32.mrb[61].mxu0 }
 0xfd9   :  { %v1944_v6 = vpop.f32.mrb[62].mxu0  ;;  %v1987_v8 = vpop.f32.mrb[60].mxu1 }
 0xfda   :  { %v1993_v9 = vpack.c.bf16 %v1987_v8, %v1941_v5  ;;  %v9943_v10 = vpop.f32.mrb[63].mxu0  ;;  %v9948_v36 = vpop.f32.mrb[61].mxu1  ;;  %v8441_v5 = vld [vmem:[%s12722_s15] ss:$0 sm:$0xff] }
 0xfdb   :  { %v1990_v11 = vpop.f32.mrb[62].mxu1 }
 0xfdc   :  { %v9949_v12 = vpop.f32.mrb[63].mxu1  ;;  %9953 = vmatmul.mubr.msk.bf16.vlgmr.msra.gmra.mrb[64].mxu0 %vm390_vm3, %v1993_v9  ;;  %v8442_v9 = vld [vmem:[%s12723_s16] ss:$0 sm:$0xff]  ;;  %v2120_v11 = vld [vmem:[%s12720_s17 + $0x90] sm:$0xff] }
 0xfdd   :  { %2456 = vmatprep.mubr.bf16.mxu0 %v10579_v0  ;;  %2425 = vmatpush1.bf16.msra.mxu0 %v8445_v42  ;;  %v2128_v12 = vld [vmem:[%s12720_s17 + $0xd0] sm:$0xff] }
 0xfde   :  { %2426 = vmatprep.subr.bf16.mxu0 %v8462_v54  ;;  %v8472_v54 = vcombine.high %v2124_v43, %v2132_v44 }
 0xfe1   :  { %2427 = vmatpush1.bf16.msra.mxu0 %v8461_v53 }
 0xfe2   :  { %2510 = vmatprep.subr.bf16.mxu0 %v8450_v61  ;;  %v10219_v61 = vld [vmem:[%s12721_s19 + $0x48] sm:$0xff]  }
0x10af   :  { %v2036_v39 = vpop.f32.mrb[64].mxu0 }
0x10b0   :  { %v2043_v14 = vadd.f32 %v2036_v39, %v11057_v45  ;;  %v9954_v15 = vpop.f32.mrb[65].mxu0  ;;  %v2121_v39 = vld [vmem:[%s12720_s17 + $0x98] sm:$0xff] }
0x10b1   :  { %v2039_v16 = vpop.f32.mrb[66].mxu0 }
0x10b2   :  { %v2052_v17 = vadd.f32 %v8440_v13, %v2043_v14  ;;  %v2044_v18 = vadd.f32 %v2039_v16, %v11060_v3  ;;  %v9955_v19 = vpop.f32.mrb[67].mxu0 }
0x10b3   :  { %v2107_v19 = vld [vmem:[%s12720_s17 + $0x28] sm:$0xff] }
0x10b4   :  { %v2053_v20 = vadd.f32 %v8440_v13, %v2044_v18  ;;  %v2054_v21 = vadd.f32 %v2052_v17, %v10773_v29  ;;  %v2129_v13 = vld [vmem:[%s12720_s17 + $0xd8] sm:$0xff]  ;;  %v2106_v17 = vld [vmem:[%s12720_s17 + $0x20] sm:$0xff] }
0x10b5   :  { %v2114_v18 = vld [vmem:[%s12720_s17 + $0x60] sm:$0xff] }
0x10b6   :  { %v2058_v22 = vsel %vm209_vm2, %v2054_v21, 0.0  ;;  %v2055_v23 = vadd.f32 %v2053_v20, %v10775_v30  ;;  %v2102_v30 = vld [vmem:[%s12720_s17] sm:$0xff]  ;;  %v2115_v20 = vld [vmem:[%s12720_s17 + $0x68] sm:$0xff] }
0x10b7   :  { %2059 = vadd.xlane.f32.xlu1 %v2058_v22  ;;  %v8444_v38 = vcombine.high %v2102_v30, %v2110_v35  ;;  %v8443_v41 = vcombine.low %v2102_v30, %v2110_v35  ;;  %v8464_v22 = vcombine.high %v2120_v11, %v2128_v12  ;;  %v2116_v30 = vld [vmem:[%s12720_s17 + $0x70] sm:$0xff]  ;;  %v2109_v35 = vld [vmem:[%s12720_s17 + $0x38] sm:$0xff] }
0x10b8   :  { %v2061_v24 = vsel %vm209_vm2, %v2055_v23, 0.0  ;;  %v8458_v51 = vcombine.high %v2109_v35, %v2117_v37  ;;  %v8457_v53 = vcombine.low %v2109_v35, %v2117_v37 }
0x10b9   :  { %2062 = vadd.xlane.f32.xlu0 %v2061_v24  ;;  %2381 = vmatprep.subr.bf16.mxu1 %v8444_v38  ;;  %v8463_v24 = vcombine.low %v2120_v11, %v2128_v12  ;;  %v10233_v11 = vld [vmem:[%s12721_s19 + $0x20] sm:$0xff]  }
0x10ba   :  { %2382 = vmatpush1.bf16.msra.mxu1 %v8443_v41  ;;  %v10234_v12 = vld [vmem:[%s12721_s19 + $0xa0] sm:$0xff]  }
0x10bb   :  { %2383 = vmatprep.subr.bf16.mxu1 %v8460_v48 }
0x10be   :  { %2384 = vmatpush1.bf16.msra.mxu1 %v8459_v52 }
0x10bf   :  { %2467 = vmatprep.subr.bf16.mxu1 %v8448_v57  ;;  %v8471_v57 = vcombine.low %v2124_v43, %v2132_v44 }
0x1144   :  { %v2060_v25 = vpop.xlane.xlu1 %2059 }
0x1145   :  { %v2065_v26 = vmul.f32 0.03125, %v2060_v25  ;;  %v8465_v25 = vcombine.low %v2121_v39, %v2129_v13 }
0x1146   :  { %v2063_v45 = vpop.xlane.xlu0 %2062 }
0x1147   :  { %v2067_v27 = vsub.f32 %v2054_v21, %v2065_v26  ;;  %v2066_v28 = vmul.f32 0.03125, %v2063_v45  ;;  %v2122_v26 = vld [vmem:[%s12720_s17 + $0xa0] sm:$0xff] }
0x1148   :  { %v2130_v45 = vld [vmem:[%s12720_s17 + $0xe0] sm:$0xff] }
0x1149   :  { %v2068_v31 = vsub.f32 %v2055_v23, %v2066_v28  ;;  %v2069_v33 = vmul.f32 %v2067_v27, %v2067_v27  ;;  %v8466_v23 = vcombine.high %v2121_v39, %v2129_v13  ;;  %v2131_v28 = vld [vmem:[%s12720_s17 + $0xe8] sm:$0xff]  ;;  %v8468_v38 = vcombine.high %v2122_v26, %v2130_v45 }
0x114a   :  { %v8467_v41 = vcombine.low %v2122_v26, %v2130_v45  ;;  %v10235_v39 = vld [vmem:[%s12721_s19 + $0x68] sm:$0xff]   ;;  %v10247_v26 = vld [vmem:[%s12721_s19 + $0x140] sm:$0xff]  }
0x114b   :  { %v2071_v3 = vsel %vm209_vm2, %v2069_v33, 0.0  ;;  %v2070_v34 = vmul.f32 %v2068_v31, %v2068_v31  ;;  %v8454_v33 = vcombine.high %v2107_v19, %v2115_v20  ;;  %v10236_v13 = vld [vmem:[%s12721_s19 + $0xe8] sm:$0xff]   ;;  %v10248_v45 = vld [vmem:[%s12721_s19 + $0x1c0] sm:$0xff]  }
0x114c   :  { %2072 = vadd.xlane.f32.xlu1 %v2071_v3  ;;  %v8451_v3 = vcombine.low %v2106_v17, %v2114_v18 }
0x114d   :  { %v2074_v29 = vsel %vm209_vm2, %v2070_v34, 0.0  ;;  %v8453_v34 = vcombine.low %v2107_v19, %v2115_v20  ;;  %v10240_v19 = vld [vmem:[%s12721_s19 + $0xf0] sm:$0xff]  }
0x114e   :  { %2075 = vadd.xlane.f32.xlu0 %v2074_v29  ;;  %v2108_v29 = vld [vmem:[%s12720_s17 + $0x30] sm:$0xff] }
0x114f   :  { %v8456_v48 = vcombine.high %v2108_v29, %v2116_v30  ;;  %v8455_v52 = vcombine.low %v2108_v29, %v2116_v30  ;;  %v10241_v20 = vld [vmem:[%s12721_s19 + $0x30] sm:$0xff]  }
0x11d9   :  { %v2073_v62 = vpop.xlane.xlu1 %2072 }
0x11da   :  { %v2077_v63 = vmul.f32 0.03125, %v2073_v62  ;;  %v10220_v62 = vld [vmem:[%s12721_s19 + $0xc8] sm:$0xff]  }
0x11db   :  { %v2076_v1 = vpop.xlane.xlu0 %2075 }
0x11dc   :  { %v2079_v2 = vadd.f32 1e-05, %v2077_v63  ;;  %v2078_v49 = vmul.f32 0.03125, %v2076_v1  ;;  %v10221_v63 = vld [vmem:[%s12721_s19 + $0x8] sm:$0xff]  }
0x11dd   :  { %v10222_v1 = vld [vmem:[%s12721_s19 + $0x88] sm:$0xff]  }
0x11de   :  { %10530 = vrsqrt.f32 %v2079_v2  ;;  %v2080_v50 = vadd.f32 1e-05, %v2078_v49  ;;  %v10223_v2 = vld [vmem:[%s12721_s19 + $0x50] sm:$0xff]  }
0x11df   :  { %v10224_v49 = vld [vmem:[%s12721_s19 + $0xd0] sm:$0xff]  }
0x11e0   :  { %10532 = vrsqrt.f32 %v2080_v50  ;;  %v10225_v50 = vld [vmem:[%s12721_s19 + $0x10] sm:$0xff]  }
0x11e8   :  { %v10531_v32 = vpop.eup %10530 }
0x11e9   :  { %v2083_v6 = vmul.f32 %v10531_v32, %v2067_v27  ;;  %v2123_v27 = vld [vmem:[%s12720_s17 + $0xa8] sm:$0xff]  ;;  %v10227_v32 = vld [vmem:[%s12721_s19 + $0x58] sm:$0xff]  }
0x11ea   :  { %v10533_v8 = vpop.eup %10532  ;;  %v8470_v40 = vcombine.high %v2123_v27, %v2131_v28  ;;  %v8469_v42 = vcombine.low %v2123_v27, %v2131_v28  ;;  %v2138_v27 = vlaneseq }
0x11eb   :  { %v2091_v10 = vmul.f32 %v8441_v5, %v2083_v6  ;;  %v2084_v36 = vmul.f32 %v10533_v8, %v2068_v31  ;;  %v8452_v31 = vcombine.high %v2106_v17, %v2114_v18  ;;  %v10228_v6 = vld [vmem:[%s12721_s19 + $0xd8] sm:$0xff]   ;;  %v10238_v17 = vld [vmem:[%s12721_s19 + $0xa8] sm:$0xff]   ;;  %v10239_v18 = vld [vmem:[%s12721_s19 + $0x70] sm:$0xff]  }
0x11ec   :  { %v10229_v8 = vld [vmem:[%s12721_s19 + $0x18] sm:$0xff]   ;;  %v2139_v28 = vshrl.u32 %v2138_v27, 7 }
0x11ed   :  { %v2092_v14 = vmul.f32 %v8441_v5, %v2084_v36  ;;  %v11166_v15 = vadd.f32 %v8442_v9, %v2091_v10  ;;  %v10226_v5 = vld [vmem:[%s12721_s19 + $0x90] sm:$0xff]   ;;  %v10231_v10 = vld [vmem:[%s12721_s19 + $0x60] sm:$0xff]  }
0x11ee   :  { %v10232_v36 = vld [vmem:[%s12721_s19 + $0xe0] sm:$0xff]   ;;  %v11355_v29 = vsub.s32 3, %v2139_v28  ;;  %v11365_v44 = vsub.s32 5, %v2139_v28  ;;  %v11367_v46 = vsub.s32 7, %v2139_v28 }
0x11ef   :  { %v11168_v16 = vadd.f32 %v8442_v9, %v2092_v14  ;;  %v10230_v9 = vld [vmem:[%s12721_s19 + $0x98] sm:$0xff]   ;;  %v10237_v14 = vld [vmem:[%s12721_s19 + $0x28] sm:$0xff]  }
0x11f1   :  { %v11184_v21 = vpack.c.bf16 %v11168_v16, %v11166_v15 }
0x11f3   :  { %8475 = vmatmul.mubr.msk.bf16.vlgmr.msra.gmra.mrb[64].mxu1 %vm209_vm2, %v11184_v21  ;;  %8476 = vmatmul.mubr.msk.bf16.vlgmr.msra.gmra.mrb[68].mxu0 %vm209_vm2, %v11184_v21 }
0x11f4   :  { %2468 = vmatpush1.bf16.msra.mxu1 %v8447_v59  ;;  %2511 = vmatpush1.bf16.msra.mxu0 %v8449_v60  ;;  %v10217_v59 = vld [vmem:[%s12721_s19] sm:$0xff]  }
0x11f5   :  { %2469 = vmatprep.subr.bf16.mxu1 %v8464_v22  ;;  %2512 = vmatprep.subr.bf16.mxu0 %v8466_v23  ;;  %v10218_v60 = vld [vmem:[%s12721_s19 + $0x80] sm:$0xff]   ;;  %v10243_v22 = vld [vmem:[%s12721_s19 + $0x78] sm:$0xff]  }
0x11f6   :  { %2499 = vmatprep.mubr.bf16.mxu1 %v10579_v0  ;;  %2542 = vmatprep.mubr.bf16.mxu0 %v10579_v0  ;;  %v10244_v23 = vld [vmem:[%s12721_s19 + $0xf8] sm:$0xff]  }
0x11f8   :  { %2470 = vmatpush1.bf16.msra.mxu1 %v8463_v24  ;;  %2513 = vmatpush1.bf16.msra.mxu0 %v8465_v25  ;;  %v10245_v24 = vld [vmem:[%s12721_s19 + $0x38] sm:$0xff]  }
0x11f9   :  { %2553 = vmatprep.subr.bf16.mxu1 %v8452_v31  ;;  %2596 = vmatprep.subr.bf16.mxu0 %v8454_v33  ;;  %v10246_v25 = vld [vmem:[%s12721_s19 + $0xb8] sm:$0xff]   ;;  %v11346_v31 = vsub.s32 0, %v2139_v28  ;;  %v11348_v33 = vsub.s32 2, %v2139_v28 }
0x11fb   :  { %8477 = vmatmul.mubr.msk.bf16.vlgmr.msra.gmra.mrb[68].mxu1 %vm209_vm2, %v11184_v21  ;;  %8478 = vmatmul.mubr.msk.bf16.vlgmr.msra.gmra.mrb[72].mxu0 %vm209_vm2, %v11184_v21 }
0x11fc   :  { %2554 = vmatpush1.bf16.msra.mxu1 %v8451_v3  ;;  %2597 = vmatpush1.bf16.msra.mxu0 %v8453_v34  ;;  %v2134_v3 = vld [vmem:[%s12724_s18] sm:$0xff]  ;;  %v11353_v34 = vsub.s32 1, %v2139_v28 }
0x11fd   :  { %2555 = vmatprep.subr.bf16.mxu1 %v8468_v38  ;;  %2598 = vmatprep.subr.bf16.mxu0 %v8470_v40  ;;  %v2141_v30 = vrot.slane %v2134_v3, %v11346_v31  ;;  %v2149_v35 = vrot.slane %v2134_v3, %v11348_v33  ;;  %v2153_v38 = vrot.slane %v2134_v3, %v11355_v29  ;;  %v11361_v40 = vsub.s32 4, %v2139_v28 }
0x11fe   :  { %2585 = vmatprep.mubr.bf16.mxu1 %v10579_v0  ;;  %2628 = vmatprep.mubr.bf16.mxu0 %v10579_v0  ;;  %v2145_v37 = vrot.slane %v2134_v3, %v11353_v34 }
0x1200   :  { %2556 = vmatpush1.bf16.msra.mxu1 %v8467_v41  ;;  %2599 = vmatpush1.bf16.msra.mxu0 %v8469_v42  ;;  %v11363_v41 = vsub.s32 6, %v2139_v28 }
0x1201   :  { %2639 = vmatprep.subr.bf16.mxu1 %v8456_v48  ;;  %2682 = vmatprep.subr.bf16.mxu0 %v8458_v51 }
0x1203   :  { %8479 = vmatmul.mubr.msk.bf16.vlgmr.msra.gmra.mrb[72].mxu1 %vm209_vm2, %v11184_v21  ;;  %8480 = vmatmul.mubr.msk.bf16.vlgmr.msra.gmra.mrb[76].mxu0 %vm209_vm2, %v11184_v21 }
0x1204   :  { %2640 = vmatpush1.bf16.msra.mxu1 %v8455_v52  ;;  %2683 = vmatpush1.bf16.msra.mxu0 %v8457_v53 }
0x1205   :  { %2641 = vmatprep.subr.bf16.mxu1 %v8472_v54  ;;  %2684 = vmatprep.subr.bf16.mxu0 %v8474_v55 }
0x1206   :  { %2671 = vmatprep.mubr.bf16.mxu1 %v10579_v0  ;;  %2714 = vmatprep.mubr.bf16.mxu0 %v10579_v0 }
0x1208   :  { %2642 = vmatpush1.bf16.msra.mxu1 %v8471_v57  ;;  %2685 = vmatpush1.bf16.msra.mxu0 %v8473_v58 }
0x1209   :  { %9301 = vmatprep.subr.bf16.mxu1 %v10215_v7  ;;  %9323 = vmatprep.subr.bf16.mxu0 %v10216_v56 }
0x120b   :  { %8481 = vmatmul.mubr.msk.bf16.vlgmr.msra.gmra.mrb[76].mxu1 %vm209_vm2, %v11184_v21  ;;  %8482 = vmatmul.mubr.msk.bf16.vlgmr.msra.gmra.mrb[80].mxu0 %vm209_vm2, %v11184_v21  ;;  %v10242_v21 = vld [vmem:[%s12721_s19 + $0xb0] sm:$0xff]  }
0x120c   :  { %9302 = vmatpush3.bf16.msra.mxu1 %v10217_v59  ;;  %9324 = vmatpush3.bf16.msra.mxu0 %v10218_v60  ;;  %v2157_v60 = vrot.slane %v2134_v3, %v11361_v40 }
0x120d   :  { %9303 = vmatprep.subr.bf16.mxu1 %v10219_v61  ;;  %9325 = vmatprep.subr.bf16.mxu0 %v10220_v62  ;;  %v2165_v61 = vrot.slane %v2134_v3, %v11363_v41 }
0x1210   :  { %9304 = vmatpush3.bf16.msra.mxu1 %v10221_v63  ;;  %9326 = vmatpush3.bf16.msra.mxu0 %v10222_v1  ;;  %v2161_v1 = vrot.slane %v2134_v3, %v11365_v44 }
0x1211   :  { %9305 = vmatprep.subr.bf16.mxu1 %v10223_v2  ;;  %9327 = vmatprep.subr.bf16.mxu0 %v10224_v49  ;;  %v2169_v2 = vrot.slane %v2134_v3, %v11367_v46 }
0x1214   :  { %9306 = vmatpush3.bf16.msra.mxu1 %v10225_v50  ;;  %9328 = vmatpush3.bf16.msra.mxu0 %v10226_v5 }
0x1215   :  { %9307 = vmatprep.subr.bf16.mxu1 %v10227_v32  ;;  %9329 = vmatprep.subr.bf16.mxu0 %v10228_v6 }
0x1218   :  { %9308 = vmatpush3.bf16.msra.mxu1 %v10229_v8  ;;  %9330 = vmatpush3.bf16.msra.mxu0 %v10230_v9 }
0x1219   :  { %9309 = vmatprep.subr.bf16.mxu1 %v10231_v10  ;;  %9331 = vmatprep.subr.bf16.mxu0 %v10232_v36  ;;  %v11376_v36 = vld [vmem:[%s12724_s18 + $0x8] sm:$0xff] }
0x121c   :  { %9310 = vmatpush3.bf16.msra.mxu1 %v10233_v11  ;;  %9332 = vmatpush3.bf16.msra.mxu0 %v10234_v12 }
0x121d   :  { %9311 = vmatprep.subr.bf16.mxu1 %v10235_v39  ;;  %9333 = vmatprep.subr.bf16.mxu0 %v10236_v13 }
0x1220   :  { %9312 = vmatpush3.bf16.msra.mxu1 %v10237_v14  ;;  %9334 = vmatpush3.bf16.msra.mxu0 %v10238_v17 }
0x1221   :  { %9313 = vmatprep.subr.bf16.mxu1 %v10239_v18  ;;  %9335 = vmatprep.subr.bf16.mxu0 %v10240_v19  ;;  %v10249_v18 = vld [vmem:[%s12721_s19 + $0x100] sm:$0xff]  }
0x1222   :  { %v10250_v19 = vld [vmem:[%s12721_s19 + $0x180] sm:$0xff]  }
0x1224   :  { %9314 = vmatpush3.bf16.msra.mxu1 %v10241_v20  ;;  %9336 = vmatpush3.bf16.msra.mxu0 %v10242_v21 }
0x1225   :  { %9315 = vmatprep.subr.bf16.mxu1 %v10243_v22  ;;  %9337 = vmatprep.subr.bf16.mxu0 %v10244_v23 }
0x1228   :  { %9316 = vmatpush3.bf16.msra.mxu1 %v10245_v24  ;;  %9338 = vmatpush3.bf16.msra.mxu0 %v10246_v25  ;;  %v10251_v24 = vld [vmem:[%s12721_s19 + $0x148] sm:$0xff]  }
0x1229   :  { %9345 = vmatprep.subr.bf16.mxu1 %v10247_v26  ;;  %9367 = vmatprep.subr.bf16.mxu0 %v10248_v45  ;;  %v10252_v25 = vld [vmem:[%s12721_s19 + $0x1c8] sm:$0xff]   ;;  %v2173_v26 = vrot.slane %v11376_v36, %v11346_v31 }
0x12c6   :  { %v2415_v42 = vpop.f32.mrb[64].mxu1  ;;  %v2458_v43 = vpop.f32.mrb[68].mxu0 }
0x12c7   :  { %v2416_v47 = vadd.f32 %v2415_v42, %v2141_v30  ;;  %v2459_v48 = vadd.f32 %v2458_v43, %v2149_v35  ;;  %v2417_v51 = vpop.f32.mrb[65].mxu1  ;;  %v2460_v52 = vpop.f32.mrb[69].mxu0  ;;  %v2177_v43 = vrot.slane %v11376_v36, %v11353_v34 }
0x12c8   :  { %v2418_v53 = vadd.f32 %v2417_v51, %v2145_v37  ;;  %v2461_v54 = vadd.f32 %v2460_v52, %v2153_v38  ;;  %v2419_v55 = vpop.f32.mrb[66].mxu1  ;;  %v2462_v7 = vpop.f32.mrb[70].mxu0  ;;  %v10253_v51 = vld [vmem:[%s12721_s19 + $0x108] sm:$0xff]  }
0x12c9   :  { %v2420_v56 = vadd.f32 %v2419_v55, %v2141_v30  ;;  %v2463_v57 = vadd.f32 %v2462_v7, %v2149_v35  ;;  %v2421_v58 = vpop.f32.mrb[67].mxu1  ;;  %v2464_v59 = vpop.f32.mrb[71].mxu0  ;;  %v2725_v49 = vmax.f32 %v2416_v47, 0.0  ;;  %v2727_v50 = vmax.f32 %v2459_v48, 0.0  ;;  %v10254_v52 = vld [vmem:[%s12721_s19 + $0x188] sm:$0xff]  }
0x12ca   :  { %v2422_v62 = vadd.f32 %v2421_v58, %v2145_v37  ;;  %v2465_v63 = vadd.f32 %v2464_v59, %v2153_v38  ;;  %v2726_v6 = vmax.f32 %v2418_v53, 0.0  ;;  %v2728_v8 = vmax.f32 %v2461_v54, 0.0  ;;  %v10256_v58 = vld [vmem:[%s12721_s19 + $0x1d0] sm:$0xff]  }
0x12cb   :  { %v2741_v5 = vmax.f32 %v2420_v56, 0.0  ;;  %v2743_v32 = vmax.f32 %v2463_v57, 0.0  ;;  %v2181_v30 = vrot.slane %v11376_v36, %v11348_v33  ;;  %v2185_v53 = vrot.slane %v11376_v36, %v11355_v29  ;;  %v10255_v57 = vld [vmem:[%s12721_s19 + $0x150] sm:$0xff]  }
0x12cc   :  { %v2742_v9 = vmax.f32 %v2422_v62, 0.0  ;;  %v2744_v10 = vmax.f32 %v2465_v63, 0.0 }
0x12cd   :  { %v2757_v11 = vpack.c.bf16 %v2741_v5, %v2725_v49  ;;  %v2759_v12 = vpack.c.bf16 %v2743_v32, %v2727_v50  ;;  %v10257_v32 = vld [vmem:[%s12721_s19 + $0x110] sm:$0xff]  }
0x12ce   :  { %v2758_v39 = vpack.c.bf16 %v2742_v9, %v2726_v6  ;;  %v2760_v13 = vpack.c.bf16 %v2744_v10, %v2728_v8  ;;  %v2501_v14 = vpop.f32.mrb[68].mxu1  ;;  %v2544_v17 = vpop.f32.mrb[72].mxu0  ;;  %v10258_v6 = vld [vmem:[%s12721_s19 + $0x190] sm:$0xff]  }
0x12cf   :  { %v2502_v20 = vadd.f32 %v2501_v14, %v2157_v60  ;;  %v2545_v21 = vadd.f32 %v2544_v17, %v2165_v61  ;;  %v2503_v22 = vpop.f32.mrb[69].mxu1  ;;  %v2546_v23 = vpop.f32.mrb[73].mxu0 }
0x12d0   :  { %v2504_v45 = vadd.f32 %v2503_v22, %v2161_v1  ;;  %v2547_v27 = vadd.f32 %v2546_v23, %v2169_v2  ;;  %v2505_v28 = vpop.f32.mrb[70].mxu1  ;;  %v2548_v3 = vpop.f32.mrb[74].mxu0  ;;  %3836 = vmatprep.mubr.bf16.mxu1 %v2758_v39  ;;  %3877 = vmatprep.mubr.bf16.mxu0 %v2760_v13  ;;  %v10260_v39 = vld [vmem:[%s12721_s19 + $0x1d8] sm:$0xff]  }
0x12d1   :  { %v2506_v35 = vadd.f32 %v2505_v28, %v2157_v60  ;;  %v2549_v37 = vadd.f32 %v2548_v3, %v2165_v61  ;;  %v2507_v38 = vpop.f32.mrb[71].mxu1  ;;  %v2550_v42 = vpop.f32.mrb[75].mxu0  ;;  %3837 = vmatmul.mubr.bf16.vlgmr.msra.gmra.mrb[80].mxu1 %v2757_v11  ;;  %3878 = vmatmul.mubr.bf16.vlgmr.msra.gmra.mrb[84].mxu0 %v2759_v12  ;;  %v2729_v54 = vmax.f32 %v2502_v20, 0.0  ;;  %v2731_v55 = vmax.f32 %v2545_v21, 0.0  ;;  %v10259_v12 = vld [vmem:[%s12721_s19 + $0x158] sm:$0xff]  }
0x12d2   :  { %v2508_v47 = vadd.f32 %v2507_v38, %v2161_v1  ;;  %v2551_v48 = vadd.f32 %v2550_v42, %v2169_v2  ;;  %9346 = vmatpush3.bf16.msra.mxu1 %v10249_v18  ;;  %9368 = vmatpush3.bf16.msra.mxu0 %v10250_v19  ;;  %v2730_v59 = vmax.f32 %v2504_v45, 0.0  ;;  %v2732_v60 = vmax.f32 %v2547_v27, 0.0  ;;  %v10261_v28 = vld [vmem:[%s12721_s19 + $0x118] sm:$0xff]   ;;  %v10263_v42 = vld [vmem:[%s12721_s19 + $0x160] sm:$0xff]  }
0x12d3   :  { %v2745_v7 = vmax.f32 %v2506_v35, 0.0  ;;  %v2747_v56 = vmax.f32 %v2549_v37, 0.0  ;;  %9347 = vmatprep.subr.bf16.mxu1 %v10251_v24  ;;  %9369 = vmatprep.subr.bf16.mxu0 %v10252_v25  ;;  %v2189_v19 = vrot.slane %v11376_v36, %v11361_v40  ;;  %v2197_v24 = vrot.slane %v11376_v36, %v11363_v41 }
0x12d4   :  { %v2746_v61 = vmax.f32 %v2508_v47, 0.0  ;;  %v2748_v62 = vmax.f32 %v2551_v48, 0.0  ;;  %v2193_v25 = vrot.slane %v11376_v36, %v11365_v44  ;;  %v2201_v3 = vrot.slane %v11376_v36, %v11367_v46 }
0x12d5   :  { %v11410_v63 = vpack.c.bf16 %v2745_v7, %v2729_v54  ;;  %v11412_v1 = vpack.c.bf16 %v2747_v56, %v2731_v55 }
0x12d6   :  { %v2762_v2 = vpack.c.bf16 %v2746_v61, %v2730_v59  ;;  %v2764_v49 = vpack.c.bf16 %v2748_v62, %v2732_v60  ;;  %9348 = vmatpush3.bf16.msra.mxu1 %v10253_v51  ;;  %9370 = vmatpush3.bf16.msra.mxu0 %v10254_v52  ;;  %v2587_v50 = vpop.f32.mrb[72].mxu1  ;;  %v2630_v5 = vpop.f32.mrb[76].mxu0 }
0x12d7   :  { %v2588_v8 = vadd.f32 %v2587_v50, %v2173_v26  ;;  %v2631_v9 = vadd.f32 %v2630_v5, %v2181_v30  ;;  %v2589_v10 = vpop.f32.mrb[73].mxu1  ;;  %v2632_v11 = vpop.f32.mrb[77].mxu0  ;;  %9349 = vmatprep.subr.bf16.mxu1 %v10255_v57  ;;  %9371 = vmatprep.subr.bf16.mxu0 %v10256_v58  ;;  %v10265_v57 = vld [vmem:[%s12721_s19 + $0x120] sm:$0xff]  }
0x12d8   :  { %v2590_v13 = vadd.f32 %v2589_v10, %v2177_v43  ;;  %v2633_v14 = vadd.f32 %v2632_v11, %v2185_v53  ;;  %v2591_v17 = vpop.f32.mrb[74].mxu1  ;;  %v2634_v18 = vpop.f32.mrb[78].mxu0  ;;  %3918 = vmatprep.mubr.bf16.mxu1 %v2762_v2  ;;  %3959 = vmatprep.mubr.bf16.mxu0 %v2764_v49  ;;  %v10266_v58 = vld [vmem:[%s12721_s19 + $0x1a0] sm:$0xff]   ;;  %v10267_v2 = vld [vmem:[%s12721_s19 + $0x168] sm:$0xff]  }
0x12d9   :  { %v2592_v20 = vadd.f32 %v2591_v17, %v2173_v26  ;;  %v2635_v21 = vadd.f32 %v2634_v18, %v2181_v30  ;;  %v2593_v22 = vpop.f32.mrb[75].mxu1  ;;  %v2636_v23 = vpop.f32.mrb[79].mxu0  ;;  %v10262_v26 = vld [vmem:[%s12721_s19 + $0x198] sm:$0xff]   ;;  %v2733_v30 = vmax.f32 %v2588_v8, 0.0  ;;  %v2735_v35 = vmax.f32 %v2631_v9, 0.0  ;;  %v10268_v49 = vld [vmem:[%s12721_s19 + $0x1e8] sm:$0xff]  }
0x12da   :  { %v2594_v45 = vadd.f32 %v2593_v22, %v2177_v43  ;;  %v2637_v27 = vadd.f32 %v2636_v23, %v2185_v53  ;;  %9350 = vmatpush3.bf16.msra.mxu1 %v10257_v32  ;;  %9372 = vmatpush3.bf16.msra.mxu0 %v10258_v6  ;;  %v10264_v43 = vld [vmem:[%s12721_s19 + $0x1e0] sm:$0xff]   ;;  %v2734_v47 = vmax.f32 %v2590_v13, 0.0  ;;  %v2736_v48 = vmax.f32 %v2633_v14, 0.0  ;;  %v10269_v13 = vld [vmem:[%s12721_s19 + $0x128] sm:$0xff]   ;;  %v10272_v22 = vld [vmem:[%s12721_s19 + $0x1f0] sm:$0xff]  }
0x12db   :  { %v2749_v37 = vmax.f32 %v2592_v20, 0.0  ;;  %v2751_v38 = vmax.f32 %v2635_v21, 0.0  ;;  %9351 = vmatprep.subr.bf16.mxu1 %v10259_v12  ;;  %9373 = vmatprep.subr.bf16.mxu0 %v10260_v39  ;;  %v10270_v14 = vld [vmem:[%s12721_s19 + $0x1a8] sm:$0xff]  }
0x12dc   :  { %v2750_v51 = vmax.f32 %v2594_v45, 0.0  ;;  %v2752_v52 = vmax.f32 %v2637_v27, 0.0 }
0x12dd   :  { %v11446_v53 = vpack.c.bf16 %v2749_v37, %v2733_v30  ;;  %v11448_v36 = vpack.c.bf16 %v2751_v38, %v2735_v35  ;;  %v10273_v30 = vld [vmem:[%s12721_s19 + $0x130] sm:$0xff]   ;;  %v10275_v37 = vld [vmem:[%s12721_s19 + $0x178] sm:$0xff]  }
0x12de   :  { %v11450_v54 = vpack.c.bf16 %v2750_v51, %v2734_v47  ;;  %v11452_v55 = vpack.c.bf16 %v2752_v52, %v2736_v48  ;;  %9352 = vmatpush3.bf16.msra.mxu1 %v10261_v28  ;;  %9374 = vmatpush3.bf16.msra.mxu0 %v10262_v26  ;;  %v2673_v7 = vpop.f32.mrb[76].mxu1  ;;  %v2716_v56 = vpop.f32.mrb[80].mxu0  ;;  %v10274_v35 = vld [vmem:[%s12721_s19 + $0x1b0] sm:$0xff]   ;;  %v10276_v38 = vld [vmem:[%s12721_s19 + $0x1f8] sm:$0xff]   ;;  %v10279_v47 = vld [vmem:[%s12721_s19 + $0x240] sm:$0xff]  }
0x12df   :  { %v2674_v59 = vadd.f32 %v2673_v7, %v2189_v19  ;;  %v2717_v60 = vadd.f32 %v2716_v56, %v2197_v24  ;;  %v2675_v61 = vpop.f32.mrb[77].mxu1  ;;  %v2718_v62 = vpop.f32.mrb[81].mxu0  ;;  %9353 = vmatprep.subr.bf16.mxu1 %v10263_v42  ;;  %9375 = vmatprep.subr.bf16.mxu0 %v10264_v43  ;;  %v10277_v42 = vld [vmem:[%s12721_s19 + $0x138] sm:$0xff]   ;;  %v10280_v48 = vld [vmem:[%s12721_s19 + $0x2c0] sm:$0xff]   ;;  %v10283_v7 = vld [vmem:[%s12721_s19 + $0x248] sm:$0xff]  }
0x12e0   :  { %v2676_v50 = vadd.f32 %v2675_v61, %v2193_v25  ;;  %v2719_v5 = vadd.f32 %v2718_v62, %v2201_v3  ;;  %v2677_v32 = vpop.f32.mrb[78].mxu1  ;;  %v2720_v6 = vpop.f32.mrb[82].mxu0  ;;  %v10278_v43 = vld [vmem:[%s12721_s19 + $0x1b8] sm:$0xff]   ;;  %v10281_v51 = vld [vmem:[%s12721_s19 + $0x200] sm:$0xff]   ;;  %v10284_v56 = vld [vmem:[%s12721_s19 + $0x2c8] sm:$0xff]  }
0x12e1   :  { %v2678_v8 = vadd.f32 %v2677_v32, %v2189_v19  ;;  %v2721_v9 = vadd.f32 %v2720_v6, %v2197_v24  ;;  %v2679_v10 = vpop.f32.mrb[79].mxu1  ;;  %v2722_v11 = vpop.f32.mrb[83].mxu0  ;;  %v2737_v17 = vmax.f32 %v2674_v59, 0.0  ;;  %v2739_v18 = vmax.f32 %v2717_v60, 0.0  ;;  %v10271_v19 = vld [vmem:[%s12721_s19 + $0x170] sm:$0xff]   ;;  %v10282_v52 = vld [vmem:[%s12721_s19 + $0x280] sm:$0xff]  }
0x12e2   :  { %v2680_v12 = vadd.f32 %v2679_v10, %v2193_v25  ;;  %v2723_v39 = vadd.f32 %v2722_v11, %v2201_v3  ;;  %9354 = vmatpush3.bf16.msra.mxu1 %v10265_v57  ;;  %9376 = vmatpush3.bf16.msra.mxu0 %v10266_v58  ;;  %v2738_v23 = vmax.f32 %v2676_v50, 0.0  ;;  %v2740_v24 = vmax.f32 %v2719_v5, 0.0  ;;  %v10285_v57 = vld [vmem:[%s12721_s19 + $0x208] sm:$0xff]   ;;  %v10291_v59 = vld [vmem:[%s12721_s19 + $0x258] sm:$0xff]   ;;  %v10297_v50 = vld [vmem:[%s12721_s19 + $0x220] sm:$0xff]  }
0x12e3   :  { %v2753_v20 = vmax.f32 %v2678_v8, 0.0  ;;  %v2755_v21 = vmax.f32 %v2721_v9, 0.0  ;;  %9355 = vmatprep.subr.bf16.mxu1 %v10267_v2  ;;  %9377 = vmatprep.subr.bf16.mxu0 %v10268_v49  ;;  %v10286_v58 = vld [vmem:[%s12721_s19 + $0x288] sm:$0xff]   ;;  %v10292_v60 = vld [vmem:[%s12721_s19 + $0x2d8] sm:$0xff]   ;;  %v10295_v2 = vld [vmem:[%s12721_s19 + $0x260] sm:$0xff]  }
0x12e4   :  { %v2754_v25 = vmax.f32 %v2680_v12, 0.0  ;;  %v2756_v45 = vmax.f32 %v2723_v39, 0.0  ;;  %v10293_v61 = vld [vmem:[%s12721_s19 + $0x218] sm:$0xff]   ;;  %v10296_v49 = vld [vmem:[%s12721_s19 + $0x2e0] sm:$0xff]   ;;  %v10299_v32 = vld [vmem:[%s12721_s19 + $0x268] sm:$0xff]  }
0x12e5   :  { %v11478_v27 = vpack.c.bf16 %v2753_v20, %v2737_v17  ;;  %v11480_v28 = vpack.c.bf16 %v2755_v21, %v2739_v18  ;;  %v10294_v62 = vld [vmem:[%s12721_s19 + $0x298] sm:$0xff]   ;;  %v10298_v5 = vld [vmem:[%s12721_s19 + $0x2a0] sm:$0xff]   ;;  %v10300_v6 = vld [vmem:[%s12721_s19 + $0x2e8] sm:$0xff]  }
0x12e6   :  { %v11482_v26 = vpack.c.bf16 %v2754_v25, %v2738_v23  ;;  %v11484_v3 = vpack.c.bf16 %v2756_v45, %v2740_v24  ;;  %9356 = vmatpush3.bf16.msra.mxu1 %v10269_v13  ;;  %9378 = vmatpush3.bf16.msra.mxu0 %v10270_v14  ;;  %v10301_v8 = vld [vmem:[%s12721_s19 + $0x228] sm:$0xff]   ;;  %v10303_v10 = vld [vmem:[%s12721_s19 + $0x270] sm:$0xff]   ;;  %v10307_v13 = vld [vmem:[%s12721_s19 + $0x278] sm:$0xff]  }
0x12e7   :  { %9357 = vmatprep.subr.bf16.mxu1 %v10271_v19  ;;  %9379 = vmatprep.subr.bf16.mxu0 %v10272_v22  ;;  %v10302_v9 = vld [vmem:[%s12721_s19 + $0x2a8] sm:$0xff]   ;;  %v10304_v11 = vld [vmem:[%s12721_s19 + $0x2f0] sm:$0xff]   ;;  %v10308_v14 = vld [vmem:[%s12721_s19 + $0x2f8] sm:$0xff]  }
0x12e8   :  { %v10305_v12 = vld [vmem:[%s12721_s19 + $0x230] sm:$0xff]   ;;  %v10309_v17 = vld [vmem:[%s12721_s19 + $0x238] sm:$0xff]   ;;  %v10311_v20 = vld [vmem:[%s12721_s19 + $0x340] sm:$0xff]  }
0x12e9   :  { %v10306_v39 = vld [vmem:[%s12721_s19 + $0x2b0] sm:$0xff]   ;;  %v10310_v18 = vld [vmem:[%s12721_s19 + $0x2b8] sm:$0xff]   ;;  %v10312_v21 = vld [vmem:[%s12721_s19 + $0x3c0] sm:$0xff]  }
0x12ea   :  { %9358 = vmatpush3.bf16.msra.mxu1 %v10273_v30  ;;  %9380 = vmatpush3.bf16.msra.mxu0 %v10274_v35  ;;  %v10313_v19 = vld [vmem:[%s12721_s19 + $0x300] sm:$0xff]   ;;  %v10315_v23 = vld [vmem:[%s12721_s19 + $0x348] sm:$0xff]   ;;  %v10322_v30 = vld [vmem:[%s12721_s19 + $0x390] sm:$0xff]  }
0x12eb   :  { %9359 = vmatprep.subr.bf16.mxu1 %v10275_v37  ;;  %9381 = vmatprep.subr.bf16.mxu0 %v10276_v38  ;;  %v10314_v22 = vld [vmem:[%s12721_s19 + $0x380] sm:$0xff]   ;;  %v10316_v24 = vld [vmem:[%s12721_s19 + $0x3c8] sm:$0xff]   ;;  %v10324_v35 = vld [vmem:[%s12721_s19 + $0x3d8] sm:$0xff]  }
0x12ec   :  { %v10317_v25 = vld [vmem:[%s12721_s19 + $0x308] sm:$0xff]   ;;  %v10325_v37 = vld [vmem:[%s12721_s19 + $0x318] sm:$0xff]  }
0x12ed   :  { %v10318_v45 = vld [vmem:[%s12721_s19 + $0x388] sm:$0xff]   ;;  %v10326_v38 = vld [vmem:[%s12721_s19 + $0x398] sm:$0xff]  }
0x12ee   :  { %9360 = vmatpush3.bf16.msra.mxu1 %v10277_v42  ;;  %9382 = vmatpush3.bf16.msra.mxu0 %v10278_v43  ;;  %v10327_v42 = vld [vmem:[%s12721_s19 + $0x360] sm:$0xff]  }
0x12ef   :  { %9389 = vmatprep.subr.bf16.mxu1 %v10279_v47  ;;  %9411 = vmatprep.subr.bf16.mxu0 %v10280_v48  ;;  %v10328_v43 = vld [vmem:[%s12721_s19 + $0x3e0] sm:$0xff]  }
0x12f0   :  { %v10329_v47 = vld [vmem:[%s12721_s19 + $0x320] sm:$0xff]  }
0x12f1   :  { %3919 = vmatmul.mubr.bf16.vlgmr.msra.gmra.mrb[84].mxu1 %v11410_v63  ;;  %3960 = vmatmul.mubr.bf16.vlgmr.msra.gmra.mrb[88].mxu0 %v11412_v1  ;;  %v10287_v63 = vld [vmem:[%s12721_s19 + $0x250] sm:$0xff]   ;;  %v10330_v48 = vld [vmem:[%s12721_s19 + $0x3a0] sm:$0xff]  }
0x12f2   :  { %9390 = vmatpush3.bf16.msra.mxu1 %v10281_v51  ;;  %4000 = vmatprep.mubr.bf16.mxu1 %v11450_v54  ;;  %v10288_v1 = vld [vmem:[%s12721_s19 + $0x2d0] sm:$0xff]   ;;  %v10331_v51 = vld [vmem:[%s12721_s19 + $0x368] sm:$0xff]  }
0x12f3   :  { %9412 = vmatpush3.bf16.msra.mxu0 %v10282_v52  ;;  %4041 = vmatprep.mubr.bf16.mxu0 %v11452_v55  ;;  %v10289_v54 = vld [vmem:[%s12721_s19 + $0x210] sm:$0xff]   ;;  %v10332_v52 = vld [vmem:[%s12721_s19 + $0x3e8] sm:$0xff]  }
0x12f4   :  { %9391 = vmatprep.subr.bf16.mxu1 %v10283_v7  ;;  %9413 = vmatprep.subr.bf16.mxu0 %v10284_v56  ;;  %v10290_v55 = vld [vmem:[%s12721_s19 + $0x290] sm:$0xff]   ;;  %v10333_v7 = vld [vmem:[%s12721_s19 + $0x328] sm:$0xff]  }
0x12f5   :  { %v10334_v56 = vld [vmem:[%s12721_s19 + $0x3a8] sm:$0xff]  }
0x12f6   :  { %9392 = vmatpush3.bf16.msra.mxu1 %v10285_v57  ;;  %v10335_v57 = vld [vmem:[%s12721_s19 + $0x370] sm:$0xff]  }
0x12f7   :  { %9414 = vmatpush3.bf16.msra.mxu0 %v10286_v58  ;;  %9393 = vmatprep.subr.bf16.mxu1 %v10287_v63  ;;  %v10336_v58 = vld [vmem:[%s12721_s19 + $0x3f0] sm:$0xff]  }
0x12f8   :  { %9415 = vmatprep.subr.bf16.mxu0 %v10288_v1  ;;  %v10337_v63 = vld [vmem:[%s12721_s19 + $0x330] sm:$0xff]  }
0x12f9   :  { %v10338_v1 = vld [vmem:[%s12721_s19 + $0x3b0] sm:$0xff]  }
0x12fa   :  { %9394 = vmatpush3.bf16.msra.mxu1 %v10289_v54  ;;  %v10339_v54 = vld [vmem:[%s12721_s19 + $0x378] sm:$0xff]  }
0x12fb   :  { %9416 = vmatpush3.bf16.msra.mxu0 %v10290_v55  ;;  %9395 = vmatprep.subr.bf16.mxu1 %v10291_v59  ;;  %v10340_v55 = vld [vmem:[%s12721_s19 + $0x3f8] sm:$0xff]  }
0x12fc   :  { %9417 = vmatprep.subr.bf16.mxu0 %v10292_v60  ;;  %v10341_v59 = vld [vmem:[%s12721_s19 + $0x338] sm:$0xff]  }
0x12fd   :  { %v10342_v60 = vld [vmem:[%s12721_s19 + $0x3b8] sm:$0xff]  }
0x12fe   :  { %9396 = vmatpush3.bf16.msra.mxu1 %v10293_v61 }
0x12ff   :  { %9418 = vmatpush3.bf16.msra.mxu0 %v10294_v62  ;;  %9397 = vmatprep.subr.bf16.mxu1 %v10295_v2  ;;  %v8483_v2 = vld [vmem:[%s12725_s20] ss:$0 sm:$0xff] }
0x1300   :  { %9419 = vmatprep.subr.bf16.mxu0 %v10296_v49 }
0x1302   :  { %9398 = vmatpush3.bf16.msra.mxu1 %v10297_v50 }
0x1303   :  { %9420 = vmatpush3.bf16.msra.mxu0 %v10298_v5  ;;  %9399 = vmatprep.subr.bf16.mxu1 %v10299_v32 }
0x1304   :  { %9421 = vmatprep.subr.bf16.mxu0 %v10300_v6 }
0x1306   :  { %9400 = vmatpush3.bf16.msra.mxu1 %v10301_v8 }
0x1307   :  { %9422 = vmatpush3.bf16.msra.mxu0 %v10302_v9  ;;  %9401 = vmatprep.subr.bf16.mxu1 %v10303_v10 }
0x1308   :  { %9423 = vmatprep.subr.bf16.mxu0 %v10304_v11 }
0x130a   :  { %9402 = vmatpush3.bf16.msra.mxu1 %v10305_v12 }
0x130b   :  { %9424 = vmatpush3.bf16.msra.mxu0 %v10306_v39  ;;  %9403 = vmatprep.subr.bf16.mxu1 %v10307_v13 }
0x130c   :  { %9425 = vmatprep.subr.bf16.mxu0 %v10308_v14 }
0x130e   :  { %9404 = vmatpush3.bf16.msra.mxu1 %v10309_v17 }
0x130f   :  { %9426 = vmatpush3.bf16.msra.mxu0 %v10310_v18  ;;  %9433 = vmatprep.subr.bf16.mxu1 %v10311_v20 }
0x1310   :  { %9455 = vmatprep.subr.bf16.mxu0 %v10312_v21 }
0x1311   :  { %4001 = vmatmul.mubr.bf16.vlgmr.msra.gmra.mrb[88].mxu1 %v11446_v53  ;;  %v10319_v53 = vld [vmem:[%s12721_s19 + $0x350] sm:$0xff]  }
0x1312   :  { %4042 = vmatmul.mubr.bf16.vlgmr.msra.gmra.mrb[92].mxu0 %v11448_v36  ;;  %9434 = vmatpush3.bf16.msra.mxu1 %v10313_v19  ;;  %v10320_v36 = vld [vmem:[%s12721_s19 + $0x3d0] sm:$0xff]  }
0x1313   :  { %4082 = vmatprep.mubr.bf16.mxu1 %v11482_v26  ;;  %9456 = vmatpush3.bf16.msra.mxu0 %v10314_v22  ;;  %v10321_v26 = vld [vmem:[%s12721_s19 + $0x310] sm:$0xff]  }
0x1314   :  { %4123 = vmatprep.mubr.bf16.mxu0 %v11484_v3  ;;  %9435 = vmatprep.subr.bf16.mxu1 %v10315_v23  ;;  %v10323_v3 = vld [vmem:[%s12721_s19 + $0x358] sm:$0xff]  }
0x1315   :  { %9457 = vmatprep.subr.bf16.mxu0 %v10316_v24 }
0x1316   :  { %9436 = vmatpush3.bf16.msra.mxu1 %v10317_v25 }
0x1317   :  { %9458 = vmatpush3.bf16.msra.mxu0 %v10318_v45  ;;  %9437 = vmatprep.subr.bf16.mxu1 %v10319_v53 }
0x1318   :  { %9459 = vmatprep.subr.bf16.mxu0 %v10320_v36 }
0x131a   :  { %9438 = vmatpush3.bf16.msra.mxu1 %v10321_v26 }
0x131b   :  { %9460 = vmatpush3.bf16.msra.mxu0 %v10322_v30  ;;  %9439 = vmatprep.subr.bf16.mxu1 %v10323_v3 }
0x131c   :  { %9461 = vmatprep.subr.bf16.mxu0 %v10324_v35 }
0x131e   :  { %9440 = vmatpush3.bf16.msra.mxu1 %v10325_v37 }
0x131f   :  { %9462 = vmatpush3.bf16.msra.mxu0 %v10326_v38  ;;  %9441 = vmatprep.subr.bf16.mxu1 %v10327_v42 }
0x1320   :  { %9463 = vmatprep.subr.bf16.mxu0 %v10328_v43 }
0x1322   :  { %9442 = vmatpush3.bf16.msra.mxu1 %v10329_v47 }
0x1323   :  { %9464 = vmatpush3.bf16.msra.mxu0 %v10330_v48  ;;  %9443 = vmatprep.subr.bf16.mxu1 %v10331_v51 }
0x1324   :  { %9465 = vmatprep.subr.bf16.mxu0 %v10332_v52 }
0x1326   :  { %9444 = vmatpush3.bf16.msra.mxu1 %v10333_v7 }
0x1327   :  { %9466 = vmatpush3.bf16.msra.mxu0 %v10334_v56  ;;  %9445 = vmatprep.subr.bf16.mxu1 %v10335_v57 }
0x1328   :  { %9467 = vmatprep.subr.bf16.mxu0 %v10336_v58 }
0x132a   :  { %9446 = vmatpush3.bf16.msra.mxu1 %v10337_v63 }
0x132b   :  { %9468 = vmatpush3.bf16.msra.mxu0 %v10338_v1  ;;  %9447 = vmatprep.subr.bf16.mxu1 %v10339_v54 }
0x132c   :  { %9469 = vmatprep.subr.bf16.mxu0 %v10340_v55 }
0x132e   :  { %9448 = vmatpush3.bf16.msra.mxu1 %v10341_v59 }
0x132f   :  { %9470 = vmatpush3.bf16.msra.mxu0 %v10342_v60  ;;  %9956 = vmatprep.subr.bf16.mxu1 %v10580_v4 }
0x1330   :  { %9964 = vmatprep.subr.bf16.mxu0 %v10580_v4 }
0x1331   :  { %4083 = vmatmul.mubr.bf16.vlgmr.msra.gmra.mrb[92].mxu1 %v11478_v27 }
0x1332   :  { %4124 = vmatmul.mubr.bf16.vlgmr.msra.gmra.mrb[96].mxu0 %v11480_v28  ;;  %9960 = vmatprep.mubr.msk.bf16.mxu1 %vm10581_vm0, %v10580_v4 }
0x1333   :  { %9968 = vmatprep.mubr.msk.bf16.mxu0 %vm10581_vm0, %v10580_v4 }
0x13a4   :  { %v9317_v61 = vpop.f32.mrb[80].mxu1  ;;  %v9339_v62 = vpop.f32.mrb[84].mxu0 }
0x13a5   :  { %v9318_v49 = vpop.f32.mrb[81].mxu1  ;;  %v9340_v50 = vpop.f32.mrb[85].mxu0 }
0x13a6   :  { %v9319_v5 = vadd.f32 %v9318_v49, %v9317_v61  ;;  %v9341_v32 = vadd.f32 %v9340_v50, %v9339_v62  ;;  %v9320_v6 = vpop.f32.mrb[82].mxu1  ;;  %v9342_v27 = vpop.f32.mrb[86].mxu0 }
0x13a7   :  { %v9321_v8 = vpop.f32.mrb[83].mxu1  ;;  %v9343_v28 = vpop.f32.mrb[87].mxu0 }
0x13a8   :  { %v3839_v9 = vadd.f32 %v9319_v5, %v8483_v2  ;;  %v9322_v10 = vadd.f32 %v9321_v8, %v9320_v6  ;;  %v9344_v11 = vadd.f32 %v9343_v28, %v9342_v27 }
0x13aa   :  { %v3880_v12 = vadd.f32 %v9341_v32, %v3839_v9  ;;  %v3842_v39 = vadd.f32 %v9322_v10, %v8483_v2 }
0x13ac   :  { %v3883_v13 = vadd.f32 %v9344_v11, %v3842_v39 }
0x13c4   :  { %v9361_v14 = vpop.f32.mrb[84].mxu1  ;;  %v9383_v17 = vpop.f32.mrb[88].mxu0 }
0x13c5   :  { %v9362_v18 = vpop.f32.mrb[85].mxu1  ;;  %v9384_v20 = vpop.f32.mrb[89].mxu0 }
0x13c6   :  { %v9363_v21 = vadd.f32 %v9362_v18, %v9361_v14  ;;  %v9385_v19 = vadd.f32 %v9384_v20, %v9383_v17  ;;  %v9364_v22 = vpop.f32.mrb[86].mxu1  ;;  %v9386_v23 = vpop.f32.mrb[90].mxu0 }
0x13c7   :  { %v9365_v24 = vpop.f32.mrb[87].mxu1  ;;  %v9387_v25 = vpop.f32.mrb[91].mxu0 }
0x13c8   :  { %v3921_v45 = vadd.f32 %v9363_v21, %v3880_v12  ;;  %v9366_v53 = vadd.f32 %v9365_v24, %v9364_v22  ;;  %v9388_v36 = vadd.f32 %v9387_v25, %v9386_v23  ;;  %v10344_v25 = vld [vmem:[%s12760_s11 + $0x40] sm:$0xff]  }
0x13c9   :  { %9965 = vmatpush3.bf16.msra.mxu0 %v10344_v25 }
0x13ca   :  { %v3962_v26 = vadd.f32 %v9385_v19, %v3921_v45  ;;  %v3924_v30 = vadd.f32 %v9366_v53, %v3883_v13  ;;  %9966 = vmatprep.subr.bf16.mxu0 %v10580_v4  ;;  %v10345_v45 = vld [vmem:[%s12759_s6 + $0x48] sm:$0xff]  }
0x13cb   :  { %v10346_v53 = vld [vmem:[%s12760_s11 + $0x48] sm:$0xff]  }
0x13cc   :  { %v3965_v3 = vadd.f32 %v9388_v36, %v3924_v30 }
0x13cd   :  { %9967 = vmatpush3.bf16.msra.mxu0 %v10346_v53  ;;  %v11797_v53 = vld [vmem:[%s12717_s2] sm:$0xff] }
0x13ce   :  { %9980 = vmatprep.subr.bf16.mxu0 %v10580_v4 }
0x13e4   :  { %v9405_v35 = vpop.f32.mrb[88].mxu1 }
0x13e5   :  { %v9427_v37 = vpop.f32.mrb[92].mxu0  ;;  %v9406_v38 = vpop.f32.mrb[89].mxu1 }
0x13e6   :  { %v9407_v42 = vadd.f32 %v9406_v38, %v9405_v35  ;;  %v9428_v43 = vpop.f32.mrb[93].mxu0  ;;  %v9408_v47 = vpop.f32.mrb[90].mxu1 }
0x13e7   :  { %v9429_v48 = vadd.f32 %v9428_v43, %v9427_v37  ;;  %v9430_v51 = vpop.f32.mrb[94].mxu0  ;;  %v9409_v52 = vpop.f32.mrb[91].mxu1 }
0x13e8   :  { %v4003_v7 = vadd.f32 %v9407_v42, %v3962_v26  ;;  %v9410_v56 = vadd.f32 %v9409_v52, %v9408_v47  ;;  %v9431_v57 = vpop.f32.mrb[95].mxu0  ;;  %v8612_v42 = vld [vmem:[%s12726_s21] ss:$0 sm:$0xff] }
0x13e9   :  { %v9432_v58 = vadd.f32 %v9431_v57, %v9430_v51  ;;  %v8613_v52 = vld [vmem:[%s12727_s22] ss:$0 sm:$0xff] }
0x13ea   :  { %v4044_v63 = vadd.f32 %v9429_v48, %v4003_v7  ;;  %v4006_v1 = vadd.f32 %v9410_v56, %v3965_v3 }
0x13ec   :  { %v4047_v54 = vadd.f32 %v9432_v58, %v4006_v1  ;;  %v10347_v58 = vld [vmem:[%s12763_s28 + $0x40] sm:$0xff]   ;;  %v10348_v1 = vld [vmem:[%s12763_s28 + $0x48] sm:$0xff]  }
0x1404   :  { %v9449_v55 = vpop.f32.mrb[92].mxu1 }
0x1405   :  { %v9471_v59 = vpop.f32.mrb[96].mxu0  ;;  %v9450_v60 = vpop.f32.mrb[93].mxu1 }
0x1406   :  { %v9451_v61 = vadd.f32 %v9450_v60, %v9449_v55  ;;  %v9472_v62 = vpop.f32.mrb[97].mxu0  ;;  %v9452_v2 = vpop.f32.mrb[94].mxu1  ;;  %v8619_v55 = vld [vmem:[%s12765_s5 + $0x4] ss:$0 sm:$0xff] }
0x1407   :  { %v9473_v49 = vadd.f32 %v9472_v62, %v9471_v59  ;;  %v9474_v50 = vpop.f32.mrb[98].mxu0  ;;  %v9453_v5 = vpop.f32.mrb[95].mxu1 }
0x1408   :  { %v4085_v32 = vadd.f32 %v9451_v61, %v4044_v63  ;;  %v9454_v6 = vadd.f32 %v9453_v5, %v9452_v2  ;;  %v9475_v27 = vpop.f32.mrb[99].mxu0 }
0x1409   :  { %v9476_v8 = vadd.f32 %v9475_v27, %v9474_v50 }
0x140a   :  { %v4126_v28 = vadd.f32 %v9473_v49, %v4085_v32  ;;  %v4088_v9 = vadd.f32 %v9454_v6, %v4047_v54  ;;  %v8628_v54 = vld [vmem:[%s12764_s9 + $0x4] ss:$0 sm:$0xff] }
0x140c   :  { %v4129_v10 = vadd.f32 %v9476_v8, %v4088_v9  ;;  %v4132_v11 = vadd.f32 %v4126_v28, %v11166_v15 }
0x140e   :  { %v4136_v12 = vsel %vm209_vm2, %v4132_v11, 0.0  ;;  %v4133_v39 = vadd.f32 %v4129_v10, %v11168_v16  ;;  %v10343_v16 = vld [vmem:[%s12759_s6 + $0x40] sm:$0xff]  }
0x140f   :  { %4137 = vadd.xlane.f32.xlu1 %v4136_v12  ;;  %9957 = vmatpush3.bf16.msra.mxu1 %v10343_v16 }
0x1410   :  { %v4139_v13 = vsel %vm209_vm2, %v4133_v39, 0.0  ;;  %9958 = vmatprep.subr.bf16.mxu1 %v10580_v4 }
0x1411   :  { %4140 = vadd.xlane.f32.xlu0 %v4139_v13 }
0x1413   :  { %9959 = vmatpush3.bf16.msra.mxu1 %v10345_v45 }
0x1414   :  { %9972 = vmatprep.subr.bf16.mxu1 %v10580_v4 }
0x149c   :  { %v4138_v14 = vpop.xlane.xlu1 %4137 }
0x149d   :  { %v4142_v17 = vmul.f32 0.03125, %v4138_v14 }
0x149e   :  { %v4141_v18 = vpop.xlane.xlu0 %4140 }
0x149f   :  { %v4144_v20 = vsub.f32 %v4132_v11, %v4142_v17  ;;  %v4143_v21 = vmul.f32 0.03125, %v4141_v18  ;;  %v8637_v11 = vld [vmem:[%s12766_s30 + $0x4] ss:$0 sm:$0xff] }
0x14a1   :  { %v4145_v19 = vsub.f32 %v4133_v39, %v4143_v21  ;;  %v4146_v22 = vmul.f32 %v4144_v20, %v4144_v20 }
0x14a3   :  { %v4148_v23 = vsel %vm209_vm2, %v4146_v22, 0.0  ;;  %v4147_v24 = vmul.f32 %v4145_v19, %v4145_v19 }
0x14a4   :  { %4149 = vadd.xlane.f32.xlu1 %v4148_v23 }
0x14a5   :  { %v4151_v15 = vsel %vm209_vm2, %v4147_v24, 0.0 }
0x14a6   :  { %4152 = vadd.xlane.f32.xlu0 %v4151_v15 }
0x1531   :  { %v4150_v36 = vpop.xlane.xlu1 %4149 }
0x1532   :  { %v4154_v26 = vmul.f32 0.03125, %v4150_v36 }
0x1533   :  { %v4153_v30 = vpop.xlane.xlu0 %4152 }
0x1534   :  { %v4156_v3 = vadd.f32 1e-05, %v4154_v26  ;;  %v4155_v35 = vmul.f32 0.03125, %v4153_v30 }
0x1536   :  { %10534 = vrsqrt.f32 %v4156_v3  ;;  %v4157_v37 = vadd.f32 1e-05, %v4155_v35 }
0x1538   :  { %10536 = vrsqrt.f32 %v4157_v37 }
0x1540   :  { %v10535_v38 = vpop.eup %10534 }
0x1541   :  { %v4160_v43 = vmul.f32 %v10535_v38, %v4144_v20 }
0x1542   :  { %v10537_v47 = vpop.eup %10536 }
0x1543   :  { %v4168_v48 = vmul.f32 %v8612_v42, %v4160_v43  ;;  %v4161_v51 = vmul.f32 %v10537_v47, %v4145_v19 }
0x1545   :  { %v4169_v7 = vmul.f32 %v8612_v42, %v4161_v51  ;;  %v11743_v56 = vadd.f32 %v8613_v52, %v4168_v48 }
0x1547   :  { %v11745_v57 = vadd.f32 %v8613_v52, %v4169_v7 }
0x1549   :  { %v11752_v63 = vpack.c.bf16 %v11745_v57, %v11743_v56 }
0x154b   :  { %9961 = vmatmul.mubr.msk.bf16.vlgmr.msra.gmra.mrb[96].mxu1 %vm209_vm2, %v11752_v63  ;;  %9969 = vmatmul.mubr.msk.bf16.vlgmr.msra.gmra.mrb[100].mxu0 %vm209_vm2, %v11752_v63 }
0x154c   :  { %9973 = vmatpush3.bf16.msra.mxu1 %v10347_v58  ;;  %9976 = vmatprep.mubr.msk.bf16.mxu1 %vm10581_vm0, %v10580_v4 }
0x154d   :  { %9974 = vmatprep.subr.bf16.mxu1 %v10580_v4  ;;  %9982 = vmatprep.mubr.msk.bf16.mxu0 %vm10581_vm0, %v10580_v4 }
0x1550   :  { %9975 = vmatpush3.bf16.msra.mxu1 %v10348_v1 }
0x1551   :  { %9986 = vmatprep.subr.bf16.mxu1 %v10580_v4 }
0x1553   :  { %9977 = vmatmul.mubr.msk.bf16.vlgmr.msra.gmra.mrb[100].mxu1 %vm209_vm2, %v11752_v63 }
0x1554   :  { %9988 = vmatprep.mubr.msk.bf16.mxu1 %vm10581_vm0, %v10580_v4 }
0x161e   :  { %v4241_v59 = vpop.f32.mrb[96].mxu1  ;;  %v4309_v60 = vpop.f32.mrb[100].mxu0 }
0x161f   :  { %v4310_v61 = vadd.f32 %v8628_v54, %v4309_v60  ;;  %v9962_v62 = vpop.f32.mrb[97].mxu1  ;;  %v9970_v2 = vpop.f32.mrb[101].mxu0  ;;  %v4242_v5 = vadd.f32 %v8619_v55, %v4241_v59 }
0x1620   :  { %v4244_v49 = vpop.f32.mrb[98].mxu1  ;;  %v4312_v50 = vpop.f32.mrb[102].mxu0 }
0x1621   :  { %v4384_v32 = vpack.c.bf16 %v4310_v61, %v4310_v61  ;;  %v4313_v6 = vadd.f32 %v8628_v54, %v4312_v50  ;;  %v9963_v27 = vpop.f32.mrb[99].mxu1  ;;  %v9971_v8 = vpop.f32.mrb[103].mxu0  ;;  %v4245_v9 = vadd.f32 %v8619_v55, %v4244_v49  ;;  %v4248_v12 = vmul.f32 0.35355338, %v4242_v5 }
0x1622   :  { %v10350_v8 = vld [vmem:[%s12760_s11 + $0x50] sm:$0xff]  }
0x1623   :  { %v4392_v28 = vsel %vm390_vm3, %v4384_v32, 0  ;;  %v4385_v10 = vpack.c.bf16 %v4313_v6, %v4313_v6  ;;  %v4249_v14 = vmul.f32 0.35355338, %v4245_v9  ;;  %v4382_v21 = vpack.c.bf16 %v4248_v12, %v4248_v12  ;;  %v10349_v32 = vld [vmem:[%s12759_s6 + $0x50] sm:$0xff]   ;;  %v10351_v9 = vld [vmem:[%s12759_s6 + $0x58] sm:$0xff]  }
0x1624   :  { %9981 = vmatpush3.bf16.xpose.msra.mxu0 %v4392_v28  ;;  %v10354_v12 = vld [vmem:[%s12763_s28 + $0x58] sm:$0xff]  }
0x1625   :  { %v4438_v39 = vsel %vm390_vm3, %v4385_v10, 0  ;;  %9992 = vmatprep.subr.bf16.mxu0 %v10580_v4  ;;  %v4383_v24 = vpack.c.bf16 %v4249_v14, %v4249_v14  ;;  %v10352_v10 = vld [vmem:[%s12760_s11 + $0x58] sm:$0xff]  }
0x1626   :  { %v4375_v13 = vpop.f32.mrb[100].mxu1  ;;  %9987 = vmatpush3.bf16.xpose.msra.mxu1 %v4438_v39 }
0x1627   :  { %v4376_v17 = vadd.f32 %v8637_v11, %v4375_v13  ;;  %v9978_v18 = vpop.f32.mrb[101].mxu1  ;;  %9998 = vmatprep.subr.bf16.mxu1 %v10580_v4 }
0x1628   :  { %v4378_v20 = vpop.f32.mrb[102].mxu1 }
0x1629   :  { %v4386_v19 = vpack.c.bf16 %v4376_v17, %v4376_v17  ;;  %v4379_v22 = vadd.f32 %v8637_v11, %v4378_v20  ;;  %v9979_v23 = vpop.f32.mrb[103].mxu1  ;;  %v10353_v11 = vld [vmem:[%s12763_s28 + $0x50] sm:$0xff]  }
0x162b   :  { %v4508_v15 = vsel %vm510_vm4, %v4386_v19, 0  ;;  %v4387_v16 = vpack.c.bf16 %v4379_v22, %v4379_v22  ;;  %9983 = vmatmul.mubr.msk.bf16.vlgmr.msra.gmra.mrb[104].mxu0 %vm390_vm3, %v4382_v21 }
0x162c   :  { %9993 = vmatpush3.bf16.msra.mxu0 %v4508_v15  ;;  %9994 = vmatprep.mubr.msk.bf16.mxu0 %vm10581_vm0, %v10580_v4 }
0x162d   :  { %v4554_v25 = vsel %vm510_vm4, %v4387_v16, 0  ;;  %9989 = vmatmul.mubr.msk.bf16.vlgmr.msra.gmra.mrb[104].mxu1 %vm390_vm3, %v4383_v24  ;;  %10004 = vmatprep.subr.bf16.mxu0 %v10580_v4  ;;  %v8660_v24 = vld [vmem:[%s12764_s9 + $0x5] ss:$0 sm:$0xff] }
0x162e   :  { %9999 = vmatpush3.bf16.msra.mxu1 %v4554_v25  ;;  %10000 = vmatprep.mubr.msk.bf16.mxu1 %vm10581_vm0, %v10580_v4  ;;  %v8651_v16 = vld [vmem:[%s12765_s5 + $0x5] ss:$0 sm:$0xff] }
0x162f   :  { %10012 = vmatprep.subr.bf16.mxu1 %v10580_v4 }
0x16fe   :  { %v4428_v45 = vpop.f32.mrb[104].mxu0 }
0x16ff   :  { %v4429_v36 = vadd.f32 %v11797_v53, %v4428_v45  ;;  %v9984_v26 = vpop.f32.mrb[105].mxu0 }
0x1700   :  { %v4431_v30 = vpop.f32.mrb[106].mxu0  ;;  %v4474_v3 = vpop.f32.mrb[104].mxu1 }
0x1701   :  { %v4475_v35 = vadd.f32 %v11797_v53, %v4474_v3  ;;  %v9985_v37 = vpop.f32.mrb[107].mxu0  ;;  %v9990_v38 = vpop.f32.mrb[105].mxu1  ;;  %v4480_v42 = vsel %vm390_vm3, %v4429_v36, -inf }
0x1702   :  { %4481 = vmax.xlane.f32.xlu0 %v4480_v42  ;;  %v4477_v43 = vpop.f32.mrb[106].mxu1 }
0x1703   :  { %v9991_v47 = vpop.f32.mrb[107].mxu1  ;;  %v4483_v48 = vsel %vm390_vm3, %v4475_v35, -inf  ;;  %v8669_v43 = vld [vmem:[%s12766_s30 + $0x5] ss:$0 sm:$0xff] }
0x1704   :  { %4484 = vmax.xlane.f32.xlu1 %v4483_v48 }
0x178f   :  { %v4482_v51 = vpop.xlane.xlu0 %4481 }
0x1790   :  { %v4486_v52 = vsub.f32 %v4429_v36, %v4482_v51 }
0x1791   :  { %v4485_v7 = vpop.xlane.xlu1 %4484 }
0x1792   :  { %v4488_v58 = vmul.f32 1.442695, %v4486_v52  ;;  %v4487_v1 = vsub.f32 %v4475_v35, %v4485_v7 }
0x1794   :  { %10538 = vpow2.f32 %v4488_v58  ;;  %v4490_v54 = vmul.f32 1.442695, %v4487_v1 }
0x1796   :  { %10540 = vpow2.f32 %v4490_v54 }
0x179e   :  { %v10539_v55 = vpop.eup %10538 }
0x179f   :  { %v4492_v59 = vsel %vm390_vm3, %v10539_v55, 0.0 }
0x17a0   :  { %v10541_v60 = vpop.eup %10540  ;;  %4493 = vadd.xlane.f32.xlu0 %v4492_v59 }
0x17a1   :  { %v4495_v61 = vsel %vm390_vm3, %v10541_v60, 0.0 }
0x17a2   :  { %4496 = vadd.xlane.f32.xlu1 %v4495_v61 }
0x182d   :  { %v4494_v62 = vpop.xlane.xlu0 %4493 }
0x182e   :  { %10542 = vrcp.f32 %v4494_v62 }
0x182f   :  { %v4497_v2 = vpop.xlane.xlu1 %4496 }
0x1830   :  { %10544 = vrcp.f32 %v4497_v2 }
0x1838   :  { %v10543_v49 = vpop.eup %10542 }
0x1839   :  { %v4500_v50 = vmul.f32 %v10543_v49, %v10539_v55 }
0x183a   :  { %v10545_v5 = vpop.eup %10544 }
0x183b   :  { %v4501_v6 = vmul.f32 %v10545_v5, %v10541_v60  ;;  %v4502_v27 = vpack.c.bf16 %v4500_v50, %v4500_v50 }
0x183d   :  { %9995 = vmatmul.mubr.msk.bf16.vlgmr.msra.gmra.mrb[108].mxu0 %vm390_vm3, %v4502_v27  ;;  %v4503_v28 = vpack.c.bf16 %v4501_v6, %v4501_v6 }
0x183e   :  { %10005 = vmatpush3.bf16.msra.mxu0 %v10349_v32  ;;  %10008 = vmatprep.mubr.msk.bf16.mxu0 %vm10581_vm0, %v10580_v4 }
0x183f   :  { %10001 = vmatmul.mubr.msk.bf16.vlgmr.msra.gmra.mrb[108].mxu1 %vm390_vm3, %v4503_v28  ;;  %10006 = vmatprep.subr.bf16.mxu0 %v10580_v4 }
0x1840   :  { %10013 = vmatpush3.bf16.msra.mxu1 %v10350_v8  ;;  %10016 = vmatprep.mubr.msk.bf16.mxu1 %vm10581_vm0, %v10580_v4 }
0x1841   :  { %10014 = vmatprep.subr.bf16.mxu1 %v10580_v4 }
0x1842   :  { %10007 = vmatpush3.bf16.msra.mxu0 %v10351_v9 }
0x1843   :  { %10020 = vmatprep.subr.bf16.mxu0 %v10580_v4 }
0x1844   :  { %10015 = vmatpush3.bf16.msra.mxu1 %v10352_v10 }
0x1845   :  { %10009 = vmatmul.mubr.msk.bf16.vlgmr.msra.gmra.mrb[112].mxu0 %vm209_vm2, %v11752_v63  ;;  %10028 = vmatprep.subr.bf16.mxu1 %v10580_v4 }
0x1846   :  { %10021 = vmatpush3.bf16.msra.mxu0 %v10353_v11  ;;  %10024 = vmatprep.mubr.msk.bf16.mxu0 %vm10581_vm0, %v10580_v4 }
0x1847   :  { %10017 = vmatmul.mubr.msk.bf16.vlgmr.msra.gmra.mrb[112].mxu1 %vm209_vm2, %v11752_v63  ;;  %10022 = vmatprep.subr.bf16.mxu0 %v10580_v4 }
0x1848   :  { %10030 = vmatprep.mubr.msk.bf16.mxu1 %vm10581_vm0, %v10580_v4 }
0x184a   :  { %10023 = vmatpush3.bf16.msra.mxu0 %v10354_v12 }
0x184b   :  { %10034 = vmatprep.subr.bf16.mxu0 %v10580_v4 }
0x184d   :  { %10025 = vmatmul.mubr.msk.bf16.vlgmr.msra.gmra.mrb[116].mxu0 %vm209_vm2, %v11752_v63 }
0x184e   :  { %10036 = vmatprep.mubr.msk.bf16.mxu0 %vm10581_vm0, %v10580_v4 }
0x1910   :  { %v11847_v39 = vpop.f32.mrb[108].mxu0 }
0x1911   :  { %v9996_v13 = vpop.f32.mrb[109].mxu0 }
0x1912   :  { %v4547_v14 = vpop.f32.mrb[110].mxu0  ;;  %v11849_v17 = vpop.f32.mrb[108].mxu1 }
0x1913   :  { %v4596_v18 = vpack.c.bf16 %v11849_v17, %v11847_v39  ;;  %v9997_v20 = vpop.f32.mrb[111].mxu0  ;;  %v10002_v21 = vpop.f32.mrb[109].mxu1 }
0x1914   :  { %v4593_v19 = vpop.f32.mrb[110].mxu1 }
0x1915   :  { %v10003_v22 = vpop.f32.mrb[111].mxu1 }
0x1918   :  { %v4658_v23 = vpop.f32.mrb[112].mxu0 }
0x1919   :  { %v10010_v15 = vpop.f32.mrb[113].mxu0  ;;  %v4659_v35 = vadd.f32 %v8651_v16, %v4658_v23 }
0x191a   :  { %v4661_v25 = vpop.f32.mrb[114].mxu0  ;;  %v4726_v45 = vpop.f32.mrb[112].mxu1 }
0x191b   :  { %v4727_v36 = vadd.f32 %v8660_v24, %v4726_v45  ;;  %v10011_v26 = vpop.f32.mrb[115].mxu0  ;;  %v10018_v30 = vpop.f32.mrb[113].mxu1  ;;  %v4662_v47 = vadd.f32 %v8651_v16, %v4661_v25  ;;  %v4665_v7 = vmul.f32 0.35355338, %v4659_v35 }
0x191c   :  { %v4729_v3 = vpop.f32.mrb[114].mxu1 }
0x191d   :  { %v4801_v37 = vpack.c.bf16 %v4727_v36, %v4727_v36  ;;  %v4730_v38 = vadd.f32 %v8660_v24, %v4729_v3  ;;  %v10019_v42 = vpop.f32.mrb[115].mxu1  ;;  %v4666_v59 = vmul.f32 0.35355338, %v4662_v47  ;;  %v4799_v2 = vpack.c.bf16 %v4665_v7, %v4665_v7 }
0x191f   :  { %v4809_v48 = vsel %vm390_vm3, %v4801_v37, 0  ;;  %v4802_v51 = vpack.c.bf16 %v4730_v38, %v4730_v38  ;;  %v4800_v50 = vpack.c.bf16 %v4666_v59, %v4666_v59  ;;  %v8677_v37 = vld [vmem:[%s12718_s13 + $0x14] sm:$0xf] }
0x1920   :  { %v4792_v52 = vpop.f32.mrb[116].mxu0  ;;  %10029 = vmatpush3.bf16.xpose.msra.mxu1 %v4809_v48 }
0x1921   :  { %v4855_v58 = vsel %vm390_vm3, %v4802_v51, 0  ;;  %v4793_v1 = vadd.f32 %v8669_v43, %v4792_v52  ;;  %v10026_v54 = vpop.f32.mrb[117].mxu0  ;;  %10040 = vmatprep.subr.bf16.mxu1 %v10580_v4  ;;  %v5020_v51 = vsel %vm510_vm4, %v8677_v37, 0 }
0x1922   :  { %v4795_v55 = vpop.f32.mrb[118].mxu0  ;;  %10035 = vmatpush3.bf16.xpose.msra.mxu0 %v4855_v58  ;;  %v10355_v58 = vld [vmem:[%s12760_s11 + $0x60] sm:$0xff]  }
0x1923   :  { %v4803_v60 = vpack.c.bf16 %v4793_v1, %v4793_v1  ;;  %v4796_v61 = vadd.f32 %v8669_v43, %v4795_v55  ;;  %v10027_v62 = vpop.f32.mrb[119].mxu0  ;;  %10046 = vmatprep.subr.bf16.mxu0 %v10580_v4  ;;  %v8645_v43 = vld [vmem:[%s12718_s13 + $0x10] sm:$0xf]  ;;  %v10356_v1 = vld [vmem:[%s12760_s11 + $0x68] sm:$0xff]   ;;  %v10357_v55 = vld [vmem:[%s12759_s6 + $0x60] sm:$0xff]  }
0x1924   :  { %v5067_v7 = vsel %vm510_vm4, %v8645_v43, 0 }
0x1925   :  { %v4804_v49 = vpack.c.bf16 %v4796_v61, %v4796_v61  ;;  %v4925_v5 = vsel %vm510_vm4, %v4803_v60, 0 }
0x1927   :  { %10031 = vmatmul.mubr.msk.bf16.vlgmr.msra.gmra.mrb[116].mxu1 %vm390_vm3, %v4799_v2  ;;  %v4971_v32 = vsel %vm510_vm4, %v4804_v49, 0  ;;  %v10358_v49 = vld [vmem:[%s12759_s6 + $0x68] sm:$0xff]  }
0x1928   :  { %10041 = vmatpush3.bf16.msra.mxu1 %v4925_v5  ;;  %10042 = vmatprep.mubr.msk.bf16.mxu1 %vm10581_vm0, %v10580_v4  ;;  %v10359_v5 = vld [vmem:[%s12763_s28 + $0x60] sm:$0xff]  }
0x1929   :  { %10037 = vmatmul.mubr.msk.bf16.vlgmr.msra.gmra.mrb[120].mxu0 %vm390_vm3, %v4800_v50  ;;  %10052 = vmatprep.subr.bf16.mxu1 %v10580_v4 }
0x192a   :  { %10047 = vmatpush3.bf16.msra.mxu0 %v4971_v32  ;;  %10048 = vmatprep.mubr.msk.bf16.mxu0 %vm10581_vm0, %v10580_v4 }
0x192b   :  { %10058 = vmatprep.subr.bf16.mxu0 %v10580_v4 }
0x19fa   :  { %v4845_v6 = vpop.f32.mrb[116].mxu1 }
0x19fb   :  { %v4846_v27 = vadd.f32 %v11797_v53, %v4845_v6  ;;  %v10032_v8 = vpop.f32.mrb[117].mxu1 }
0x19fc   :  { %v4848_v28 = vpop.f32.mrb[118].mxu1  ;;  %v4891_v9 = vpop.f32.mrb[120].mxu0  ;;  %v10360_v8 = vld [vmem:[%s12763_s28 + $0x68] sm:$0xff]  }
0x19fd   :  { %v4892_v10 = vadd.f32 %v11797_v53, %v4891_v9  ;;  %v10033_v11 = vpop.f32.mrb[119].mxu1  ;;  %v10038_v12 = vpop.f32.mrb[121].mxu0  ;;  %v4897_v13 = vsel %vm390_vm3, %v4846_v27, -inf  ;;  %v8694_v28 = vld [vmem:[%s12764_s9 + $0x6] ss:$0 sm:$0xff] }
0x19fe   :  { %v4894_v14 = vpop.f32.mrb[122].mxu0  ;;  %4898 = vmax.xlane.f32.xlu1 %v4897_v13 }
0x19ff   :  { %v10039_v20 = vpop.f32.mrb[123].mxu0  ;;  %v4900_v21 = vsel %vm390_vm3, %v4892_v10, -inf }
0x1a00   :  { %4901 = vmax.xlane.f32.xlu0 %v4900_v21 }
0x1a8b   :  { %v4899_v19 = vpop.xlane.xlu1 %4898 }
0x1a8c   :  { %v4903_v22 = vsub.f32 %v4846_v27, %v4899_v19 }
0x1a8d   :  { %v4902_v23 = vpop.xlane.xlu0 %4901 }
0x1a8e   :  { %v4905_v24 = vmul.f32 1.442695, %v4903_v22  ;;  %v4904_v15 = vsub.f32 %v4892_v10, %v4902_v23 }
0x1a90   :  { %10546 = vpow2.f32 %v4905_v24  ;;  %v4907_v16 = vmul.f32 1.442695, %v4904_v15 }
0x1a92   :  { %10548 = vpow2.f32 %v4907_v16 }
0x1a9a   :  { %v10547_v25 = vpop.eup %10546 }
0x1a9b   :  { %v4909_v45 = vsel %vm390_vm3, %v10547_v25, 0.0 }
0x1a9c   :  { %v10549_v36 = vpop.eup %10548  ;;  %4910 = vadd.xlane.f32.xlu1 %v4909_v45 }
0x1a9d   :  { %v4912_v26 = vsel %vm390_vm3, %v10549_v36, 0.0 }
0x1a9e   :  { %4913 = vadd.xlane.f32.xlu0 %v4912_v26 }
0x1b29   :  { %v4911_v30 = vpop.xlane.xlu1 %4910 }
0x1b2a   :  { %10550 = vrcp.f32 %v4911_v30 }
0x1b2b   :  { %v4914_v3 = vpop.xlane.xlu0 %4913 }
0x1b2c   :  { %10552 = vrcp.f32 %v4914_v3 }
0x1b34   :  { %v10551_v35 = vpop.eup %10550 }
0x1b35   :  { %v4917_v38 = vmul.f32 %v10551_v35, %v10547_v25 }
0x1b36   :  { %v10553_v42 = vpop.eup %10552 }
0x1b37   :  { %v4918_v47 = vmul.f32 %v10553_v42, %v10549_v36  ;;  %v4919_v48 = vpack.c.bf16 %v4917_v38, %v4917_v38  ;;  %v8685_v36 = vld [vmem:[%s12765_s5 + $0x6] ss:$0 sm:$0xff] }
0x1b39   :  { %10043 = vmatmul.mubr.msk.bf16.vlgmr.msra.gmra.mrb[120].mxu1 %vm390_vm3, %v4919_v48  ;;  %v4920_v52 = vpack.c.bf16 %v4918_v47, %v4918_v47  ;;  %v8703_v48 = vld [vmem:[%s12766_s30 + $0x6] ss:$0 sm:$0xff] }
0x1b3a   :  { %10053 = vmatpush3.bf16.msra.mxu1 %v5020_v51  ;;  %10054 = vmatprep.mubr.msk.bf16.mxu1 %vm10581_vm0, %v10580_v4 }
0x1b3b   :  { %10049 = vmatmul.mubr.msk.bf16.vlgmr.msra.gmra.mrb[124].mxu0 %vm390_vm3, %v4920_v52  ;;  %10064 = vmatprep.subr.bf16.mxu1 %v10580_v4 }
0x1b3c   :  { %10059 = vmatpush3.bf16.msra.mxu0 %v5067_v7  ;;  %10060 = vmatprep.mubr.msk.bf16.mxu0 %vm10581_vm0, %v10580_v4 }
0x1b3d   :  { %10072 = vmatprep.subr.bf16.mxu0 %v10580_v4 }
0x1b43   :  { %10061 = vmatmul.mubr.msk.bf16.vlgmr.msra.gmra.mrb[128].mxu0 %vm390_vm3, %v4596_v18 }
0x1b44   :  { %10073 = vmatpush3.bf16.msra.mxu0 %v10355_v58  ;;  %10076 = vmatprep.mubr.msk.bf16.mxu0 %vm10581_vm0, %v10580_v4 }
0x1b45   :  { %10074 = vmatprep.subr.bf16.mxu0 %v10580_v4 }
0x1b48   :  { %10075 = vmatpush3.bf16.msra.mxu0 %v10356_v1 }
0x1b49   :  { %10088 = vmatprep.subr.bf16.mxu0 %v10580_v4 }
0x1b4b   :  { %10077 = vmatmul.mubr.msk.bf16.vlgmr.msra.gmra.mrb[132].mxu0 %vm209_vm2, %v11752_v63 }
0x1b4c   :  { %10090 = vmatprep.mubr.msk.bf16.mxu0 %vm10581_vm0, %v10580_v4 }
0x1c0c   :  { %v4961_v39 = vpop.f32.mrb[120].mxu1 }
0x1c0d   :  { %v10044_v17 = vpop.f32.mrb[121].mxu1 }
0x1c0e   :  { %v4964_v18 = vpop.f32.mrb[122].mxu1  ;;  %v5007_v54 = vpop.f32.mrb[124].mxu0 }
0x1c0f   :  { %v5013_v59 = vpack.c.bf16 %v5007_v54, %v4961_v39  ;;  %v10045_v60 = vpop.f32.mrb[123].mxu1  ;;  %v10050_v61 = vpop.f32.mrb[125].mxu0 }
0x1c10   :  { %v5010_v62 = vpop.f32.mrb[126].mxu0 }
0x1c11   :  { %v10051_v2 = vpop.f32.mrb[127].mxu0  ;;  %10055 = vmatmul.mubr.msk.bf16.vlgmr.msra.gmra.mrb[124].mxu1 %vm390_vm3, %v5013_v59 }
0x1c12   :  { %10065 = vmatpush3.bf16.msra.mxu1 %v10357_v55  ;;  %10068 = vmatprep.mubr.msk.bf16.mxu1 %vm10581_vm0, %v10580_v4 }
0x1c13   :  { %10066 = vmatprep.subr.bf16.mxu1 %v10580_v4 }
0x1c16   :  { %10067 = vmatpush3.bf16.msra.mxu1 %v10358_v49  ;;  %v5103_v50 = vpop.f32.mrb[128].mxu0 }
0x1c17   :  { %v10062_v32 = vpop.f32.mrb[129].mxu0  ;;  %10080 = vmatprep.subr.bf16.mxu1 %v10580_v4 }
0x1c18   :  { %v5106_v6 = vpop.f32.mrb[130].mxu0 }
0x1c19   :  { %v10063_v27 = vpop.f32.mrb[131].mxu0  ;;  %10069 = vmatmul.mubr.msk.bf16.vlgmr.msra.gmra.mrb[128].mxu1 %vm209_vm2, %v11752_v63 }
0x1c1a   :  { %10081 = vmatpush3.bf16.msra.mxu1 %v10359_v5  ;;  %10084 = vmatprep.mubr.msk.bf16.mxu1 %vm10581_vm0, %v10580_v4 }
0x1c1b   :  { %10082 = vmatprep.subr.bf16.mxu1 %v10580_v4 }
0x1c1e   :  { %10083 = vmatpush3.bf16.msra.mxu1 %v10360_v8  ;;  %v5237_v9 = vpop.f32.mrb[132].mxu0 }
0x1c1f   :  { %v5238_v10 = vadd.f32 %v8694_v28, %v5237_v9  ;;  %v10078_v11 = vpop.f32.mrb[133].mxu0  ;;  %10094 = vmatprep.subr.bf16.mxu1 %v10580_v4 }
0x1c20   :  { %v5240_v12 = vpop.f32.mrb[134].mxu0 }
0x1c21   :  { %v5312_v13 = vpack.c.bf16 %v5238_v10, %v5238_v10  ;;  %v5241_v14 = vadd.f32 %v8694_v28, %v5240_v12  ;;  %v10079_v20 = vpop.f32.mrb[135].mxu0  ;;  %10085 = vmatmul.mubr.msk.bf16.vlgmr.msra.gmra.mrb[132].mxu1 %vm209_vm2, %v11752_v63 }
0x1c22   :  { %10096 = vmatprep.mubr.msk.bf16.mxu1 %vm10581_vm0, %v10580_v4 }
0x1c23   :  { %v5320_v21 = vsel %vm390_vm3, %v5312_v13, 0  ;;  %v5313_v19 = vpack.c.bf16 %v5241_v14, %v5241_v14 }
0x1c24   :  { %10089 = vmatpush3.bf16.xpose.msra.mxu0 %v5320_v21 }
0x1c25   :  { %v5366_v22 = vsel %vm390_vm3, %v5313_v19, 0  ;;  %10100 = vmatprep.subr.bf16.mxu0 %v10580_v4 }
0x1c27   :  { %10095 = vmatpush3.bf16.xpose.msra.mxu1 %v5366_v22 }
0x1c28   :  { %10106 = vmatprep.subr.bf16.mxu1 %v10580_v4 }
0x1ce4   :  { %v5056_v23 = vpop.f32.mrb[124].mxu1 }
0x1ce5   :  { %v11950_v24 = vadd.f32 %v5103_v50, %v5056_v23  ;;  %v10056_v15 = vpop.f32.mrb[125].mxu1 }
0x1ce6   :  { %v5059_v16 = vpop.f32.mrb[126].mxu1 }
0x1ce7   :  { %v11952_v25 = vadd.f32 %v5106_v6, %v5059_v16  ;;  %v10057_v45 = vpop.f32.mrb[127].mxu1 }
0x1ce8   :  { %v8711_v45 = vld [vmem:[%s12718_s13 + $0x18] sm:$0xf] }
0x1cec   :  { %v5169_v26 = vpop.f32.mrb[128].mxu1 }
0x1ced   :  { %v5170_v30 = vadd.f32 %v8685_v36, %v5169_v26  ;;  %v10070_v3 = vpop.f32.mrb[129].mxu1 }
0x1cee   :  { %v5172_v35 = vpop.f32.mrb[130].mxu1 }
0x1cef   :  { %v5176_v37 = vmul.f32 0.35355338, %v5170_v30  ;;  %v5173_v38 = vadd.f32 %v8685_v36, %v5172_v35  ;;  %v10071_v42 = vpop.f32.mrb[131].mxu1  ;;  %v5531_v35 = vsel %vm510_vm4, %v8711_v45, 0 }
0x1cf0   :  { %v10362_v42 = vld [vmem:[%s12759_s6 + $0x78] sm:$0xff]  }
0x1cf1   :  { %v5310_v43 = vpack.c.bf16 %v5176_v37, %v5176_v37  ;;  %v5177_v47 = vmul.f32 0.35355338, %v5173_v38  ;;  %v10361_v37 = vld [vmem:[%s12759_s6 + $0x70] sm:$0xff]   ;;  %s12767_s6 = sld [smem:[#allocation14_spill]] }
0x1cf3   :  { %v5311_v51 = vpack.c.bf16 %v5177_v47, %v5177_v47  ;;  %10091 = vmatmul.mubr.msk.bf16.vlgmr.msra.gmra.mrb[136].mxu0 %vm390_vm3, %v5310_v43  ;;  %v10363_v43 = vld [vmem:[%s12763_s28 + $0x70] sm:$0xff]   ;;  %v10364_v47 = vld [vmem:[%s12763_s28 + $0x78] sm:$0xff]  }
0x1cf4   :  { %v5303_v52 = vpop.f32.mrb[132].mxu1  ;;  %10102 = vmatprep.mubr.msk.bf16.mxu0 %vm10581_vm0, %v10580_v4 }
0x1cf5   :  { %v5304_v7 = vadd.f32 %v8703_v48, %v5303_v52  ;;  %v10086_v58 = vpop.f32.mrb[133].mxu1  ;;  %10097 = vmatmul.mubr.msk.bf16.vlgmr.msra.gmra.mrb[136].mxu1 %vm390_vm3, %v5311_v51 }
0x1cf6   :  { %v5306_v1 = vpop.f32.mrb[134].mxu1  ;;  %10108 = vmatprep.mubr.msk.bf16.mxu1 %vm10581_vm0, %v10580_v4  ;;  %v10365_v58 = vld [vmem:[%s12760_s11 + $0x70] sm:$0xff]  }
0x1cf7   :  { %v5314_v39 = vpack.c.bf16 %v5304_v7, %v5304_v7  ;;  %v5307_v17 = vadd.f32 %v8703_v48, %v5306_v1  ;;  %v10087_v18 = vpop.f32.mrb[135].mxu1 }
0x1cf9   :  { %v5436_v54 = vsel %vm510_vm4, %v5314_v39, 0  ;;  %v5315_v55 = vpack.c.bf16 %v5307_v17, %v5307_v17 }
0x1cfa   :  { %10101 = vmatpush3.bf16.msra.mxu0 %v5436_v54 }
0x1cfb   :  { %v5482_v59 = vsel %vm510_vm4, %v5315_v55, 0  ;;  %10112 = vmatprep.subr.bf16.mxu0 %v10580_v4  ;;  %v10366_v55 = vld [vmem:[%s12760_s11 + $0x78] sm:$0xff]  }
0x1cfc   :  { %10107 = vmatpush3.bf16.msra.mxu1 %v5482_v59 }
0x1cfd   :  { %10118 = vmatprep.subr.bf16.mxu1 %v10580_v4 }
0x1dc6   :  { %v5356_v60 = vpop.f32.mrb[136].mxu0 }
0x1dc7   :  { %v5357_v61 = vadd.f32 %v11797_v53, %v5356_v60  ;;  %v10092_v62 = vpop.f32.mrb[137].mxu0 }
0x1dc8   :  { %v5359_v2 = vpop.f32.mrb[138].mxu0  ;;  %v5402_v49 = vpop.f32.mrb[136].mxu1 }
0x1dc9   :  { %v5403_v50 = vadd.f32 %v11797_v53, %v5402_v49  ;;  %v10093_v5 = vpop.f32.mrb[139].mxu0  ;;  %v10098_v32 = vpop.f32.mrb[137].mxu1  ;;  %v5408_v6 = vsel %vm390_vm3, %v5357_v61, -inf }
0x1dca   :  { %5409 = vmax.xlane.f32.xlu1 %v5408_v6  ;;  %v5405_v27 = vpop.f32.mrb[138].mxu1 }
0x1dcb   :  { %v10099_v8 = vpop.f32.mrb[139].mxu1  ;;  %v5411_v28 = vsel %vm390_vm3, %v5403_v50, -inf }
0x1dcc   :  { %5412 = vmax.xlane.f32.xlu0 %v5411_v28 }
0x1e57   :  { %v5410_v9 = vpop.xlane.xlu1 %5409 }
0x1e58   :  { %v5414_v10 = vsub.f32 %v5357_v61, %v5410_v9 }
0x1e59   :  { %v5413_v11 = vpop.xlane.xlu0 %5412 }
0x1e5a   :  { %v5416_v12 = vmul.f32 1.442695, %v5414_v10  ;;  %v5415_v13 = vsub.f32 %v5403_v50, %v5413_v11  ;;  %v8718_v10 = vld [vmem:[%s12765_s5 + $0x7] ss:$0 sm:$0xff] }
0x1e5c   :  { %10554 = vpow2.f32 %v5416_v12  ;;  %v5418_v14 = vmul.f32 1.442695, %v5415_v13 }
0x1e5e   :  { %10556 = vpow2.f32 %v5418_v14 }
0x1e66   :  { %v10555_v20 = vpop.eup %10554 }
0x1e67   :  { %v5420_v21 = vsel %vm390_vm3, %v10555_v20, 0.0 }
0x1e68   :  { %v10557_v19 = vpop.eup %10556  ;;  %5421 = vadd.xlane.f32.xlu1 %v5420_v21 }
0x1e69   :  { %v5423_v22 = vsel %vm390_vm3, %v10557_v19, 0.0 }
0x1e6a   :  { %5424 = vadd.xlane.f32.xlu0 %v5423_v22 }
0x1ef5   :  { %v5422_v23 = vpop.xlane.xlu1 %5421 }
0x1ef6   :  { %10558 = vrcp.f32 %v5422_v23 }
0x1ef7   :  { %v5425_v15 = vpop.xlane.xlu0 %5424 }
0x1ef8   :  { %10560 = vrcp.f32 %v5425_v15 }
0x1f00   :  { %v10559_v16 = vpop.eup %10558 }
0x1f01   :  { %v5428_v36 = vmul.f32 %v10559_v16, %v10555_v20 }
0x1f02   :  { %v10561_v26 = vpop.eup %10560 }
0x1f03   :  { %v5429_v30 = vmul.f32 %v10561_v26, %v10557_v19  ;;  %v5430_v3 = vpack.c.bf16 %v5428_v36, %v5428_v36 }
0x1f05   :  { %10103 = vmatmul.mubr.msk.bf16.vlgmr.msra.gmra.mrb[140].mxu0 %vm390_vm3, %v5430_v3  ;;  %v5431_v38 = vpack.c.bf16 %v5429_v30, %v5429_v30 }
0x1f06   :  { %10113 = vmatpush3.bf16.msra.mxu0 %v5531_v35  ;;  %10114 = vmatprep.mubr.msk.bf16.mxu0 %vm10581_vm0, %v10580_v4 }
0x1f07   :  { %10109 = vmatmul.mubr.msk.bf16.vlgmr.msra.gmra.mrb[140].mxu1 %vm390_vm3, %v5431_v38  ;;  %10126 = vmatprep.subr.bf16.mxu0 %v10580_v4 }
0x1f08   :  { %10119 = vmatpush3.bf16.msra.mxu1 %v10361_v37  ;;  %10122 = vmatprep.mubr.msk.bf16.mxu1 %vm10581_vm0, %v10580_v4 }
0x1f09   :  { %10120 = vmatprep.subr.bf16.mxu1 %v10580_v4 }
0x1f0c   :  { %10121 = vmatpush3.bf16.msra.mxu1 %v10362_v42 }
0x1f0d   :  { %10134 = vmatprep.subr.bf16.mxu1 %v10580_v4 }
0x1f0f   :  { %10123 = vmatmul.mubr.msk.bf16.vlgmr.msra.gmra.mrb[144].mxu1 %vm209_vm2, %v11752_v63 }
0x1f10   :  { %10135 = vmatpush3.bf16.msra.mxu1 %v10363_v43  ;;  %10138 = vmatprep.mubr.msk.bf16.mxu1 %vm10581_vm0, %v10580_v4 }
0x1f11   :  { %10136 = vmatprep.subr.bf16.mxu1 %v10580_v4 }
0x1f14   :  { %10137 = vmatpush3.bf16.msra.mxu1 %v10364_v47 }
0x1f15   :  { %10148 = vmatprep.subr.bf16.mxu1 %v10580_v4 }
0x1f17   :  { %10139 = vmatmul.mubr.msk.bf16.vlgmr.msra.gmra.mrb[148].mxu1 %vm209_vm2, %v11752_v63 }
0x1f18   :  { %10150 = vmatprep.mubr.msk.bf16.mxu1 %vm10581_vm0, %v10580_v4 }
0x1fd8   :  { %v5472_v48 = vpop.f32.mrb[140].mxu0 }
0x1fd9   :  { %v10104_v51 = vpop.f32.mrb[141].mxu0 }
0x1fda   :  { %v5475_v52 = vpop.f32.mrb[142].mxu0  ;;  %v5518_v7 = vpop.f32.mrb[140].mxu1 }
0x1fdb   :  { %v5524_v1 = vpack.c.bf16 %v5518_v7, %v5472_v48  ;;  %v10105_v39 = vpop.f32.mrb[143].mxu0  ;;  %v10110_v17 = vpop.f32.mrb[141].mxu1 }
0x1fdc   :  { %v5521_v18 = vpop.f32.mrb[142].mxu1 }
0x1fdd   :  { %v10111_v54 = vpop.f32.mrb[143].mxu1  ;;  %10115 = vmatmul.mubr.msk.bf16.vlgmr.msra.gmra.mrb[144].mxu0 %vm390_vm3, %v5524_v1 }
0x1fde   :  { %10127 = vmatpush3.bf16.msra.mxu0 %v10365_v58  ;;  %10130 = vmatprep.mubr.msk.bf16.mxu0 %vm10581_vm0, %v10580_v4 }
0x1fdf   :  { %10128 = vmatprep.subr.bf16.mxu0 %v10580_v4 }
0x1fe2   :  { %v5635_v59 = vpop.f32.mrb[144].mxu1  ;;  %10129 = vmatpush3.bf16.msra.mxu0 %v10366_v55 }
0x1fe3   :  { %v10124_v60 = vpop.f32.mrb[145].mxu1  ;;  %10142 = vmatprep.subr.bf16.mxu0 %v10580_v4  ;;  %v5636_v20 = vadd.f32 %v8718_v10, %v5635_v59 }
0x1fe4   :  { %v5638_v61 = vpop.f32.mrb[146].mxu1 }
0x1fe5   :  { %v10125_v62 = vpop.f32.mrb[147].mxu1  ;;  %10131 = vmatmul.mubr.msk.bf16.vlgmr.msra.gmra.mrb[148].mxu0 %vm209_vm2, %v11752_v63  ;;  %v8727_v63 = vld [vmem:[%s12764_s9 + $0x7] ss:$0 sm:$0xff]  ;;  %v5639_v22 = vadd.f32 %v8718_v10, %v5638_v61  ;;  %v5642_v45 = vmul.f32 0.35355338, %v5636_v20 }
0x1fe6   :  { %10144 = vmatprep.mubr.msk.bf16.mxu0 %vm10581_vm0, %v10580_v4 }
0x1fe7   :  { %v5643_v30 = vmul.f32 0.35355338, %v5639_v22  ;;  %v5776_v35 = vpack.c.bf16 %v5642_v45, %v5642_v45 }
0x1fe9   :  { %v5777_v38 = vpack.c.bf16 %v5643_v30, %v5643_v30 }
0x1fea   :  { %v5769_v2 = vpop.f32.mrb[148].mxu1 }
0x1feb   :  { %v10140_v49 = vpop.f32.mrb[149].mxu1 }
0x1fec   :  { %v5772_v50 = vpop.f32.mrb[150].mxu1 }
0x1fed   :  { %v10141_v5 = vpop.f32.mrb[151].mxu1 }
0x20b0   :  { %v5567_v32 = vpop.f32.mrb[144].mxu0 }
0x20b1   :  { %v12027_v6 = vadd.f32 %v5567_v32, %v11950_v24  ;;  %v10116_v27 = vpop.f32.mrb[145].mxu0  ;;  %v8736_v24 = vld [vmem:[%s12766_s30 + $0x7] ss:$0 sm:$0xff] }
0x20b2   :  { %v5570_v8 = vpop.f32.mrb[146].mxu0  ;;  %v5770_v23 = vadd.f32 %v8736_v24, %v5769_v2  ;;  %v5773_v36 = vadd.f32 %v8736_v24, %v5772_v50 }
0x20b3   :  { %v12030_v28 = vadd.f32 %v5570_v8, %v11952_v25  ;;  %v10117_v9 = vpop.f32.mrb[147].mxu0 }
0x20b4   :  { %v5780_v3 = vpack.c.bf16 %v5770_v23, %v5770_v23  ;;  %v5781_v37 = vpack.c.bf16 %v5773_v36, %v5773_v36 }
0x20b6   :  { %v5902_v42 = vsel %vm510_vm4, %v5780_v3, 0  ;;  %v5948_v43 = vsel %vm510_vm4, %v5781_v37, 0 }
0x20b8   :  { %v5703_v11 = vpop.f32.mrb[148].mxu0 }
0x20b9   :  { %v5704_v12 = vadd.f32 %v8727_v63, %v5703_v11  ;;  %v10132_v13 = vpop.f32.mrb[149].mxu0 }
0x20ba   :  { %v5706_v14 = vpop.f32.mrb[150].mxu0 }
0x20bb   :  { %v5778_v25 = vpack.c.bf16 %v5704_v12, %v5704_v12  ;;  %v5707_v21 = vadd.f32 %v8727_v63, %v5706_v14  ;;  %v10133_v19 = vpop.f32.mrb[151].mxu0  ;;  %v8744_v63 = vld [vmem:[%s12718_s13 + $0x1c] sm:$0xf] }
0x20bc   :  { %v5997_v24 = vsel %vm510_vm4, %v8744_v63, 0 }
0x20bd   :  { %v5786_v15 = vsel %vm390_vm3, %v5778_v25, 0  ;;  %v5779_v16 = vpack.c.bf16 %v5707_v21, %v5707_v21 }
0x20be   :  { %10143 = vmatpush3.bf16.xpose.msra.mxu0 %v5786_v15 }
0x20bf   :  { %v5832_v26 = vsel %vm390_vm3, %v5779_v16, 0  ;;  %10154 = vmatprep.subr.bf16.mxu0 %v10580_v4 }
0x20c0   :  { %10149 = vmatpush3.bf16.xpose.msra.mxu1 %v5832_v26  ;;  %v8747_v26 = vld [vmem:[%s12719_s14 + $0x1] ss:$0 sm:$0xff] }
0x20c1   :  { %10160 = vmatprep.subr.bf16.mxu1 %v10580_v4 }
0x20c5   :  { %10145 = vmatmul.mubr.msk.bf16.vlgmr.msra.gmra.mrb[152].mxu0 %vm390_vm3, %v5776_v35 }
0x20c6   :  { %10155 = vmatpush3.bf16.msra.mxu0 %v5902_v42  ;;  %10156 = vmatprep.mubr.msk.bf16.mxu0 %vm10581_vm0, %v10580_v4 }
0x20c7   :  { %10151 = vmatmul.mubr.msk.bf16.vlgmr.msra.gmra.mrb[152].mxu1 %vm390_vm3, %v5777_v38  ;;  %10166 = vmatprep.subr.bf16.mxu0 %v10580_v4 }
0x20c8   :  { %10161 = vmatpush3.bf16.msra.mxu1 %v5948_v43  ;;  %10162 = vmatprep.mubr.msk.bf16.mxu1 %vm10581_vm0, %v10580_v4 }
0x2198   :  { %v5822_v47 = vpop.f32.mrb[152].mxu0 }
0x2199   :  { %v5823_v48 = vadd.f32 %v11797_v53, %v5822_v47  ;;  %v10146_v51 = vpop.f32.mrb[153].mxu0 }
0x219a   :  { %v5825_v52 = vpop.f32.mrb[154].mxu0  ;;  %v5868_v7 = vpop.f32.mrb[152].mxu1 }
0x219b   :  { %v5869_v58 = vadd.f32 %v11797_v53, %v5868_v7  ;;  %v10147_v1 = vpop.f32.mrb[155].mxu0  ;;  %v10152_v39 = vpop.f32.mrb[153].mxu1  ;;  %v5874_v17 = vsel %vm390_vm3, %v5823_v48, -inf }
0x219c   :  { %5875 = vmax.xlane.f32.xlu1 %v5874_v17  ;;  %v5871_v18 = vpop.f32.mrb[154].mxu1 }
0x219d   :  { %v10153_v54 = vpop.f32.mrb[155].mxu1  ;;  %v5877_v55 = vsel %vm390_vm3, %v5869_v58, -inf }
0x219e   :  { %5878 = vmax.xlane.f32.xlu0 %v5877_v55  ;;  %v8760_v55 = vld [vmem:[%s12720_s17 + $0x140] sm:$0xff] }
0x2229   :  { %v5876_v59 = vpop.xlane.xlu1 %5875 }
0x222a   :  { %v5880_v60 = vsub.f32 %v5823_v48, %v5876_v59  ;;  %v8753_v59 = vld [vmem:[%s12720_s17 + $0x108] sm:$0xff] }
0x222b   :  { %v5879_v61 = vpop.xlane.xlu0 %5878 }
0x222c   :  { %v5882_v62 = vmul.f32 1.442695, %v5880_v60  ;;  %v5881_v2 = vsub.f32 %v5869_v58, %v5879_v61  ;;  %v8761_v61 = vld [vmem:[%s12720_s17 + $0x148] sm:$0xff] }
0x222e   :  { %10562 = vpow2.f32 %v5882_v62  ;;  %v5884_v49 = vmul.f32 1.442695, %v5881_v2  ;;  %v8788_v2 = vcombine.low %v8753_v59, %v8761_v61 }
0x2230   :  { %10564 = vpow2.f32 %v5884_v49  ;;  %v8789_v49 = vcombine.high %v8753_v59, %v8761_v61  ;;  %v8780_v59 = vld [vmem:[%s12720_s17 + $0x1e0] sm:$0xff]  ;;  %v8781_v61 = vld [vmem:[%s12720_s17 + $0x1e8] sm:$0xff] }
0x2238   :  { %v10563_v50 = vpop.eup %10562 }
0x2239   :  { %v5886_v53 = vsel %vm390_vm3, %v10563_v50, 0.0 }
0x223a   :  { %v10565_v5 = vpop.eup %10564  ;;  %5887 = vadd.xlane.f32.xlu1 %v5886_v53  ;;  %v8776_v53 = vld [vmem:[%s12720_s17 + $0x1c0] sm:$0xff] }
0x223b   :  { %v5889_v32 = vsel %vm390_vm3, %v10565_v5, 0.0 }
0x223c   :  { %5890 = vadd.xlane.f32.xlu0 %v5889_v32 }
0x22c7   :  { %v5888_v27 = vpop.xlane.xlu1 %5887 }
0x22c8   :  { %10566 = vrcp.f32 %v5888_v27  ;;  %v8777_v27 = vld [vmem:[%s12720_s17 + $0x1c8] sm:$0xff] }
0x22c9   :  { %v5891_v8 = vpop.xlane.xlu0 %5890 }
0x22ca   :  { %10568 = vrcp.f32 %v5891_v8 }
0x22d2   :  { %v10567_v9 = vpop.eup %10566 }
0x22d3   :  { %v5894_v10 = vmul.f32 %v10567_v9, %v10563_v50  ;;  %v8768_v50 = vld [vmem:[%s12720_s17 + $0x180] sm:$0xff] }
0x22d4   :  { %v10569_v11 = vpop.eup %10568  ;;  %v8803_v32 = vcombine.high %v8768_v50, %v8776_v53  ;;  %v8802_v8 = vcombine.low %v8768_v50, %v8776_v53  ;;  %v8758_v53 = vld [vmem:[%s12720_s17 + $0x130] sm:$0xff] }
0x22d5   :  { %v5895_v12 = vmul.f32 %v10569_v11, %v10565_v5  ;;  %v5896_v13 = vpack.c.bf16 %v5894_v10, %v5894_v10  ;;  %v8769_v5 = vld [vmem:[%s12720_s17 + $0x188] sm:$0xff]  ;;  %v8754_v10 = vld [vmem:[%s12720_s17 + $0x110] sm:$0xff] }
0x22d6   :  { %v8804_v9 = vcombine.low %v8769_v5, %v8777_v27  ;;  %v8805_v63 = vcombine.high %v8769_v5, %v8777_v27  ;;  %v8762_v11 = vld [vmem:[%s12720_s17 + $0x150] sm:$0xff]  ;;  %v8767_v27 = vld [vmem:[%s12720_s17 + $0x178] sm:$0xff] }
0x22d7   :  { %10157 = vmatmul.mubr.msk.bf16.vlgmr.msra.gmra.mrb[156].mxu0 %vm390_vm3, %v5896_v13  ;;  %v5897_v14 = vpack.c.bf16 %v5895_v12, %v5895_v12  ;;  %v8755_v12 = vld [vmem:[%s12720_s17 + $0x118] sm:$0xff]  ;;  %v8790_v13 = vcombine.low %v8754_v10, %v8762_v11  ;;  %v8766_v5 = vld [vmem:[%s12720_s17 + $0x170] sm:$0xff] }
0x22d8   :  { %10167 = vmatpush3.bf16.msra.mxu0 %v5997_v24  ;;  %10168 = vmatprep.mubr.msk.bf16.mxu0 %vm10581_vm0, %v10580_v4  ;;  %v8791_v24 = vcombine.high %v8754_v10, %v8762_v11  ;;  %v8774_v11 = vld [vmem:[%s12720_s17 + $0x1b0] sm:$0xff] }
0x22d9   :  { %10163 = vmatmul.mubr.msk.bf16.vlgmr.msra.gmra.mrb[156].mxu1 %vm390_vm3, %v5897_v14  ;;  %6425 = vmatprep.subr.bf16.mxu0 %v8789_v49  ;;  %v8763_v14 = vld [vmem:[%s12720_s17 + $0x158] sm:$0xff] }
0x22da   :  { %6414 = vmatprep.mubr.bf16.mxu1 %v10579_v0 }
0x23aa   :  { %v5938_v20 = vpop.f32.mrb[156].mxu0 }
0x23ab   :  { %v10158_v25 = vpop.f32.mrb[157].mxu0 }
0x23ac   :  { %v5941_v21 = vpop.f32.mrb[158].mxu0  ;;  %v5984_v19 = vpop.f32.mrb[156].mxu1  ;;  %v8793_v25 = vcombine.high %v8755_v12, %v8763_v14 }
0x23ad   :  { %v5990_v22 = vpack.c.bf16 %v5984_v19, %v5938_v20  ;;  %v10159_v23 = vpop.f32.mrb[159].mxu0  ;;  %v10164_v15 = vpop.f32.mrb[157].mxu1  ;;  %v8792_v20 = vcombine.low %v8755_v12, %v8763_v14  ;;  %v8782_v12 = vld [vmem:[%s12720_s17 + $0x1f0] sm:$0xff]  ;;  %v8798_v14 = vcombine.low %v8758_v53, %v8766_v5 }
0x23ae   :  { %v5987_v16 = vpop.f32.mrb[158].mxu1 }
0x23af   :  { %v10165_v45 = vpop.f32.mrb[159].mxu1  ;;  %10169 = vmatmul.mubr.msk.bf16.vlgmr.msra.gmra.mrb[160].mxu0 %vm390_vm3, %v5990_v22 }
0x23b0   :  { %6457 = vmatprep.mubr.bf16.mxu0 %v10579_v0  ;;  %6426 = vmatpush1.bf16.msra.mxu0 %v8788_v2 }
0x23b1   :  { %6427 = vmatprep.subr.bf16.mxu0 %v8805_v63  ;;  %v8799_v63 = vcombine.high %v8758_v53, %v8766_v5 }
0x23b4   :  { %6428 = vmatpush1.bf16.msra.mxu0 %v8804_v9 }
0x23b5   :  { %6511 = vmatprep.subr.bf16.mxu0 %v8793_v25  ;;  %v8815_v25 = vcombine.high %v8774_v11, %v8782_v12 }
0x2482   :  { %v6033_v36 = vpop.f32.mrb[160].mxu0 }
0x2483   :  { %v6040_v30 = vadd.f32 %v6033_v36, %v12027_v6  ;;  %v10170_v3 = vpop.f32.mrb[161].mxu0  ;;  %v8750_v36 = vld [vmem:[%s12722_s15 + $0x1] ss:$0 sm:$0xff] }
0x2484   :  { %v6036_v35 = vpop.f32.mrb[162].mxu0 }
0x2485   :  { %v6050_v37 = vadd.f32 %v8747_v26, %v6040_v30  ;;  %v6041_v38 = vadd.f32 %v6036_v35, %v12030_v28  ;;  %v10171_v42 = vpop.f32.mrb[163].mxu0 }
0x2486   :  { %v8770_v42 = vld [vmem:[%s12720_s17 + $0x190] sm:$0xff] }
0x2487   :  { %v6051_v43 = vadd.f32 %v8747_v26, %v6041_v38  ;;  %v6052_v47 = vadd.f32 %v6050_v37, %v11743_v56  ;;  %v8751_v37 = vld [vmem:[%s12723_s16 + $0x1] ss:$0 sm:$0xff] }
0x2489   :  { %v6058_v48 = vsel %vm209_vm2, %v6052_v47, 0.0  ;;  %v6053_v51 = vadd.f32 %v6051_v43, %v11745_v57  ;;  %v8752_v57 = vld [vmem:[%s12720_s17 + $0x100] sm:$0xff]  ;;  %v8778_v43 = vld [vmem:[%s12720_s17 + $0x1d0] sm:$0xff] }
0x248a   :  { %6059 = vadd.xlane.f32.xlu1 %v6058_v48  ;;  %v8787_v60 = vcombine.high %v8752_v57, %v8760_v55  ;;  %v8786_v62 = vcombine.low %v8752_v57, %v8760_v55  ;;  %v8779_v48 = vld [vmem:[%s12720_s17 + $0x1d8] sm:$0xff]  ;;  %v8772_v55 = vld [vmem:[%s12720_s17 + $0x1a0] sm:$0xff] }
0x248b   :  { %v6061_v52 = vsel %vm209_vm2, %v6053_v51, 0.0  ;;  %v8811_v49 = vcombine.high %v8772_v55, %v8780_v59 }
0x248c   :  { %6062 = vadd.xlane.f32.xlu0 %v6061_v52  ;;  %6382 = vmatprep.subr.bf16.mxu1 %v8787_v60  ;;  %v8773_v60 = vld [vmem:[%s12720_s17 + $0x1a8] sm:$0xff] }
0x248d   :  { %6383 = vmatpush1.bf16.msra.mxu1 %v8786_v62  ;;  %v8813_v50 = vcombine.high %v8773_v60, %v8781_v61  ;;  %v8812_v9 = vcombine.low %v8773_v60, %v8781_v61  ;;  %v10396_v60 = vld [vmem:[%s12721_s19 + $0x4f8] sm:$0xff]  }
0x248e   :  { %6384 = vmatprep.subr.bf16.mxu1 %v8803_v32  ;;  %v8759_v32 = vld [vmem:[%s12720_s17 + $0x138] sm:$0xff] }
0x248f   :  { %v8801_v10 = vcombine.high %v8759_v32, %v8767_v27  ;;  %v10397_v61 = vld [vmem:[%s12721_s19 + $0x438] sm:$0xff]  }
0x2491   :  { %6385 = vmatpush1.bf16.msra.mxu1 %v8802_v8  ;;  %v8810_v8 = vcombine.low %v8772_v55, %v8780_v59  ;;  %v10394_v55 = vld [vmem:[%s12721_s19 + $0x4b0] sm:$0xff]   ;;  %v10395_v59 = vld [vmem:[%s12721_s19 + $0x478] sm:$0xff]  }
0x2492   :  { %6468 = vmatprep.subr.bf16.mxu1 %v8791_v24  ;;  %v8783_v24 = vld [vmem:[%s12720_s17 + $0x1f8] sm:$0xff] }
0x2517   :  { %v6060_v7 = vpop.xlane.xlu1 %6059 }
0x2518   :  { %v6064_v58 = vmul.f32 0.03125, %v6060_v7 }
0x2519   :  { %v6063_v6 = vpop.xlane.xlu0 %6062 }
0x251a   :  { %v6066_v1 = vsub.f32 %v6052_v47, %v6064_v58  ;;  %v6065_v39 = vmul.f32 0.03125, %v6063_v6  ;;  %v8771_v47 = vld [vmem:[%s12720_s17 + $0x198] sm:$0xff]  ;;  %v8807_v58 = vcombine.high %v8770_v42, %v8778_v43 }
0x251b   :  { %v8809_v6 = vcombine.high %v8771_v47, %v8779_v48 }
0x251c   :  { %v6067_v17 = vsub.f32 %v6053_v51, %v6065_v39  ;;  %v6068_v18 = vmul.f32 %v6066_v1, %v6066_v1  ;;  %v8764_v39 = vld [vmem:[%s12720_s17 + $0x160] sm:$0xff] }
0x251e   :  { %v6070_v28 = vsel %vm209_vm2, %v6068_v18, 0.0  ;;  %v6069_v54 = vmul.f32 %v6067_v17, %v6067_v17  ;;  %v8765_v18 = vld [vmem:[%s12720_s17 + $0x168] sm:$0xff] }
0x251f   :  { %6071 = vadd.xlane.f32.xlu1 %v6070_v28  ;;  %v8806_v28 = vcombine.low %v8770_v42, %v8778_v43  ;;  %v10379_v42 = vld [vmem:[%s12721_s19 + $0x458] sm:$0xff]  }
0x2520   :  { %v6073_v56 = vsel %vm209_vm2, %v6069_v54, 0.0  ;;  %v8808_v54 = vcombine.low %v8771_v47, %v8779_v48  ;;  %v10380_v43 = vld [vmem:[%s12721_s19 + $0x4d8] sm:$0xff]  }
0x2521   :  { %6074 = vadd.xlane.f32.xlu0 %v6073_v56  ;;  %v10381_v47 = vld [vmem:[%s12721_s19 + $0x418] sm:$0xff]  }
0x2522   :  { %v10382_v48 = vld [vmem:[%s12721_s19 + $0x498] sm:$0xff]  }
0x25ac   :  { %v6072_v21 = vpop.xlane.xlu1 %6071 }
0x25ad   :  { %v6076_v19 = vmul.f32 0.03125, %v6072_v21 }
0x25ae   :  { %v6075_v22 = vpop.xlane.xlu0 %6074 }
0x25af   :  { %v6078_v23 = vadd.f32 1e-05, %v6076_v19  ;;  %v6077_v15 = vmul.f32 0.03125, %v6075_v22  ;;  %v8814_v19 = vcombine.low %v8774_v11, %v8782_v12 }
0x25b1   :  { %10570 = vrsqrt.f32 %v6078_v23  ;;  %v6079_v16 = vadd.f32 1e-05, %v6077_v15  ;;  %v10367_v23 = vld [vmem:[%s12721_s19 + $0x440] sm:$0xff]  }
0x25b2   :  { %v10368_v15 = vld [vmem:[%s12721_s19 + $0x4c0] sm:$0xff]  }
0x25b3   :  { %10572 = vrsqrt.f32 %v6079_v16  ;;  %v10369_v16 = vld [vmem:[%s12721_s19 + $0x400] sm:$0xff]  }
0x25bb   :  { %v10571_v45 = vpop.eup %10570 }
0x25bc   :  { %v6082_v26 = vmul.f32 %v10571_v45, %v6066_v1  ;;  %v8756_v1 = vld [vmem:[%s12720_s17 + $0x120] sm:$0xff] }
0x25bd   :  { %v10573_v30 = vpop.eup %10572  ;;  %v8795_v56 = vcombine.high %v8756_v1, %v8764_v39  ;;  %v8794_v62 = vcombine.low %v8756_v1, %v8764_v39  ;;  %v10370_v45 = vld [vmem:[%s12721_s19 + $0x480] sm:$0xff]   ;;  %v10387_v39 = vld [vmem:[%s12721_s19 + $0x468] sm:$0xff]  }
0x25be   :  { %v6090_v3 = vmul.f32 %v8750_v36, %v6082_v26  ;;  %v6083_v35 = vmul.f32 %v10573_v30, %v6067_v17  ;;  %v8757_v17 = vld [vmem:[%s12720_s17 + $0x128] sm:$0xff]  ;;  %v10386_v1 = vld [vmem:[%s12721_s19 + $0x4a0] sm:$0xff]  }
0x25bf   :  { %v8797_v57 = vcombine.high %v8757_v17, %v8765_v18  ;;  %v8796_v2 = vcombine.low %v8757_v17, %v8765_v18  ;;  %v10373_v26 = vld [vmem:[%s12721_s19 + $0x408] sm:$0xff]  }
0x25c0   :  { %v6091_v38 = vmul.f32 %v8750_v36, %v6083_v35  ;;  %v12136_v51 = vadd.f32 %v8751_v37, %v6090_v3  ;;  %v10371_v36 = vld [vmem:[%s12721_s19 + $0x448] sm:$0xff]   ;;  %v10375_v3 = vld [vmem:[%s12721_s19 + $0x450] sm:$0xff]  }
0x25c1   :  { %v10374_v30 = vld [vmem:[%s12721_s19 + $0x488] sm:$0xff]   ;;  %v10376_v35 = vld [vmem:[%s12721_s19 + $0x4d0] sm:$0xff]  }
0x25c2   :  { %v12138_v52 = vadd.f32 %v8751_v37, %v6091_v38  ;;  %v10377_v37 = vld [vmem:[%s12721_s19 + $0x410] sm:$0xff]   ;;  %v10388_v17 = vld [vmem:[%s12721_s19 + $0x4e8] sm:$0xff]  }
0x25c3   :  { %v10378_v38 = vld [vmem:[%s12721_s19 + $0x490] sm:$0xff]   ;;  %v10389_v18 = vld [vmem:[%s12721_s19 + $0x428] sm:$0xff]  }
0x25c4   :  { %v12142_v7 = vpack.c.bf16 %v12138_v52, %v12136_v51 }
0x25c6   :  { %8818 = vmatmul.mubr.msk.bf16.vlgmr.msra.gmra.mrb[160].mxu1 %vm209_vm2, %v12142_v7  ;;  %8819 = vmatmul.mubr.msk.bf16.vlgmr.msra.gmra.mrb[164].mxu0 %vm209_vm2, %v12142_v7 }
0x25c7   :  { %6469 = vmatpush1.bf16.msra.mxu1 %v8790_v13  ;;  %6512 = vmatpush1.bf16.msra.mxu0 %v8792_v20  ;;  %v8775_v13 = vld [vmem:[%s12720_s17 + $0x1b8] sm:$0xff]  ;;  %v8800_v20 = vcombine.low %v8759_v32, %v8767_v27 }
0x25c8   :  { %6470 = vmatprep.subr.bf16.mxu1 %v8807_v58  ;;  %6513 = vmatprep.subr.bf16.mxu0 %v8809_v6  ;;  %v8817_v21 = vcombine.high %v8775_v13, %v8783_v24  ;;  %v8816_v22 = vcombine.low %v8775_v13, %v8783_v24  ;;  %v10384_v58 = vld [vmem:[%s12721_s19 + $0x4e0] sm:$0xff]  }
0x25c9   :  { %6500 = vmatprep.mubr.bf16.mxu1 %v10579_v0  ;;  %6543 = vmatprep.mubr.bf16.mxu0 %v10579_v0  ;;  %v10385_v6 = vld [vmem:[%s12721_s19 + $0x420] sm:$0xff]  }
0x25cb   :  { %6471 = vmatpush1.bf16.msra.mxu1 %v8806_v28  ;;  %6514 = vmatpush1.bf16.msra.mxu0 %v8808_v54  ;;  %v10390_v28 = vld [vmem:[%s12721_s19 + $0x4a8] sm:$0xff]   ;;  %v10391_v54 = vld [vmem:[%s12721_s19 + $0x470] sm:$0xff]  }
0x25cc   :  { %6554 = vmatprep.subr.bf16.mxu1 %v8795_v56  ;;  %6597 = vmatprep.subr.bf16.mxu0 %v8797_v57  ;;  %v10392_v56 = vld [vmem:[%s12721_s19 + $0x4f0] sm:$0xff]  }
0x25cd   :  { %v10393_v57 = vld [vmem:[%s12721_s19 + $0x430] sm:$0xff]  }
0x25ce   :  { %8820 = vmatmul.mubr.msk.bf16.vlgmr.msra.gmra.mrb[164].mxu1 %vm209_vm2, %v12142_v7  ;;  %8821 = vmatmul.mubr.msk.bf16.vlgmr.msra.gmra.mrb[168].mxu0 %vm209_vm2, %v12142_v7 }
0x25cf   :  { %6555 = vmatpush1.bf16.msra.mxu1 %v8794_v62  ;;  %6598 = vmatpush1.bf16.msra.mxu0 %v8796_v2  ;;  %v10398_v62 = vld [vmem:[%s12721_s19 + $0x4b8] sm:$0xff]   ;;  %v10399_v2 = vld [vmem:[%s12721_s19 + $0x540] sm:$0xff]  }
0x25d0   :  { %6556 = vmatprep.subr.bf16.mxu1 %v8811_v49  ;;  %6599 = vmatprep.subr.bf16.mxu0 %v8813_v50  ;;  %v10400_v49 = vld [vmem:[%s12721_s19 + $0x5c0] sm:$0xff]   ;;  %v8784_v50 = vld [vmem:[%s12724_s18 + $0x10] sm:$0xff] }
0x25d1   :  { %6586 = vmatprep.mubr.bf16.mxu1 %v10579_v0  ;;  %6629 = vmatprep.mubr.bf16.mxu0 %v10579_v0  ;;  %v6142_v53 = vrot.slane %v8784_v50, %v11346_v31  ;;  %v6150_v5 = vrot.slane %v8784_v50, %v11348_v33  ;;  %v6146_v32 = vrot.slane %v8784_v50, %v11353_v34 }
0x25d2   :  { %v6154_v27 = vrot.slane %v8784_v50, %v11355_v29 }
0x25d3   :  { %6557 = vmatpush1.bf16.msra.mxu1 %v8810_v8  ;;  %6600 = vmatpush1.bf16.msra.mxu0 %v8812_v9 }
0x25d4   :  { %6640 = vmatprep.subr.bf16.mxu1 %v8799_v63  ;;  %6683 = vmatprep.subr.bf16.mxu0 %v8801_v10 }
0x25d6   :  { %8822 = vmatmul.mubr.msk.bf16.vlgmr.msra.gmra.mrb[168].mxu1 %vm209_vm2, %v12142_v7  ;;  %8823 = vmatmul.mubr.msk.bf16.vlgmr.msra.gmra.mrb[172].mxu0 %vm209_vm2, %v12142_v7 }
0x25d7   :  { %6641 = vmatpush1.bf16.msra.mxu1 %v8798_v14  ;;  %6684 = vmatpush1.bf16.msra.mxu0 %v8800_v20 }
0x25d8   :  { %6642 = vmatprep.subr.bf16.mxu1 %v8815_v25  ;;  %6685 = vmatprep.subr.bf16.mxu0 %v8817_v21 }
0x25d9   :  { %6672 = vmatprep.mubr.bf16.mxu1 %v10579_v0  ;;  %6715 = vmatprep.mubr.bf16.mxu0 %v10579_v0  ;;  %v10372_v0 = vld [vmem:[%s12721_s19 + $0x4c8] sm:$0xff]  }
0x25db   :  { %6643 = vmatpush1.bf16.msra.mxu1 %v8814_v19  ;;  %6686 = vmatpush1.bf16.msra.mxu0 %v8816_v22 }
0x25dc   :  { %9553 = vmatprep.subr.bf16.mxu1 %v10367_v23  ;;  %9575 = vmatprep.subr.bf16.mxu0 %v10368_v15  ;;  %v6158_v23 = vrot.slane %v8784_v50, %v11361_v40  ;;  %v6166_v15 = vrot.slane %v8784_v50, %v11363_v41 }
0x25de   :  { %8824 = vmatmul.mubr.msk.bf16.vlgmr.msra.gmra.mrb[172].mxu1 %vm209_vm2, %v12142_v7  ;;  %8825 = vmatmul.mubr.msk.bf16.vlgmr.msra.gmra.mrb[176].mxu0 %vm209_vm2, %v12142_v7  ;;  %v10383_v7 = vld [vmem:[%s12721_s19 + $0x460] sm:$0xff]  }
0x25df   :  { %9554 = vmatpush3.bf16.msra.mxu1 %v10369_v16  ;;  %9576 = vmatpush3.bf16.msra.mxu0 %v10370_v45 }
0x25e0   :  { %9555 = vmatprep.subr.bf16.mxu1 %v10371_v36  ;;  %9577 = vmatprep.subr.bf16.mxu0 %v10372_v0  ;;  %v6162_v36 = vrot.slane %v8784_v50, %v11365_v44  ;;  %v6170_v0 = vrot.slane %v8784_v50, %v11367_v46 }
0x25e3   :  { %9556 = vmatpush3.bf16.msra.mxu1 %v10373_v26  ;;  %9578 = vmatpush3.bf16.msra.mxu0 %v10374_v30 }
0x25e4   :  { %9557 = vmatprep.subr.bf16.mxu1 %v10375_v3  ;;  %9579 = vmatprep.subr.bf16.mxu0 %v10376_v35 }
0x25e7   :  { %9558 = vmatpush3.bf16.msra.mxu1 %v10377_v37  ;;  %9580 = vmatpush3.bf16.msra.mxu0 %v10378_v38 }
0x25e8   :  { %9559 = vmatprep.subr.bf16.mxu1 %v10379_v42  ;;  %9581 = vmatprep.subr.bf16.mxu0 %v10380_v43 }
0x25eb   :  { %9560 = vmatpush3.bf16.msra.mxu1 %v10381_v47  ;;  %9582 = vmatpush3.bf16.msra.mxu0 %v10382_v48  ;;  %v12330_v47 = vld [vmem:[%s12724_s18 + $0x18] sm:$0xff] }
0x25ec   :  { %9561 = vmatprep.subr.bf16.mxu1 %v10383_v7  ;;  %9583 = vmatprep.subr.bf16.mxu0 %v10384_v58  ;;  %v6182_v50 = vrot.slane %v12330_v47, %v11348_v33  ;;  %v10406_v33 = vld [vmem:[%s12721_s19 + $0x588] sm:$0xff]  }
0x25ef   :  { %9562 = vmatpush3.bf16.msra.mxu1 %v10385_v6  ;;  %9584 = vmatpush3.bf16.msra.mxu0 %v10386_v1 }
0x25f0   :  { %9563 = vmatprep.subr.bf16.mxu1 %v10387_v39  ;;  %9585 = vmatprep.subr.bf16.mxu0 %v10388_v17  ;;  %v10401_v17 = vld [vmem:[%s12721_s19 + $0x500] sm:$0xff]  }
0x25f3   :  { %9564 = vmatpush3.bf16.msra.mxu1 %v10389_v18  ;;  %9586 = vmatpush3.bf16.msra.mxu0 %v10390_v28  ;;  %v10402_v18 = vld [vmem:[%s12721_s19 + $0x580] sm:$0xff]  }
0x25f4   :  { %9565 = vmatprep.subr.bf16.mxu1 %v10391_v54  ;;  %9587 = vmatprep.subr.bf16.mxu0 %v10392_v56 }
0x25f7   :  { %9566 = vmatpush3.bf16.msra.mxu1 %v10393_v57  ;;  %9588 = vmatpush3.bf16.msra.mxu0 %v10394_v55  ;;  %v10403_v55 = vld [vmem:[%s12721_s19 + $0x548] sm:$0xff]  }
0x25f8   :  { %9567 = vmatprep.subr.bf16.mxu1 %v10395_v59  ;;  %9589 = vmatprep.subr.bf16.mxu0 %v10396_v60  ;;  %v10404_v59 = vld [vmem:[%s12721_s19 + $0x5c8] sm:$0xff]   ;;  %v6174_v60 = vrot.slane %v12330_v47, %v11346_v31 }
0x25fb   :  { %9568 = vmatpush3.bf16.msra.mxu1 %v10397_v61  ;;  %9590 = vmatpush3.bf16.msra.mxu0 %v10398_v62 }
0x25fc   :  { %9597 = vmatprep.subr.bf16.mxu1 %v10399_v2  ;;  %9619 = vmatprep.subr.bf16.mxu0 %v10400_v49 }
0x2699   :  { %v6416_v8 = vpop.f32.mrb[160].mxu1  ;;  %v6459_v9 = vpop.f32.mrb[164].mxu0 }
0x269a   :  { %v6417_v63 = vadd.f32 %v6416_v8, %v6142_v53  ;;  %v6460_v10 = vadd.f32 %v6459_v9, %v6150_v5  ;;  %v6418_v11 = vpop.f32.mrb[161].mxu1  ;;  %v6461_v12 = vpop.f32.mrb[165].mxu0  ;;  %v6178_v8 = vrot.slane %v12330_v47, %v11353_v34  ;;  %v10407_v34 = vld [vmem:[%s12721_s19 + $0x550] sm:$0xff]  }
0x269b   :  { %v6419_v13 = vadd.f32 %v6418_v11, %v6146_v32  ;;  %v6462_v24 = vadd.f32 %v6461_v12, %v6154_v27  ;;  %v6420_v14 = vpop.f32.mrb[162].mxu1  ;;  %v6463_v20 = vpop.f32.mrb[166].mxu0 }
0x269c   :  { %v6421_v25 = vadd.f32 %v6420_v14, %v6142_v53  ;;  %v6464_v21 = vadd.f32 %v6463_v20, %v6150_v5  ;;  %v6422_v19 = vpop.f32.mrb[163].mxu1  ;;  %v6465_v22 = vpop.f32.mrb[167].mxu0  ;;  %v6726_v26 = vmax.f32 %v6417_v63, 0.0  ;;  %v6728_v30 = vmax.f32 %v6460_v10, 0.0  ;;  %v10405_v63 = vld [vmem:[%s12721_s19 + $0x508] sm:$0xff]   ;;  %v10408_v14 = vld [vmem:[%s12721_s19 + $0x5d0] sm:$0xff]  }
0x269d   :  { %v6423_v16 = vadd.f32 %v6422_v19, %v6146_v32  ;;  %v6466_v45 = vadd.f32 %v6465_v22, %v6154_v27  ;;  %v6727_v37 = vmax.f32 %v6419_v13, 0.0  ;;  %v6729_v38 = vmax.f32 %v6462_v24, 0.0 }
0x269e   :  { %v6742_v3 = vmax.f32 %v6421_v25, 0.0  ;;  %v6744_v35 = vmax.f32 %v6464_v21, 0.0  ;;  %v6186_v10 = vrot.slane %v12330_v47, %v11355_v29 }
0x269f   :  { %v6743_v42 = vmax.f32 %v6423_v16, 0.0  ;;  %v6745_v43 = vmax.f32 %v6466_v45, 0.0 }
0x26a0   :  { %v6758_v48 = vpack.c.bf16 %v6742_v3, %v6726_v26  ;;  %v6760_v7 = vpack.c.bf16 %v6744_v35, %v6728_v30 }
0x26a1   :  { %v6759_v58 = vpack.c.bf16 %v6743_v42, %v6727_v37  ;;  %v6761_v6 = vpack.c.bf16 %v6745_v43, %v6729_v38  ;;  %v6502_v1 = vpop.f32.mrb[164].mxu1  ;;  %v6545_v39 = vpop.f32.mrb[168].mxu0  ;;  %v10411_v37 = vld [vmem:[%s12721_s19 + $0x558] sm:$0xff]  }
0x26a2   :  { %v6503_v28 = vadd.f32 %v6502_v1, %v6158_v23  ;;  %v6546_v54 = vadd.f32 %v6545_v39, %v6166_v15  ;;  %v6504_v56 = vpop.f32.mrb[165].mxu1  ;;  %v6547_v57 = vpop.f32.mrb[169].mxu0  ;;  %v10412_v38 = vld [vmem:[%s12721_s19 + $0x5d8] sm:$0xff]  }
0x26a3   :  { %v6505_v61 = vadd.f32 %v6504_v56, %v6162_v36  ;;  %v6548_v62 = vadd.f32 %v6547_v57, %v6170_v0  ;;  %v6506_v2 = vpop.f32.mrb[166].mxu1  ;;  %v6549_v49 = vpop.f32.mrb[170].mxu0  ;;  %7839 = vmatprep.mubr.bf16.mxu1 %v6759_v58  ;;  %7880 = vmatprep.mubr.bf16.mxu0 %v6761_v6  ;;  %v6190_v58 = vrot.slane %v12330_v47, %v11361_v40  ;;  %v10413_v57 = vld [vmem:[%s12721_s19 + $0x518] sm:$0xff]  }
0x26a4   :  { %v6507_v53 = vadd.f32 %v6506_v2, %v6158_v23  ;;  %v6550_v5 = vadd.f32 %v6549_v49, %v6166_v15  ;;  %v6508_v32 = vpop.f32.mrb[167].mxu1  ;;  %v6551_v27 = vpop.f32.mrb[171].mxu0  ;;  %7840 = vmatmul.mubr.bf16.vlgmr.msra.gmra.mrb[176].mxu1 %v6758_v48  ;;  %7881 = vmatmul.mubr.bf16.vlgmr.msra.gmra.mrb[180].mxu0 %v6760_v7  ;;  %v6730_v11 = vmax.f32 %v6503_v28, 0.0  ;;  %v6732_v12 = vmax.f32 %v6546_v54, 0.0  ;;  %v10414_v40 = vld [vmem:[%s12721_s19 + $0x598] sm:$0xff]  }
0x26a5   :  { %v6509_v9 = vadd.f32 %v6508_v32, %v6162_v36  ;;  %v6552_v31 = vadd.f32 %v6551_v27, %v6170_v0  ;;  %9598 = vmatpush3.bf16.msra.mxu1 %v10401_v17  ;;  %9620 = vmatpush3.bf16.msra.mxu0 %v10402_v18  ;;  %v6731_v20 = vmax.f32 %v6505_v61, 0.0  ;;  %v6733_v25 = vmax.f32 %v6548_v62, 0.0  ;;  %v10409_v36 = vld [vmem:[%s12721_s19 + $0x510] sm:$0xff]   ;;  %v10416_v62 = vld [vmem:[%s12721_s19 + $0x5e0] sm:$0xff]  }
0x26a6   :  { %v6746_v13 = vmax.f32 %v6507_v53, 0.0  ;;  %v6748_v24 = vmax.f32 %v6550_v5, 0.0  ;;  %9599 = vmatprep.subr.bf16.mxu1 %v10403_v55  ;;  %9621 = vmatprep.subr.bf16.mxu0 %v10404_v59  ;;  %v10410_v0 = vld [vmem:[%s12721_s19 + $0x590] sm:$0xff]   ;;  %v6198_v18 = vrot.slane %v12330_v47, %v11363_v41  ;;  %v6194_v28 = vrot.slane %v12330_v47, %v11365_v44  ;;  %v10415_v44 = vld [vmem:[%s12721_s19 + $0x560] sm:$0xff]  }
0x26a7   :  { %v6747_v21 = vmax.f32 %v6509_v9, 0.0  ;;  %v6749_v19 = vmax.f32 %v6552_v31, 0.0  ;;  %v6202_v55 = vrot.slane %v12330_v47, %v11367_v46  ;;  %v10417_v9 = vld [vmem:[%s12721_s19 + $0x520] sm:$0xff]  }
0x26a8   :  { %v12364_v22 = vpack.c.bf16 %v6746_v13, %v6730_v11  ;;  %v12366_v29 = vpack.c.bf16 %v6748_v24, %v6732_v12  ;;  %v10418_v31 = vld [vmem:[%s12721_s19 + $0x5a0] sm:$0xff]   ;;  %v10419_v12 = vld [vmem:[%s12721_s19 + $0x568] sm:$0xff]  }
0x26a9   :  { %v6763_v23 = vpack.c.bf16 %v6747_v21, %v6731_v20  ;;  %v6765_v15 = vpack.c.bf16 %v6749_v19, %v6733_v25  ;;  %9600 = vmatpush3.bf16.msra.mxu1 %v10405_v63  ;;  %9622 = vmatpush3.bf16.msra.mxu0 %v10406_v33  ;;  %v6588_v16 = vpop.f32.mrb[168].mxu1  ;;  %v6631_v45 = vpop.f32.mrb[172].mxu0  ;;  %v10420_v13 = vld [vmem:[%s12721_s19 + $0x5e8] sm:$0xff]  }
0x26aa   :  { %v6589_v26 = vadd.f32 %v6588_v16, %v6174_v60  ;;  %v6632_v30 = vadd.f32 %v6631_v45, %v6182_v50  ;;  %v6590_v3 = vpop.f32.mrb[169].mxu1  ;;  %v6633_v35 = vpop.f32.mrb[173].mxu0  ;;  %9601 = vmatprep.subr.bf16.mxu1 %v10407_v34  ;;  %9623 = vmatprep.subr.bf16.mxu0 %v10408_v14  ;;  %v10421_v45 = vld [vmem:[%s12721_s19 + $0x528] sm:$0xff]  }
0x26ab   :  { %v6591_v42 = vadd.f32 %v6590_v3, %v6178_v8  ;;  %v6634_v43 = vadd.f32 %v6633_v35, %v6186_v10  ;;  %v6592_v48 = vpop.f32.mrb[170].mxu1  ;;  %v6635_v7 = vpop.f32.mrb[174].mxu0  ;;  %7921 = vmatprep.mubr.bf16.mxu1 %v6763_v23  ;;  %7962 = vmatprep.mubr.bf16.mxu0 %v6765_v15  ;;  %v10423_v35 = vld [vmem:[%s12721_s19 + $0x570] sm:$0xff]  }
0x26ac   :  { %v6593_v6 = vadd.f32 %v6592_v48, %v6174_v60  ;;  %v6636_v1 = vadd.f32 %v6635_v7, %v6182_v50  ;;  %v6594_v39 = vpop.f32.mrb[171].mxu1  ;;  %v6637_v17 = vpop.f32.mrb[175].mxu0  ;;  %v6734_v59 = vmax.f32 %v6589_v26, 0.0  ;;  %v6736_v41 = vmax.f32 %v6632_v30, 0.0 }
0x26ad   :  { %v6595_v54 = vadd.f32 %v6594_v39, %v6178_v8  ;;  %v6638_v56 = vadd.f32 %v6637_v17, %v6186_v10  ;;  %9602 = vmatpush3.bf16.msra.mxu1 %v10409_v36  ;;  %9624 = vmatpush3.bf16.msra.mxu0 %v10410_v0  ;;  %v6735_v2 = vmax.f32 %v6591_v42, 0.0  ;;  %v6737_v49 = vmax.f32 %v6634_v43, 0.0  ;;  %v10422_v36 = vld [vmem:[%s12721_s19 + $0x5a8] sm:$0xff]   ;;  %v10425_v39 = vld [vmem:[%s12721_s19 + $0x530] sm:$0xff]  }
0x26ae   :  { %v6750_v60 = vmax.f32 %v6593_v6, 0.0  ;;  %v6752_v61 = vmax.f32 %v6636_v1, 0.0  ;;  %9603 = vmatprep.subr.bf16.mxu1 %v10411_v37  ;;  %9625 = vmatprep.subr.bf16.mxu0 %v10412_v38  ;;  %v10424_v37 = vld [vmem:[%s12721_s19 + $0x5f0] sm:$0xff]  }
0x26af   :  { %v6751_v50 = vmax.f32 %v6595_v54, 0.0  ;;  %v6753_v53 = vmax.f32 %v6638_v56, 0.0  ;;  %v10426_v17 = vld [vmem:[%s12721_s19 + $0x5b0] sm:$0xff]   ;;  %v10429_v54 = vld [vmem:[%s12721_s19 + $0x538] sm:$0xff]  }
0x26b0   :  { %v12400_v5 = vpack.c.bf16 %v6750_v60, %v6734_v59  ;;  %v12402_v46 = vpack.c.bf16 %v6752_v61, %v6736_v41  ;;  %v10430_v56 = vld [vmem:[%s12721_s19 + $0x5b8] sm:$0xff]   ;;  %v10434_v59 = vld [vmem:[%s12721_s19 + $0x680] sm:$0xff]   ;;  %v10435_v41 = vld [vmem:[%s12721_s19 + $0x648] sm:$0xff]  }
0x26b1   :  { %v12404_v47 = vpack.c.bf16 %v6751_v50, %v6735_v2  ;;  %v12406_v32 = vpack.c.bf16 %v6753_v53, %v6737_v49  ;;  %9604 = vmatpush3.bf16.msra.mxu1 %v10413_v57  ;;  %9626 = vmatpush3.bf16.msra.mxu0 %v10414_v40  ;;  %v6674_v27 = vpop.f32.mrb[172].mxu1  ;;  %v6717_v8 = vpop.f32.mrb[176].mxu0  ;;  %v10431_v57 = vld [vmem:[%s12721_s19 + $0x640] sm:$0xff]   ;;  %v10436_v60 = vld [vmem:[%s12721_s19 + $0x6c8] sm:$0xff]   ;;  %v10442_v2 = vld [vmem:[%s12721_s19 + $0x690] sm:$0xff]  }
0x26b2   :  { %v6675_v63 = vadd.f32 %v6674_v27, %v6190_v58  ;;  %v6718_v33 = vadd.f32 %v6717_v8, %v6198_v18  ;;  %v6676_v10 = vpop.f32.mrb[173].mxu1  ;;  %v6719_v11 = vpop.f32.mrb[177].mxu0  ;;  %9605 = vmatprep.subr.bf16.mxu1 %v10415_v44  ;;  %9627 = vmatprep.subr.bf16.mxu0 %v10416_v62  ;;  %v10432_v40 = vld [vmem:[%s12721_s19 + $0x6c0] sm:$0xff]   ;;  %v10437_v61 = vld [vmem:[%s12721_s19 + $0x608] sm:$0xff]   ;;  %v10441_v62 = vld [vmem:[%s12721_s19 + $0x610] sm:$0xff]  }
0x26b3   :  { %v6677_v24 = vadd.f32 %v6676_v10, %v6194_v28  ;;  %v6720_v34 = vadd.f32 %v6719_v11, %v6202_v55  ;;  %v6678_v14 = vpop.f32.mrb[174].mxu1  ;;  %v6721_v20 = vpop.f32.mrb[178].mxu0  ;;  %v10438_v44 = vld [vmem:[%s12721_s19 + $0x688] sm:$0xff]   ;;  %v10443_v49 = vld [vmem:[%s12721_s19 + $0x658] sm:$0xff]   ;;  %v10448_v27 = vld [vmem:[%s12721_s19 + $0x6e0] sm:$0xff]  }
0x26b4   :  { %v6679_v25 = vadd.f32 %v6678_v14, %v6190_v58  ;;  %v6722_v21 = vadd.f32 %v6721_v20, %v6198_v18  ;;  %v6680_v19 = vpop.f32.mrb[175].mxu1  ;;  %v6723_v23 = vpop.f32.mrb[179].mxu0  ;;  %v6738_v0 = vmax.f32 %v6675_v63, 0.0  ;;  %v6740_v26 = vmax.f32 %v6718_v33, 0.0  ;;  %v10427_v18 = vld [vmem:[%s12721_s19 + $0x578] sm:$0xff]   ;;  %v10449_v8 = vld [vmem:[%s12721_s19 + $0x620] sm:$0xff]  }
0x26b5   :  { %v6681_v15 = vadd.f32 %v6680_v19, %v6194_v28  ;;  %v6724_v16 = vadd.f32 %v6723_v23, %v6202_v55  ;;  %9606 = vmatpush3.bf16.msra.mxu1 %v10417_v9  ;;  %9628 = vmatpush3.bf16.msra.mxu0 %v10418_v31  ;;  %v6739_v38 = vmax.f32 %v6677_v24, 0.0  ;;  %v6741_v42 = vmax.f32 %v6720_v34, 0.0  ;;  %v10428_v28 = vld [vmem:[%s12721_s19 + $0x5f8] sm:$0xff]   ;;  %v10433_v55 = vld [vmem:[%s12721_s19 + $0x600] sm:$0xff]   ;;  %v10451_v31 = vld [vmem:[%s12721_s19 + $0x668] sm:$0xff]  }
0x26b6   :  { %v6754_v30 = vmax.f32 %v6679_v25, 0.0  ;;  %v6756_v3 = vmax.f32 %v6722_v21, 0.0  ;;  %9607 = vmatprep.subr.bf16.mxu1 %v10419_v12  ;;  %9629 = vmatprep.subr.bf16.mxu0 %v10420_v13  ;;  %v10444_v50 = vld [vmem:[%s12721_s19 + $0x6d8] sm:$0xff]   ;;  %v10450_v9 = vld [vmem:[%s12721_s19 + $0x6a0] sm:$0xff]   ;;  %v10452_v63 = vld [vmem:[%s12721_s19 + $0x6e8] sm:$0xff]  }
0x26b7   :  { %v6755_v43 = vmax.f32 %v6681_v15, 0.0  ;;  %v6757_v48 = vmax.f32 %v6724_v16, 0.0  ;;  %v10445_v53 = vld [vmem:[%s12721_s19 + $0x618] sm:$0xff]   ;;  %v10453_v33 = vld [vmem:[%s12721_s19 + $0x628] sm:$0xff]   ;;  %v10455_v11 = vld [vmem:[%s12721_s19 + $0x670] sm:$0xff]  }
0x26b8   :  { %v12432_v7 = vpack.c.bf16 %v6754_v30, %v6738_v0  ;;  %v12434_v58 = vpack.c.bf16 %v6756_v3, %v6740_v26  ;;  %v10454_v10 = vld [vmem:[%s12721_s19 + $0x6a8] sm:$0xff]   ;;  %v10456_v12 = vld [vmem:[%s12721_s19 + $0x6f0] sm:$0xff]   ;;  %v10459_v34 = vld [vmem:[%s12721_s19 + $0x678] sm:$0xff]  }
0x26b9   :  { %v12436_v6 = vpack.c.bf16 %v6755_v43, %v6739_v38  ;;  %v12438_v1 = vpack.c.bf16 %v6757_v48, %v6741_v42  ;;  %9608 = vmatpush3.bf16.msra.mxu1 %v10421_v45  ;;  %9630 = vmatpush3.bf16.msra.mxu0 %v10422_v36  ;;  %v10457_v13 = vld [vmem:[%s12721_s19 + $0x630] sm:$0xff]   ;;  %v10460_v14 = vld [vmem:[%s12721_s19 + $0x6f8] sm:$0xff]   ;;  %v10463_v21 = vld [vmem:[%s12721_s19 + $0x740] sm:$0xff]  }
0x26ba   :  { %9609 = vmatprep.subr.bf16.mxu1 %v10423_v35  ;;  %9631 = vmatprep.subr.bf16.mxu0 %v10424_v37  ;;  %v10458_v24 = vld [vmem:[%s12721_s19 + $0x6b0] sm:$0xff]   ;;  %v10461_v20 = vld [vmem:[%s12721_s19 + $0x638] sm:$0xff]   ;;  %v10464_v19 = vld [vmem:[%s12721_s19 + $0x7c0] sm:$0xff]  }
0x26bb   :  { %v10462_v25 = vld [vmem:[%s12721_s19 + $0x6b8] sm:$0xff]   ;;  %v10465_v23 = vld [vmem:[%s12721_s19 + $0x700] sm:$0xff]   ;;  %v10467_v16 = vld [vmem:[%s12721_s19 + $0x748] sm:$0xff]  }
0x26bc   :  { %v10466_v15 = vld [vmem:[%s12721_s19 + $0x780] sm:$0xff]   ;;  %v10468_v45 = vld [vmem:[%s12721_s19 + $0x7c8] sm:$0xff]   ;;  %v10473_v26 = vld [vmem:[%s12721_s19 + $0x710] sm:$0xff]  }
0x26bd   :  { %9610 = vmatpush3.bf16.msra.mxu1 %v10425_v39  ;;  %9632 = vmatpush3.bf16.msra.mxu0 %v10426_v17  ;;  %v10469_v36 = vld [vmem:[%s12721_s19 + $0x708] sm:$0xff]   ;;  %v10474_v30 = vld [vmem:[%s12721_s19 + $0x790] sm:$0xff]   ;;  %v10475_v3 = vld [vmem:[%s12721_s19 + $0x758] sm:$0xff]  }
0x26be   :  { %9611 = vmatprep.subr.bf16.mxu1 %v10427_v18  ;;  %9633 = vmatprep.subr.bf16.mxu0 %v10428_v28  ;;  %v10470_v0 = vld [vmem:[%s12721_s19 + $0x788] sm:$0xff]   ;;  %v10476_v35 = vld [vmem:[%s12721_s19 + $0x7d8] sm:$0xff]   ;;  %v10479_v42 = vld [vmem:[%s12721_s19 + $0x760] sm:$0xff]  }
0x26bf   :  { %v10477_v37 = vld [vmem:[%s12721_s19 + $0x718] sm:$0xff]   ;;  %v10480_v43 = vld [vmem:[%s12721_s19 + $0x7e0] sm:$0xff]   ;;  %v10484_v39 = vld [vmem:[%s12721_s19 + $0x7e8] sm:$0xff]  }
0x26c0   :  { %v10478_v38 = vld [vmem:[%s12721_s19 + $0x798] sm:$0xff]   ;;  %v10481_v48 = vld [vmem:[%s12721_s19 + $0x720] sm:$0xff]   ;;  %v10485_v17 = vld [vmem:[%s12721_s19 + $0x728] sm:$0xff]  }
0x26c1   :  { %9612 = vmatpush3.bf16.msra.mxu1 %v10429_v54  ;;  %9634 = vmatpush3.bf16.msra.mxu0 %v10430_v56  ;;  %v10486_v18 = vld [vmem:[%s12721_s19 + $0x7a8] sm:$0xff]   ;;  %v10487_v28 = vld [vmem:[%s12721_s19 + $0x770] sm:$0xff]  }
0x26c2   :  { %9641 = vmatprep.subr.bf16.mxu1 %v10431_v57  ;;  %9663 = vmatprep.subr.bf16.mxu0 %v10432_v40  ;;  %v10488_v54 = vld [vmem:[%s12721_s19 + $0x7f0] sm:$0xff]   ;;  %v10491_v40 = vld [vmem:[%s12721_s19 + $0x778] sm:$0xff]  }
0x26c3   :  { %v10489_v56 = vld [vmem:[%s12721_s19 + $0x730] sm:$0xff]  }
0x26c4   :  { %7922 = vmatmul.mubr.bf16.vlgmr.msra.gmra.mrb[180].mxu1 %v12364_v22  ;;  %7963 = vmatmul.mubr.bf16.vlgmr.msra.gmra.mrb[184].mxu0 %v12366_v29  ;;  %v10439_v22 = vld [vmem:[%s12721_s19 + $0x650] sm:$0xff]  }
0x26c5   :  { %9642 = vmatpush3.bf16.msra.mxu1 %v10433_v55  ;;  %8003 = vmatprep.mubr.bf16.mxu1 %v12404_v47  ;;  %v10440_v29 = vld [vmem:[%s12721_s19 + $0x6d0] sm:$0xff]   ;;  %v10446_v47 = vld [vmem:[%s12721_s19 + $0x698] sm:$0xff]  }
0x26c6   :  { %9664 = vmatpush3.bf16.msra.mxu0 %v10434_v59  ;;  %8044 = vmatprep.mubr.bf16.mxu0 %v12406_v32  ;;  %v10447_v32 = vld [vmem:[%s12721_s19 + $0x660] sm:$0xff]   ;;  %v10490_v57 = vld [vmem:[%s12721_s19 + $0x7b0] sm:$0xff]   ;;  %v10492_v55 = vld [vmem:[%s12721_s19 + $0x7f8] sm:$0xff]  }
0x26c7   :  { %9643 = vmatprep.subr.bf16.mxu1 %v10435_v41  ;;  %9665 = vmatprep.subr.bf16.mxu0 %v10436_v60  ;;  %v10493_v59 = vld [vmem:[%s12721_s19 + $0x738] sm:$0xff]  }
0x26c8   :  { %v10494_v41 = vld [vmem:[%s12721_s19 + $0x7b8] sm:$0xff]  }
0x26c9   :  { %9644 = vmatpush3.bf16.msra.mxu1 %v10437_v61 }
0x26ca   :  { %9666 = vmatpush3.bf16.msra.mxu0 %v10438_v44  ;;  %9645 = vmatprep.subr.bf16.mxu1 %v10439_v22  ;;  %v9083_v44 = vld [vmem:[%s12725_s20 + $0x1] ss:$0 sm:$0xff] }
0x26cb   :  { %9667 = vmatprep.subr.bf16.mxu0 %v10440_v29 }
0x26cd   :  { %9646 = vmatpush3.bf16.msra.mxu1 %v10441_v62 }
0x26ce   :  { %9668 = vmatpush3.bf16.msra.mxu0 %v10442_v2  ;;  %9647 = vmatprep.subr.bf16.mxu1 %v10443_v49 }
0x26cf   :  { %9669 = vmatprep.subr.bf16.mxu0 %v10444_v50 }
0x26d1   :  { %9648 = vmatpush3.bf16.msra.mxu1 %v10445_v53 }
0x26d2   :  { %9670 = vmatpush3.bf16.msra.mxu0 %v10446_v47  ;;  %9649 = vmatprep.subr.bf16.mxu1 %v10447_v32 }
0x26d3   :  { %9671 = vmatprep.subr.bf16.mxu0 %v10448_v27 }
0x26d5   :  { %9650 = vmatpush3.bf16.msra.mxu1 %v10449_v8 }
0x26d6   :  { %9672 = vmatpush3.bf16.msra.mxu0 %v10450_v9  ;;  %9651 = vmatprep.subr.bf16.mxu1 %v10451_v31 }
0x26d7   :  { %9673 = vmatprep.subr.bf16.mxu0 %v10452_v63 }
0x26d9   :  { %9652 = vmatpush3.bf16.msra.mxu1 %v10453_v33 }
0x26da   :  { %9674 = vmatpush3.bf16.msra.mxu0 %v10454_v10  ;;  %9653 = vmatprep.subr.bf16.mxu1 %v10455_v11 }
0x26db   :  { %9675 = vmatprep.subr.bf16.mxu0 %v10456_v12 }
0x26dd   :  { %9654 = vmatpush3.bf16.msra.mxu1 %v10457_v13 }
0x26de   :  { %9676 = vmatpush3.bf16.msra.mxu0 %v10458_v24  ;;  %9655 = vmatprep.subr.bf16.mxu1 %v10459_v34 }
0x26df   :  { %9677 = vmatprep.subr.bf16.mxu0 %v10460_v14 }
0x26e1   :  { %9656 = vmatpush3.bf16.msra.mxu1 %v10461_v20 }
0x26e2   :  { %9678 = vmatpush3.bf16.msra.mxu0 %v10462_v25  ;;  %9685 = vmatprep.subr.bf16.mxu1 %v10463_v21 }
0x26e3   :  { %9707 = vmatprep.subr.bf16.mxu0 %v10464_v19 }
0x26e4   :  { %8004 = vmatmul.mubr.bf16.vlgmr.msra.gmra.mrb[184].mxu1 %v12400_v5  ;;  %v10471_v5 = vld [vmem:[%s12721_s19 + $0x750] sm:$0xff]  }
0x26e5   :  { %8045 = vmatmul.mubr.bf16.vlgmr.msra.gmra.mrb[188].mxu0 %v12402_v46  ;;  %9686 = vmatpush3.bf16.msra.mxu1 %v10465_v23  ;;  %v10472_v46 = vld [vmem:[%s12721_s19 + $0x7d0] sm:$0xff]  }
0x26e6   :  { %8085 = vmatprep.mubr.bf16.mxu1 %v12436_v6  ;;  %9708 = vmatpush3.bf16.msra.mxu0 %v10466_v15  ;;  %v10482_v6 = vld [vmem:[%s12721_s19 + $0x7a0] sm:$0xff]  }
0x26e7   :  { %8126 = vmatprep.mubr.bf16.mxu0 %v12438_v1  ;;  %9687 = vmatprep.subr.bf16.mxu1 %v10467_v16  ;;  %v10483_v1 = vld [vmem:[%s12721_s19 + $0x768] sm:$0xff]  }
0x26e8   :  { %9709 = vmatprep.subr.bf16.mxu0 %v10468_v45 }
0x26e9   :  { %9688 = vmatpush3.bf16.msra.mxu1 %v10469_v36 }
0x26ea   :  { %9710 = vmatpush3.bf16.msra.mxu0 %v10470_v0  ;;  %9689 = vmatprep.subr.bf16.mxu1 %v10471_v5 }
0x26eb   :  { %9711 = vmatprep.subr.bf16.mxu0 %v10472_v46 }
0x26ed   :  { %9690 = vmatpush3.bf16.msra.mxu1 %v10473_v26 }
0x26ee   :  { %9712 = vmatpush3.bf16.msra.mxu0 %v10474_v30  ;;  %9691 = vmatprep.subr.bf16.mxu1 %v10475_v3 }
0x26ef   :  { %9713 = vmatprep.subr.bf16.mxu0 %v10476_v35 }
0x26f1   :  { %9692 = vmatpush3.bf16.msra.mxu1 %v10477_v37 }
0x26f2   :  { %9714 = vmatpush3.bf16.msra.mxu0 %v10478_v38  ;;  %9693 = vmatprep.subr.bf16.mxu1 %v10479_v42 }
0x26f3   :  { %9715 = vmatprep.subr.bf16.mxu0 %v10480_v43 }
0x26f5   :  { %9694 = vmatpush3.bf16.msra.mxu1 %v10481_v48 }
0x26f6   :  { %9716 = vmatpush3.bf16.msra.mxu0 %v10482_v6  ;;  %9695 = vmatprep.subr.bf16.mxu1 %v10483_v1 }
0x26f7   :  { %9717 = vmatprep.subr.bf16.mxu0 %v10484_v39 }
0x26f9   :  { %9696 = vmatpush3.bf16.msra.mxu1 %v10485_v17 }
0x26fa   :  { %9718 = vmatpush3.bf16.msra.mxu0 %v10486_v18  ;;  %9697 = vmatprep.subr.bf16.mxu1 %v10487_v28 }
0x26fb   :  { %9719 = vmatprep.subr.bf16.mxu0 %v10488_v54 }
0x26fd   :  { %9698 = vmatpush3.bf16.msra.mxu1 %v10489_v56 }
0x26fe   :  { %9720 = vmatpush3.bf16.msra.mxu0 %v10490_v57  ;;  %9699 = vmatprep.subr.bf16.mxu1 %v10491_v40 }
0x26ff   :  { %9721 = vmatprep.subr.bf16.mxu0 %v10492_v55 }
0x2701   :  { %9700 = vmatpush3.bf16.msra.mxu1 %v10493_v59 }
0x2702   :  { %9722 = vmatpush3.bf16.msra.mxu0 %v10494_v41  ;;  %10172 = vmatprep.subr.bf16.mxu1 %v10580_v4 }
0x2703   :  { %10180 = vmatprep.subr.bf16.mxu0 %v10580_v4 }
0x2704   :  { %8086 = vmatmul.mubr.bf16.vlgmr.msra.gmra.mrb[188].mxu1 %v12432_v7 }
0x2705   :  { %8127 = vmatmul.mubr.bf16.vlgmr.msra.gmra.mrb[192].mxu0 %v12434_v58  ;;  %10176 = vmatprep.mubr.msk.bf16.mxu1 %vm10581_vm0, %v10580_v4 }
0x2706   :  { %10182 = vmatprep.mubr.msk.bf16.mxu0 %vm10581_vm0, %v10580_v4 }
0x2777   :  { %v9569_v60 = vpop.f32.mrb[176].mxu1  ;;  %v9591_v61 = vpop.f32.mrb[180].mxu0 }
0x2778   :  { %v9570_v22 = vpop.f32.mrb[177].mxu1  ;;  %v9592_v29 = vpop.f32.mrb[181].mxu0 }
0x2779   :  { %v9571_v62 = vadd.f32 %v9570_v22, %v9569_v60  ;;  %v9593_v2 = vadd.f32 %v9592_v29, %v9591_v61  ;;  %v9572_v49 = vpop.f32.mrb[178].mxu1  ;;  %v9594_v7 = vpop.f32.mrb[182].mxu0 }
0x277a   :  { %v9573_v50 = vpop.f32.mrb[179].mxu1  ;;  %v9595_v58 = vpop.f32.mrb[183].mxu0 }
0x277b   :  { %v7842_v53 = vadd.f32 %v9571_v62, %v9083_v44  ;;  %v9574_v47 = vadd.f32 %v9573_v50, %v9572_v49  ;;  %v9596_v32 = vadd.f32 %v9595_v58, %v9594_v7 }
0x277d   :  { %v7883_v27 = vadd.f32 %v9593_v2, %v7842_v53  ;;  %v7845_v8 = vadd.f32 %v9574_v47, %v9083_v44 }
0x277f   :  { %v7886_v9 = vadd.f32 %v9596_v32, %v7845_v8 }
0x2797   :  { %v9613_v31 = vpop.f32.mrb[180].mxu1  ;;  %v9635_v63 = vpop.f32.mrb[184].mxu0 }
0x2798   :  { %v9614_v33 = vpop.f32.mrb[181].mxu1  ;;  %v9636_v10 = vpop.f32.mrb[185].mxu0 }
0x2799   :  { %v9615_v11 = vadd.f32 %v9614_v33, %v9613_v31  ;;  %v9637_v12 = vadd.f32 %v9636_v10, %v9635_v63  ;;  %v9616_v13 = vpop.f32.mrb[182].mxu1  ;;  %v9638_v24 = vpop.f32.mrb[186].mxu0  ;;  %v10496_v31 = vld [vmem:[%s12728_s23 + $0x8] sm:$0xff]  }
0x279a   :  { %v9617_v34 = vpop.f32.mrb[183].mxu1  ;;  %v9639_v14 = vpop.f32.mrb[187].mxu0 }
0x279b   :  { %v7924_v20 = vadd.f32 %v9615_v11, %v7883_v27  ;;  %v9618_v25 = vadd.f32 %v9617_v34, %v9616_v13  ;;  %v9640_v21 = vadd.f32 %v9639_v14, %v9638_v24  ;;  %v9214_v34 = vld [vmem:[%s12726_s21 + $0x1] ss:$0 sm:$0xff] }
0x279d   :  { %v7965_v19 = vadd.f32 %v9637_v12, %v7924_v20  ;;  %v7927_v23 = vadd.f32 %v9618_v25, %v7886_v9 }
0x279f   :  { %v7968_v15 = vadd.f32 %v9640_v21, %v7927_v23 }
0x27b7   :  { %v9657_v16 = vpop.f32.mrb[184].mxu1 }
0x27b8   :  { %v9679_v45 = vpop.f32.mrb[188].mxu0  ;;  %v9658_v36 = vpop.f32.mrb[185].mxu1 }
0x27b9   :  { %v9659_v0 = vadd.f32 %v9658_v36, %v9657_v16  ;;  %v9680_v5 = vpop.f32.mrb[189].mxu0  ;;  %v9660_v46 = vpop.f32.mrb[186].mxu1  ;;  %v9216_v36 = vld [vmem:[%s12730_s24] ss:$0 sm:$0xff] }
0x27ba   :  { %v9681_v26 = vadd.f32 %v9680_v5, %v9679_v45  ;;  %v9682_v30 = vpop.f32.mrb[190].mxu0  ;;  %v9661_v3 = vpop.f32.mrb[187].mxu1  ;;  %v10497_v45 = vld [vmem:[%s12729_s25] sm:$0xff]  }
0x27bb   :  { %v8006_v35 = vadd.f32 %v9659_v0, %v7965_v19  ;;  %v9662_v37 = vadd.f32 %v9661_v3, %v9660_v46  ;;  %v9683_v38 = vpop.f32.mrb[191].mxu0  ;;  %10181 = vmatpush3.bf16.msra.mxu0 %v10497_v45 }
0x27bc   :  { %v9684_v42 = vadd.f32 %v9683_v38, %v9682_v30 }
0x27bd   :  { %v8047_v43 = vadd.f32 %v9681_v26, %v8006_v35  ;;  %v8009_v48 = vadd.f32 %v9662_v37, %v7968_v15 }
0x27bf   :  { %v8050_v6 = vadd.f32 %v9684_v42, %v8009_v48  ;;  %v9220_v42 = vld [vmem:[%s12731_s26] ss:$0 sm:$0xff] }
0x27d7   :  { %v9701_v1 = vpop.f32.mrb[188].mxu1 }
0x27d8   :  { %v9723_v39 = vpop.f32.mrb[192].mxu0  ;;  %v9702_v17 = vpop.f32.mrb[189].mxu1 }
0x27d9   :  { %v9703_v18 = vadd.f32 %v9702_v17, %v9701_v1  ;;  %v9724_v28 = vpop.f32.mrb[193].mxu0  ;;  %v9704_v54 = vpop.f32.mrb[190].mxu1 }
0x27da   :  { %v9725_v56 = vadd.f32 %v9724_v28, %v9723_v39  ;;  %v9726_v57 = vpop.f32.mrb[194].mxu0  ;;  %v9705_v40 = vpop.f32.mrb[191].mxu1 }
0x27db   :  { %v8088_v55 = vadd.f32 %v9703_v18, %v8047_v43  ;;  %v9706_v59 = vadd.f32 %v9705_v40, %v9704_v54  ;;  %v9727_v41 = vpop.f32.mrb[195].mxu0 }
0x27dc   :  { %v9728_v60 = vadd.f32 %v9727_v41, %v9726_v57 }
0x27dd   :  { %v8129_v61 = vadd.f32 %v9725_v56, %v8088_v55  ;;  %v8091_v44 = vadd.f32 %v9706_v59, %v8050_v6 }
0x27df   :  { %v8132_v22 = vadd.f32 %v9728_v60, %v8091_v44  ;;  %v8135_v29 = vadd.f32 %v8129_v61, %v12136_v51 }
0x27e1   :  { %v8141_v62 = vsel %vm209_vm2, %v8135_v29, 0.0  ;;  %v8136_v2 = vadd.f32 %v8132_v22, %v12138_v52  ;;  %v10495_v52 = vld [vmem:[%s12728_s23] sm:$0xff]  }
0x27e2   :  { %8142 = vadd.xlane.f32.xlu1 %v8141_v62  ;;  %10173 = vmatpush3.bf16.msra.mxu1 %v10495_v52 }
0x27e3   :  { %v8144_v49 = vsel %vm209_vm2, %v8136_v2, 0.0  ;;  %10174 = vmatprep.subr.bf16.mxu1 %v10580_v4  ;;  %v9215_v4 = vld [vmem:[%s12727_s22 + $0x1] ss:$0 sm:$0xff] }
0x27e4   :  { %8145 = vadd.xlane.f32.xlu0 %v8144_v49 }
0x27e6   :  { %10175 = vmatpush3.bf16.msra.mxu1 %v10496_v31 }
0x286f   :  { %v8143_v7 = vpop.xlane.xlu1 %8142 }
0x2870   :  { %v8147_v50 = vmul.f32 0.03125, %v8143_v7 }
0x2871   :  { %v8146_v58 = vpop.xlane.xlu0 %8145 }
0x2872   :  { %v8149_v53 = vsub.f32 %v8135_v29, %v8147_v50  ;;  %v8148_v47 = vmul.f32 0.03125, %v8146_v58 }
0x2874   :  { %v8150_v32 = vsub.f32 %v8136_v2, %v8148_v47  ;;  %v8151_v27 = vmul.f32 %v8149_v53, %v8149_v53 }
0x2876   :  { %v8153_v8 = vsel %vm209_vm2, %v8151_v27, 0.0  ;;  %v8152_v9 = vmul.f32 %v8150_v32, %v8150_v32 }
0x2877   :  { %8154 = vadd.xlane.f32.xlu1 %v8153_v8 }
0x2878   :  { %v8156_v51 = vsel %vm209_vm2, %v8152_v9, 0.0 }
0x2879   :  { %8157 = vadd.xlane.f32.xlu0 %v8156_v51 }
0x2904   :  { %v8155_v63 = vpop.xlane.xlu1 %8154 }
0x2905   :  { %v8159_v33 = vmul.f32 0.03125, %v8155_v63 }
0x2906   :  { %v8158_v10 = vpop.xlane.xlu0 %8157 }
0x2907   :  { %v8161_v11 = vadd.f32 1e-05, %v8159_v33  ;;  %v8160_v12 = vmul.f32 0.03125, %v8158_v10 }
0x2909   :  { %10574 = vrsqrt.f32 %v8161_v11  ;;  %v8162_v13 = vadd.f32 1e-05, %v8160_v12 }
0x290b   :  { %10576 = vrsqrt.f32 %v8162_v13 }
0x2913   :  { %v10575_v24 = vpop.eup %10574 }
0x2914   :  { %v8165_v14 = vmul.f32 %v10575_v24, %v8149_v53 }
0x2915   :  { %v10577_v20 = vpop.eup %10576 }
0x2916   :  { %v8173_v25 = vmul.f32 %v9214_v34, %v8165_v14  ;;  %v8166_v21 = vmul.f32 %v10577_v20, %v8150_v32 }
0x2918   :  { %v8174_v19 = vmul.f32 %v9214_v34, %v8166_v21  ;;  %v8181_v23 = vadd.f32 %v9215_v4, %v8173_v25 }
0x291a   :  { %v8182_v15 = vadd.f32 %v9215_v4, %v8174_v19 }
0x291c   :  { %v8183_v16 = vpack.c.bf16 %v8182_v15, %v8181_v23 }
0x291e   :  { %10177 = vmatmul.mubr.msk.bf16.vlgmr.msra.gmra.mrb[192].mxu1 %vm209_vm2, %v8183_v16 }
0x29f1   :  { %v8244_v0 = vpop.f32.mrb[192].mxu1 }
0x29f2   :  { %v8245_v5 = vadd.f32 %v9216_v36, %v8244_v0  ;;  %v10178_v46 = vpop.f32.mrb[193].mxu1 }
0x29f3   :  { %v8247_v26 = vpop.f32.mrb[194].mxu1 }
0x29f4   :  { %v8248_v30 = vadd.f32 %v9216_v36, %v8247_v26  ;;  %v10179_v3 = vpop.f32.mrb[195].mxu1  ;;  %v8251_v35 = vmax.f32 %v8245_v5, 0.0 }
0x29f6   :  { %v8252_v37 = vmax.f32 %v8248_v30, 0.0 }
0x29f8   :  { %v8253_v38 = vpack.c.bf16 %v8252_v37, %v8251_v35 }
0x29fa   :  { %10183 = vmatmul.mubr.msk.bf16.vlgmr.msra.gmra.mrb[196].mxu0 %vm135_vm1, %v8253_v38 }
0x2acd   :  { %v8306_v43 = vpop.f32.mrb[196].mxu0 }
0x2ace   :  { %v8307_v48 = vadd.f32 %v9220_v42, %v8306_v43  ;;  %v10184_v6 = vpop.f32.mrb[197].mxu0 }
0x2acf   :  { %v8309_v1 = vpop.f32.mrb[198].mxu0 }
0x2ad0   :  { %8313 = vst [vmem:[%s12767_s6] sm:$0xff] %v8307_v48  ;;  %v8310_v39 = vadd.f32 %v9220_v42, %v8309_v1  ;;  %v10185_v17 = vpop.f32.mrb[199].mxu0 }
0x2ad2   :  { %8314 = vst [vmem:[%s12767_s6 + $0x8] sm:$0xff] %v8310_v39 }

</bundles_post_ra>
